<compile_context>
chip_gen: v6e
topology: v6e:2x2x1
jax: 0.10.0
libtpu: 0.0.40
codegen_flags: <defaults>
</compile_context>

<pallas_src>
import jax
import jax.numpy as jnp
from jax.experimental import pallas as pl
from jax.experimental.pallas import tpu as pltpu

EMBED_DIM = 400
HIDDEN_DIM = 4 * EMBED_DIM          # 1600
DROPOUT_P = 0.2                     # unused (eval mode)

EMBED_PAD = 512                     # 4 * 128 lanes
HIDDEN_PAD = 1792                   # 14 * 128 lanes
NUM_CHUNKS = 2
TK = HIDDEN_PAD // NUM_CHUNKS       # 896, lane-aligned chunk of the hidden dim


def ffn_kernel(x_ref, w1_ref, b1_ref, w2_ref, b2_ref, o_ref):
    # x_ref:  (tm, EMBED_PAD)  bf16
    # w1_ref: (EMBED_PAD, HIDDEN_PAD) bf16   (resident across grid steps)
    # b1_ref: (1, HIDDEN_PAD)  f32
    # w2_ref: (HIDDEN_PAD, EMBED_PAD) bf16   (resident)
    # b2_ref: (1, EMBED_PAD)   f32
    # o_ref:  (tm, EMBED_PAD)  f32
    x = x_ref[...]

    # fc2 bias folded into the accumulator init (hoisted out of the chunk loop).
    acc = jnp.broadcast_to(b2_ref[...], o_ref.shape).astype(jnp.float32)

    # Static unrolled loop over hidden-dim chunks keeps the live intermediate at
    # (tm, TK) instead of (tm, HIDDEN_PAD).
    for c in range(NUM_CHUNKS):
        lo = c * TK
        h = jnp.dot(x, w1_ref[:, lo:lo + TK],
                    preferred_element_type=jnp.float32)
        h = jnp.maximum(h + b1_ref[:, lo:lo + TK], 0.0)
        acc = acc + jnp.dot(h.astype(jnp.bfloat16), w2_ref[lo:lo + TK, :],
                            preferred_element_type=jnp.float32)

    # dropout: identity in eval mode
    o_ref[...] = acc.astype(o_ref.dtype)


def _round_up(n, m):
    return ((n + m - 1) // m) * m


def feed_forward(x, w1, b1, w2, b2, *, tm=512):
    """x: (B, S, EMBED_DIM) float32. w1: (400,1600), b1: (1,1600), w2: (1600,400),
    b2: (1,400). Returns (B, S, EMBED_DIM)."""
    B, S, E = x.shape
    assert E == EMBED_DIM
    M = B * S
    x2d = x.reshape(M, E)

    # Clamp the row tile to the problem size; keep it a multiple of 16 (bf16 sublanes).
    tm = min(tm, _round_up(M, 16))
    tm = max(16, (tm // 16) * 16)
    M_pad = pl.cdiv(M, tm) * tm

    # Zero-pad rows to M_pad and features to lane-dense widths (numerically exact).
    x_p = jnp.zeros((M_pad, EMBED_PAD), jnp.bfloat16)
    x_p = x_p.at[:M, :EMBED_DIM].set(x2d.astype(jnp.bfloat16))
    w1_p = jnp.zeros((EMBED_PAD, HIDDEN_PAD), jnp.bfloat16)
    w1_p = w1_p.at[:EMBED_DIM, :HIDDEN_DIM].set(w1.astype(jnp.bfloat16))
    b1_p = jnp.zeros((1, HIDDEN_PAD), jnp.float32)
    b1_p = b1_p.at[:, :HIDDEN_DIM].set(b1.reshape(1, HIDDEN_DIM).astype(jnp.float32))
    w2_p = jnp.zeros((HIDDEN_PAD, EMBED_PAD), jnp.bfloat16)
    w2_p = w2_p.at[:HIDDEN_DIM, :EMBED_DIM].set(w2.astype(jnp.bfloat16))
    b2_p = jnp.zeros((1, EMBED_PAD), jnp.float32)
    b2_p = b2_p.at[:, :EMBED_DIM].set(b2.reshape(1, EMBED_DIM).astype(jnp.float32))

    grid = (M_pad // tm,)

    out = pl.pallas_call(
        ffn_kernel,
        out_shape=jax.ShapeDtypeStruct((M_pad, EMBED_PAD), jnp.float32),
        grid_spec=pltpu.PrefetchScalarGridSpec(
            num_scalar_prefetch=0,
            grid=grid,
            in_specs=[
                pl.BlockSpec((tm, EMBED_PAD), lambda i: (i, 0)),            # x tile
                pl.BlockSpec((EMBED_PAD, HIDDEN_PAD), lambda i: (0, 0)),    # W1 (resident)
                pl.BlockSpec((1, HIDDEN_PAD), lambda i: (0, 0)),            # b1
                pl.BlockSpec((HIDDEN_PAD, EMBED_PAD), lambda i: (0, 0)),    # W2 (resident)
                pl.BlockSpec((1, EMBED_PAD), lambda i: (0, 0)),             # b2
            ],
            out_specs=pl.BlockSpec((tm, EMBED_PAD), lambda i: (i, 0)),
        ),
        compiler_params=pltpu.CompilerParams(
            dimension_semantics=("parallel",),
            vmem_limit_bytes=40 << 20,
        ),
    )(x_p, w1_p, b1_p, w2_p, b2_p)

    return out[:M, :EMBED_DIM].astype(x.dtype).reshape(B, S, EMBED_DIM)


def init_params(key):
    """Deterministic init matching nn.Linear's default U(-1/sqrt(fan_in), 1/sqrt(fan_in)).
    Weights are stored as (in_features, out_features)."""
    k1, k2, k3, k4 = jax.random.split(key, 4)
    bound1 = 1.0 / (EMBED_DIM ** 0.5)
    bound2 = 1.0 / (HIDDEN_DIM ** 0.5)
    w1 = jax.random.uniform(k1, (EMBED_DIM, HIDDEN_DIM), jnp.float32, -bound1, bound1)
    b1 = jax.random.uniform(k2, (1, HIDDEN_DIM), jnp.float32, -bound1, bound1)
    w2 = jax.random.uniform(k3, (HIDDEN_DIM, EMBED_DIM), jnp.float32, -bound2, bound2)
    b2 = jax.random.uniform(k4, (1, EMBED_DIM), jnp.float32, -bound2, bound2)
    return w1, b1, w2, b2


if __name__ == "__main__":
    key = jax.random.PRNGKey(0)
    kx, kp = jax.random.split(key)

    # small shapes consistent with a transformer feed-forward: (batch=2, seq=8, embed=400)
    x = jax.random.normal(kx, (2, 8, EMBED_DIM), jnp.float32)
    w1, b1, w2, b2 = init_params(kp)

    y = feed_forward(x, w1, b1, w2, b2)
    y = jax.block_until_ready(y)

    # reference check (plain JAX f32, eval-mode dropout = identity);
    # tolerance relaxed for bf16 MXU inputs with f32 accumulation.
    ref = jnp.maximum(x @ w1 + b1[0], 0.0) @ w2 + b2[0]
    assert y.shape == (2, 8, EMBED_DIM)
    assert jnp.allclose(y, ref, atol=5e-2, rtol=5e-2), "mismatch vs reference"

    print("KERNEL_OK")
</pallas_src>

<mosaic_0001>
module attributes {stable_mosaic.version = 11 : i64} {
  func.func @ffn_kernel(%arg0: i32, %arg1: memref<16x512xbf16, #tpu.memory_space<vmem>>, %arg2: memref<512x1792xbf16, #tpu.memory_space<vmem>>, %arg3: memref<1x1792xf32, #tpu.memory_space<vmem>>, %arg4: memref<1792x512xbf16, #tpu.memory_space<vmem>>, %arg5: memref<1x512xf32, #tpu.memory_space<vmem>>, %arg6: memref<16x512xf32, #tpu.memory_space<vmem>>) attributes {dimension_semantics = [#tpu.dimension_semantics<parallel>], iteration_bounds = array<i64: 1>, scalar_prefetch = 0 : i64, scratch_operands = 0 : i64, tpu.core_type = #tpu.core_type<tc>, window_params = [{transform_indices = @transform_0, window_bounds = array<i64: 16, 512>}, {pipeline_mode = #tpu.pipeline_mode<synchronous>, transform_indices = @transform_1, window_bounds = array<i64: 512, 1792>}, {pipeline_mode = #tpu.pipeline_mode<synchronous>, transform_indices = @transform_2, window_bounds = array<i64: 1, 1792>}, {pipeline_mode = #tpu.pipeline_mode<synchronous>, transform_indices = @transform_3, window_bounds = array<i64: 1792, 512>}, {pipeline_mode = #tpu.pipeline_mode<synchronous>, transform_indices = @transform_4, window_bounds = array<i64: 1, 512>}, {transform_indices = @transform_5, window_bounds = array<i64: 16, 512>}]} {
    %c0 = arith.constant 0 : index
    %c0_0 = arith.constant 0 : index
    %0 = vector.load %arg1[%c0, %c0_0] : memref<16x512xbf16, #tpu.memory_space<vmem>>, vector<16x512xbf16>
    %c0_1 = arith.constant 0 : index
    %c0_2 = arith.constant 0 : index
    %1 = vector.load %arg5[%c0_1, %c0_2] : memref<1x512xf32, #tpu.memory_space<vmem>>, vector<1x512xf32>
    %2 = vector.shape_cast %1 : vector<1x512xf32> to vector<1x512xf32>
    %3 = vector.broadcast %2 : vector<1x512xf32> to vector<16x512xf32>
    %c0_3 = arith.constant 0 : index
    %c0_4 = arith.constant 0 : index
    %4 = vector.load %arg2[%c0_3, %c0_4] : memref<512x1792xbf16, #tpu.memory_space<vmem>>, vector<512x896xbf16>
    %cst = arith.constant dense<0.000000e+00> : vector<16x896xf32>
    %5 = tpu.matmul %0, %4, %cst {dimension_numbers = #tpu.dot_dimension_numbers<[1], [0], [0], [1], [0, 0, 1, 1], [], []>} : vector<16x512xbf16>, vector<512x896xbf16>, vector<16x896xf32> -> vector<16x896xf32>
    %c0_5 = arith.constant 0 : index
    %c0_6 = arith.constant 0 : index
    %6 = vector.load %arg3[%c0_5, %c0_6] : memref<1x1792xf32, #tpu.memory_space<vmem>>, vector<1x896xf32>
    %7 = vector.broadcast %6 : vector<1x896xf32> to vector<16x896xf32>
    %8 = arith.addf %5, %7 : vector<16x896xf32>
    %cst_7 = arith.constant 0.000000e+00 : f32
    %9 = vector.broadcast %cst_7 : f32 to vector<16x896xf32>
    %10 = arith.maximumf %8, %9 : vector<16x896xf32>
    %11 = arith.truncf %10 : vector<16x896xf32> to vector<16x896xbf16>
    %c0_8 = arith.constant 0 : index
    %c0_9 = arith.constant 0 : index
    %12 = vector.load %arg4[%c0_8, %c0_9] : memref<1792x512xbf16, #tpu.memory_space<vmem>>, vector<896x512xbf16>
    %cst_10 = arith.constant dense<0.000000e+00> : vector<16x512xf32>
    %13 = tpu.matmul %11, %12, %cst_10 {dimension_numbers = #tpu.dot_dimension_numbers<[1], [0], [0], [1], [0, 0, 1, 1], [], []>} : vector<16x896xbf16>, vector<896x512xbf16>, vector<16x512xf32> -> vector<16x512xf32>
    %14 = arith.addf %3, %13 : vector<16x512xf32>
    %c0_11 = arith.constant 0 : index
    %c896 = arith.constant 896 : index
    %15 = vector.load %arg2[%c0_11, %c896] : memref<512x1792xbf16, #tpu.memory_space<vmem>>, vector<512x896xbf16>
    %cst_12 = arith.constant dense<0.000000e+00> : vector<16x896xf32>
    %16 = tpu.matmul %0, %15, %cst_12 {dimension_numbers = #tpu.dot_dimension_numbers<[1], [0], [0], [1], [0, 0, 1, 1], [], []>} : vector<16x512xbf16>, vector<512x896xbf16>, vector<16x896xf32> -> vector<16x896xf32>
    %c0_13 = arith.constant 0 : index
    %c896_14 = arith.constant 896 : index
    %17 = vector.load %arg3[%c0_13, %c896_14] : memref<1x1792xf32, #tpu.memory_space<vmem>>, vector<1x896xf32>
    %18 = vector.broadcast %17 : vector<1x896xf32> to vector<16x896xf32>
    %19 = arith.addf %16, %18 : vector<16x896xf32>
    %cst_15 = arith.constant 0.000000e+00 : f32
    %20 = vector.broadcast %cst_15 : f32 to vector<16x896xf32>
    %21 = arith.maximumf %19, %20 : vector<16x896xf32>
    %22 = arith.truncf %21 : vector<16x896xf32> to vector<16x896xbf16>
    %c896_16 = arith.constant 896 : index
    %c0_17 = arith.constant 0 : index
    %23 = vector.load %arg4[%c896_16, %c0_17] : memref<1792x512xbf16, #tpu.memory_space<vmem>>, vector<896x512xbf16>
    %cst_18 = arith.constant dense<0.000000e+00> : vector<16x512xf32>
    %24 = tpu.matmul %22, %23, %cst_18 {dimension_numbers = #tpu.dot_dimension_numbers<[1], [0], [0], [1], [0, 0, 1, 1], [], []>} : vector<16x896xbf16>, vector<896x512xbf16>, vector<16x512xf32> -> vector<16x512xf32>
    %25 = arith.addf %14, %24 : vector<16x512xf32>
    %c0_19 = arith.constant 0 : index
    %c0_20 = arith.constant 0 : index
    %26 = vector.load %arg6[%c0_19, %c0_20] : memref<16x512xf32, #tpu.memory_space<vmem>>, vector<16x512xf32>
    tpu.vector_store %arg6[%c0_19, %c0_20], %25 {strides = array<i32>} : memref<16x512xf32, #tpu.memory_space<vmem>>, vector<16x512xf32>,
    return
  }
  func.func @transform_0(%arg0: i32) -> (i32, i32) {
    %c0_i32 = arith.constant 0 : i32
    %c0_i32_0 = arith.constant 0 : i32
    return %arg0, %c0_i32 : i32, i32
  }
  func.func @transform_1(%arg0: i32) -> (i32, i32) {
    %c0_i32 = arith.constant 0 : i32
    %c0_i32_0 = arith.constant 0 : i32
    %c0_i32_1 = arith.constant 0 : i32
    return %c0_i32, %c0_i32_0 : i32, i32
  }
  func.func @transform_2(%arg0: i32) -> (i32, i32) {
    %c0_i32 = arith.constant 0 : i32
    %c0_i32_0 = arith.constant 0 : i32
    %c0_i32_1 = arith.constant 0 : i32
    return %c0_i32, %c0_i32_0 : i32, i32
  }
  func.func @transform_3(%arg0: i32) -> (i32, i32) {
    %c0_i32 = arith.constant 0 : i32
    %c0_i32_0 = arith.constant 0 : i32
    %c0_i32_1 = arith.constant 0 : i32
    return %c0_i32, %c0_i32_0 : i32, i32
  }
  func.func @transform_4(%arg0: i32) -> (i32, i32) {
    %c0_i32 = arith.constant 0 : i32
    %c0_i32_0 = arith.constant 0 : i32
    %c0_i32_1 = arith.constant 0 : i32
    return %c0_i32, %c0_i32_0 : i32, i32
  }
  func.func @transform_5(%arg0: i32) -> (i32, i32) {
    %c0_i32 = arith.constant 0 : i32
    %c0_i32_0 = arith.constant 0 : i32
    return %arg0, %c0_i32 : i32, i32
  }
}

</mosaic_0001>

<bundles_post_ra>
// kernel: tpu_custom_call.1
= control target key start
LH: loop header
LB: loop body
LE: loop exit
PB: predicated region body
PF: predicated region fallthrough
CT: control target
= control target key end

     0   :  { %10 = vsyncpa [#allocation3], 0  ;;  %s9909_s0 = inlined_call_operand.hbm [shape: bf16[16,512], index: 0, kind: input, shape index: {}]   ;;  %s9910_s1 = inlined_call_operand.hbm [shape: bf16[512,1792], index: 1, kind: input, shape index: {}]   ;;  %s9911_s2 = inlined_call_operand.hbm [shape: f32[1,1792], index: 2, kind: input, shape index: {}]   ;;  %s9912_s3 = inlined_call_operand.hbm [shape: bf16[1792,512], index: 3, kind: input, shape index: {}]   ;;  %s9913_s4 = inlined_call_operand.hbm [shape: f32[1,512], index: 4, kind: input, shape index: {}]   ;;  %s9914_s5 = inlined_call_operand.hbm [shape: f32[16,512], index: 5, kind: output, shape index: {}]  }
   0x1   :  { %11 = vsyncpa [#allocation6], 0 }
   0x2   :  { %12 = vsyncpa [#allocation9], 0 }
   0x3   :  { %13 = vsyncpa [#allocation4], 0  ;;  %s9619_s18 = smov [#allocation5]  }
   0x4   :  { %s31_s19 = sshll.u32 %s9619_s18, 4  ;;  %s32_s19 = int_to_ptr.vmem [resolvable:$true] %s31_s19 }
   0x5   :  { %s9499_s20 = scalar_lea.vmem %s32_s19, 57344  ;;  %p9504_p1 = scmp.lt.s32.totalorder %s32_s19, %s32_s19 }
   0x6   :  { %p9500_p0 = scmp.ne.s32.totalorder %s32_s19, %s9499_s20  ;;  %p9505_p2 = scmp.lt.s32.totalorder %s9499_s20, %s9499_s20 }
   0x8   :  { %p9506_p3 = por %p9505_p2, %p9504_p1 }
   0xa   :  { %p9507_p4 = pnand %p9506_p3, %p9500_p0 }
   0xc   :  { %9510 = shalt.err (!%p9507_p4)
}
   0xd   :  { %s9620_s21 = smov 896   ;;  %s9621_s22 = smov 56  }
   0xe   :  { %37 = dma.hbm_to_vmem [thread:$0]  %s9910_s1, 57344, %s32_s19, [#allocation6], %s9620_s21, %s9620_s21, %s9621_s22  }
   0xf   :  { %s9622_s25 = smov [#allocation8]   ;;  %s9623_s27 = smov [#allocation2]  }
  0x10   :  { %s53_s26 = sshll.u32 %s9622_s25, 4  ;;  %s19_s28 = sshll.u32 %s9623_s27, 4  ;;  %s54_s26 = int_to_ptr.vmem [resolvable:$true] %s53_s26  ;;  %s20_s28 = int_to_ptr.vmem [resolvable:$true] %s19_s28 }
  0x11   :  { %s9519_s29 = scalar_lea.vmem %s54_s26, 57344  ;;  %p9524_p6 = scmp.lt.s32.totalorder %s54_s26, %s54_s26 }
  0x12   :  { %p9520_p5 = scmp.ne.s32.totalorder %s54_s26, %s9519_s29  ;;  %p9525_p7 = scmp.lt.s32.totalorder %s9519_s29, %s9519_s29 }
  0x14   :  { %p9526_p8 = por %p9525_p7, %p9524_p6 }
  0x16   :  { %p9527_p9 = pnand %p9526_p8, %p9520_p5 }
  0x18   :  { %9530 = shalt.err (!%p9527_p9)
}
  0x19   :  { %s9624_s30 = smov 256   ;;  %s9625_s6 = smov 16  }
  0x1a   :  { %59 = dma.hbm_to_vmem [thread:$0]  %s9912_s3, 57344, %s54_s26, [#allocation9], %s9624_s30, %s9624_s30, %s9625_s6  }
  0x1b   :  { %s9539_s1 = scalar_lea.vmem %s20_s28, 512  ;;  %p9544_p11 = scmp.lt.s32.totalorder %s20_s28, %s20_s28 }
  0x1c   :  { %p9540_p10 = scmp.ne.s32.totalorder %s20_s28, %s9539_s1  ;;  %p9545_p12 = scmp.lt.s32.totalorder %s9539_s1, %s9539_s1 }
  0x1e   :  { %p9546_p13 = por %p9545_p12, %p9544_p11 }
  0x20   :  { %p9547_p0 = pnand %p9546_p13, %p9540_p10 }
  0x22   :  { %9550 = shalt.err (!%p9547_p0)
}
  0x23   :  { %25 = dma.hbm_to_vmem [thread:$0]  %s9909_s0, 512, %s20_s28, [#allocation3], %s9624_s30, %s9624_s30, %s9625_s6  }
  0x24   :  { %s9626_s11 = smov [#allocation7]   ;;  %s9627_s13 = smov [#allocation10]  }
  0x25   :  { %s44_s12 = sshll.u32 %s9626_s11, 4  ;;  %s66_s14 = sshll.u32 %s9627_s13, 4  ;;  %s45_s12 = int_to_ptr.vmem [resolvable:$true] %s44_s12  ;;  %s67_s14 = int_to_ptr.vmem [resolvable:$true] %s66_s14 }
  0x26   :  { %s9559_s15 = scalar_lea.vmem %s45_s12, 224  ;;  %p9564_p2 = scmp.lt.s32.totalorder %s45_s12, %s45_s12 }
  0x27   :  { %p9560_p1 = scmp.ne.s32.totalorder %s45_s12, %s9559_s15  ;;  %p9565_p3 = scmp.lt.s32.totalorder %s9559_s15, %s9559_s15 }
  0x29   :  { %p9566_p4 = por %p9565_p3, %p9564_p2 }
  0x2b   :  { %p9567_p5 = pnand %p9566_p4, %p9560_p1 }
  0x2d   :  { %9570 = shalt.err (!%p9567_p5)
}
  0x2e   :  { %47 = dma.hbm_to_vmem [thread:$0]  %s9911_s2, 224, %s45_s12, [#allocation6]  }
  0x2f   :  { %s9579_s17 = scalar_lea.vmem %s67_s14, 64  ;;  %p9584_p7 = scmp.lt.s32.totalorder %s67_s14, %s67_s14 }
  0x30   :  { %p9580_p6 = scmp.ne.s32.totalorder %s67_s14, %s9579_s17  ;;  %p9585_p8 = scmp.lt.s32.totalorder %s9579_s17, %s9579_s17 }
  0x32   :  { %p9586_p9 = por %p9585_p8, %p9584_p7 }
  0x34   :  { %p9587_p10 = pnand %p9586_p9, %p9580_p6 }
  0x36   :  { %9590 = shalt.err (!%p9587_p10)
}
  0x37   :  { %69 = dma.hbm_to_vmem [thread:$0]  %s9913_s4, 64, %s67_s14, [#allocation9]  }
  0x38   :  { %9611 = dma.done.wait [#allocation3], 512  }
  0x39   :  { %9612 = vsyncadd [#allocation3], 4294966784 }
  0x3a   :  { %9613 = dma.done.wait [#allocation6], 57568  }
  0x3b   :  { %9614 = vsyncadd [#allocation6], 4294909728 }
  0x3c   :  { %9615 = dma.done.wait [#allocation9], 57408  }
  0x3d   :  { %9616 = vsyncadd [#allocation9], 4294909888  ;;  %v8164_v0 = vld [vmem:[#allocation5 + $0x314] ss:$56 sps:$4 sm:$0xff]   ;;  %v8168_v2 = vld [vmem:[#allocation5 + $0x310] ss:$56 sps:$4 sm:$0xff]  }
  0x3e   :  { %v8166_v1 = vld [vmem:[#allocation5 + $0xa14] ss:$56 sps:$4 sm:$0xff]   ;;  %1577 = vmatprep.subr.bf16.mxu0 %v8164_v0  ;;  %v8169_v3 = vld [vmem:[#allocation5 + $0xa10] ss:$56 sps:$4 sm:$0xff]   ;;  %v8170_v4 = vld [vmem:[#allocation5 + $0x2a4] ss:$56 sps:$4 sm:$0xff]  }
  0x3f   :  { %1620 = vmatprep.subr.bf16.mxu1 %v8166_v1  ;;  %1578 = vmatpush1.bf16.msra.mxu0 %v8168_v2  ;;  %v8172_v5 = vld [vmem:[#allocation5 + $0x9a4] ss:$56 sps:$4 sm:$0xff]   ;;  %v8174_v6 = vld [vmem:[#allocation5 + $0x2a0] ss:$56 sps:$4 sm:$0xff]   ;;  %v8176_v8 = vld [vmem:[#allocation5 + $0x234] ss:$56 sps:$4 sm:$0xff]  }
  0x40   :  { %1621 = vmatpush1.bf16.msra.mxu1 %v8169_v3  ;;  %1579 = vmatprep.subr.bf16.mxu0 %v8170_v4  ;;  %v8175_v7 = vld [vmem:[#allocation5 + $0x9a0] ss:$56 sps:$4 sm:$0xff]   ;;  %v8178_v9 = vld [vmem:[#allocation5 + $0x934] ss:$56 sps:$4 sm:$0xff]   ;;  %v8180_v10 = vld [vmem:[#allocation5 + $0x230] ss:$56 sps:$4 sm:$0xff]  }
  0x41   :  { %1622 = vmatprep.subr.bf16.mxu1 %v8172_v5  ;;  %v8181_v11 = vld [vmem:[#allocation5 + $0x930] ss:$56 sps:$4 sm:$0xff]   ;;  %v8182_v12 = vld [vmem:[#allocation5 + $0x1c4] ss:$56 sps:$4 sm:$0xff]   ;;  %v8186_v14 = vld [vmem:[#allocation5 + $0x1c0] ss:$56 sps:$4 sm:$0xff]  }
  0x42   :  { %v8184_v13 = vld [vmem:[#allocation5 + $0x8c4] ss:$56 sps:$4 sm:$0xff]   ;;  %v8187_v15 = vld [vmem:[#allocation5 + $0x8c0] ss:$56 sps:$4 sm:$0xff]   ;;  %v8188_v16 = vld [vmem:[#allocation5 + $0x154] ss:$56 sps:$4 sm:$0xff]  }
  0x43   :  { %1580 = vmatpush1.bf16.msra.mxu0 %v8174_v6  ;;  %v8190_v17 = vld [vmem:[#allocation5 + $0x854] ss:$56 sps:$4 sm:$0xff]   ;;  %v8192_v18 = vld [vmem:[#allocation5 + $0x150] ss:$56 sps:$4 sm:$0xff]   ;;  %v8194_v20 = vld [vmem:[#allocation5 + $0xe4] ss:$56 sps:$4 sm:$0xff]  }
  0x44   :  { %1623 = vmatpush1.bf16.msra.mxu1 %v8175_v7  ;;  %1581 = vmatprep.subr.bf16.mxu0 %v8176_v8  ;;  %v8193_v19 = vld [vmem:[#allocation5 + $0x850] ss:$56 sps:$4 sm:$0xff]   ;;  %v8196_v21 = vld [vmem:[#allocation5 + $0x7e4] ss:$56 sps:$4 sm:$0xff]   ;;  %v8198_v22 = vld [vmem:[#allocation5 + $0xe0] ss:$56 sps:$4 sm:$0xff]  }
  0x45   :  { %1624 = vmatprep.subr.bf16.mxu1 %v8178_v9  ;;  %v8199_v23 = vld [vmem:[#allocation5 + $0x7e0] ss:$56 sps:$4 sm:$0xff]   ;;  %v8200_v24 = vld [vmem:[#allocation5 + $0x74] ss:$56 sps:$4 sm:$0xff]   ;;  %v8204_v26 = vld [vmem:[#allocation5 + $0x70] ss:$56 sps:$4 sm:$0xff]  }
  0x46   :  { %v8202_v25 = vld [vmem:[#allocation5 + $0x774] ss:$56 sps:$4 sm:$0xff]   ;;  %v8205_v27 = vld [vmem:[#allocation5 + $0x770] ss:$56 sps:$4 sm:$0xff]   ;;  %v8206_v28 = vld [vmem:[#allocation5 + $0x4] ss:$56 sps:$4 sm:$0xff]  }
  0x47   :  { %1582 = vmatpush1.bf16.msra.mxu0 %v8180_v10  ;;  %v8208_v29 = vld [vmem:[#allocation5 + $0x704] ss:$56 sps:$4 sm:$0xff]   ;;  %v8210_v30 = vld [vmem:[#allocation5] ss:$56 sps:$4 sm:$0xff]   ;;  %v8212_v32 = vld [vmem:[#allocation5 + $0x694] ss:$56 sps:$4 sm:$0xff]  }
  0x48   :  { %1625 = vmatpush1.bf16.msra.mxu1 %v8181_v11  ;;  %1583 = vmatprep.subr.bf16.mxu0 %v8182_v12  ;;  %v8211_v31 = vld [vmem:[#allocation5 + $0x700] ss:$56 sps:$4 sm:$0xff]   ;;  %v8214_v33 = vld [vmem:[#allocation5 + $0xd94] ss:$56 sps:$4 sm:$0xff]   ;;  %v8216_v34 = vld [vmem:[#allocation5 + $0x690] ss:$56 sps:$4 sm:$0xff]  }
  0x49   :  { %1626 = vmatprep.subr.bf16.mxu1 %v8184_v13  ;;  %v8217_v35 = vld [vmem:[#allocation5 + $0xd90] ss:$56 sps:$4 sm:$0xff]   ;;  %v8218_v36 = vld [vmem:[#allocation5 + $0x624] ss:$56 sps:$4 sm:$0xff]   ;;  %v8222_v38 = vld [vmem:[#allocation5 + $0x620] ss:$56 sps:$4 sm:$0xff]  }
  0x4a   :  { %v8220_v37 = vld [vmem:[#allocation5 + $0xd24] ss:$56 sps:$4 sm:$0xff]   ;;  %v8223_v39 = vld [vmem:[#allocation5 + $0xd20] ss:$56 sps:$4 sm:$0xff]   ;;  %v8224_v40 = vld [vmem:[#allocation5 + $0x5b4] ss:$56 sps:$4 sm:$0xff]  }
  0x4b   :  { %1584 = vmatpush1.bf16.msra.mxu0 %v8186_v14  ;;  %v8226_v41 = vld [vmem:[#allocation5 + $0xcb4] ss:$56 sps:$4 sm:$0xff]   ;;  %v8228_v42 = vld [vmem:[#allocation5 + $0x5b0] ss:$56 sps:$4 sm:$0xff]   ;;  %v8230_v44 = vld [vmem:[#allocation5 + $0x544] ss:$56 sps:$4 sm:$0xff]  }
  0x4c   :  { %1627 = vmatpush1.bf16.msra.mxu1 %v8187_v15  ;;  %1585 = vmatprep.subr.bf16.mxu0 %v8188_v16  ;;  %v8229_v43 = vld [vmem:[#allocation5 + $0xcb0] ss:$56 sps:$4 sm:$0xff]   ;;  %v8232_v45 = vld [vmem:[#allocation5 + $0xc44] ss:$56 sps:$4 sm:$0xff]   ;;  %v8234_v46 = vld [vmem:[#allocation5 + $0x540] ss:$56 sps:$4 sm:$0xff]  }
  0x4d   :  { %1628 = vmatprep.subr.bf16.mxu1 %v8190_v17  ;;  %v8235_v47 = vld [vmem:[#allocation5 + $0xc40] ss:$56 sps:$4 sm:$0xff]   ;;  %v9677_v48 = vld [vmem:[#allocation2 + $0x4] ss:$16 sps:$4 sm:$0xff]   ;;  %v9679_v50 = vld [vmem:[#allocation2 + $0xc] ss:$16 sps:$4 sm:$0xff]  }
  0x4e   :  { %v8236_v49 = vld [vmem:[#allocation5 + $0x4d4] ss:$56 sps:$4 sm:$0xff]   ;;  %1609 = vmatprep.mubr.bf16.mxu0 %v9677_v48  ;;  %1652 = vmatprep.mubr.bf16.mxu1 %v9679_v50  ;;  %v8240_v52 = vld [vmem:[#allocation5 + $0x4d0] ss:$56 sps:$4 sm:$0xff]   ;;  %v8242_v54 = vld [vmem:[#allocation5 + $0x464] ss:$56 sps:$4 sm:$0xff]  }
  0x4f   :  { %1586 = vmatpush1.bf16.msra.mxu0 %v8192_v18  ;;  %v8238_v51 = vld [vmem:[#allocation5 + $0xbd4] ss:$56 sps:$4 sm:$0xff]   ;;  %v8241_v53 = vld [vmem:[#allocation5 + $0xbd0] ss:$56 sps:$4 sm:$0xff]   ;;  %v8244_v55 = vld [vmem:[#allocation5 + $0xb64] ss:$56 sps:$4 sm:$0xff]  }
  0x50   :  { %1629 = vmatpush1.bf16.msra.mxu1 %v8193_v19  ;;  %1587 = vmatprep.subr.bf16.mxu0 %v8194_v20  ;;  %v8246_v56 = vld [vmem:[#allocation5 + $0x460] ss:$56 sps:$4 sm:$0xff]   ;;  %v8248_v58 = vld [vmem:[#allocation5 + $0x3f4] ss:$56 sps:$4 sm:$0xff]   ;;  %v8252_v60 = vld [vmem:[#allocation5 + $0x3f0] ss:$56 sps:$4 sm:$0xff]  }
  0x51   :  { %1630 = vmatprep.subr.bf16.mxu1 %v8196_v21  ;;  %v8247_v57 = vld [vmem:[#allocation5 + $0xb60] ss:$56 sps:$4 sm:$0xff]   ;;  %v8250_v59 = vld [vmem:[#allocation5 + $0xaf4] ss:$56 sps:$4 sm:$0xff]   ;;  %v8253_v61 = vld [vmem:[#allocation5 + $0xaf0] ss:$56 sps:$4 sm:$0xff]  }
  0x52   :  { %v8254_v62 = vld [vmem:[#allocation5 + $0x384] ss:$56 sps:$4 sm:$0xff]   ;;  %v8258_v0 = vld [vmem:[#allocation5 + $0x380] ss:$56 sps:$4 sm:$0xff]   ;;  %s9629_s2 = smov [#allocation11]  }
  0x53   :  { %1588 = vmatpush1.bf16.msra.mxu0 %v8198_v22  ;;  %v8256_v63 = vld [vmem:[#allocation5 + $0xa84] ss:$56 sps:$4 sm:$0xff]   ;;  %v8259_v1 = vld [vmem:[#allocation5 + $0xa80] ss:$56 sps:$4 sm:$0xff]   ;;  %s7149_s4 = sshll.u32 %s9629_s2, 4  ;;  %s7150_s4 = int_to_ptr.vmem [resolvable:$true] %s7149_s4 }
  0x54   :  { %1631 = vmatpush1.bf16.msra.mxu1 %v8199_v23  ;;  %1589 = vmatprep.subr.bf16.mxu0 %v8200_v24  ;;  %v8268_v2 = vld [vmem:[#allocation5 + $0x31c] ss:$56 sps:$4 sm:$0xff]   ;;  %v9683_v4 = vld [vmem:[#allocation2] ss:$16 sps:$4 sm:$0xff]   ;;  %v9685_v5 = vld [vmem:[#allocation2 + $0x8] ss:$16 sps:$4 sm:$0xff]   ;;  %p9596_p12 = scmp.lt.s32.totalorder %s7150_s4, %s7150_s4 }
  0x55   :  { %1632 = vmatprep.subr.bf16.mxu1 %v8202_v25  ;;  %v8271_v3 = vld [vmem:[#allocation5 + $0xa1c] ss:$56 sps:$4 sm:$0xff]   ;;  %v8266_v6 = vld [vmem:[#allocation5 + $0x318] ss:$56 sps:$4 sm:$0xff]   ;;  %v8274_v8 = vld [vmem:[#allocation5 + $0x2ac] ss:$56 sps:$4 sm:$0xff]  }
  0x56   :  { %v8269_v7 = vld [vmem:[#allocation5 + $0xa18] ss:$56 sps:$4 sm:$0xff]   ;;  %v8277_v9 = vld [vmem:[#allocation5 + $0x9ac] ss:$56 sps:$4 sm:$0xff]   ;;  %v8272_v10 = vld [vmem:[#allocation5 + $0x2a8] ss:$56 sps:$4 sm:$0xff]  }
  0x57   :  { %1590 = vmatpush1.bf16.msra.mxu0 %v8204_v26  ;;  %v8275_v11 = vld [vmem:[#allocation5 + $0x9a8] ss:$56 sps:$4 sm:$0xff]   ;;  %v8280_v12 = vld [vmem:[#allocation5 + $0x23c] ss:$56 sps:$4 sm:$0xff]   ;;  %v8278_v14 = vld [vmem:[#allocation5 + $0x238] ss:$56 sps:$4 sm:$0xff]  }
  0x58   :  { %1633 = vmatpush1.bf16.msra.mxu1 %v8205_v27  ;;  %1591 = vmatprep.subr.bf16.mxu0 %v8206_v28  ;;  %v8283_v13 = vld [vmem:[#allocation5 + $0x93c] ss:$56 sps:$4 sm:$0xff]   ;;  %v8281_v15 = vld [vmem:[#allocation5 + $0x938] ss:$56 sps:$4 sm:$0xff]   ;;  %v8286_v16 = vld [vmem:[#allocation5 + $0x1cc] ss:$56 sps:$4 sm:$0xff]  }
  0x59   :  { %1634 = vmatprep.subr.bf16.mxu1 %v8208_v29  ;;  %v8289_v17 = vld [vmem:[#allocation5 + $0x8cc] ss:$56 sps:$4 sm:$0xff]   ;;  %v8284_v18 = vld [vmem:[#allocation5 + $0x1c8] ss:$56 sps:$4 sm:$0xff]   ;;  %v8292_v20 = vld [vmem:[#allocation5 + $0x15c] ss:$56 sps:$4 sm:$0xff]  }
  0x5a   :  { %v8287_v19 = vld [vmem:[#allocation5 + $0x8c8] ss:$56 sps:$4 sm:$0xff]   ;;  %v8295_v21 = vld [vmem:[#allocation5 + $0x85c] ss:$56 sps:$4 sm:$0xff]   ;;  %v8290_v22 = vld [vmem:[#allocation5 + $0x158] ss:$56 sps:$4 sm:$0xff]  }
  0x5b   :  { %1592 = vmatpush1.bf16.msra.mxu0 %v8210_v30  ;;  %v8293_v23 = vld [vmem:[#allocation5 + $0x858] ss:$56 sps:$4 sm:$0xff]   ;;  %v8298_v24 = vld [vmem:[#allocation5 + $0xec] ss:$56 sps:$4 sm:$0xff]   ;;  %v8296_v26 = vld [vmem:[#allocation5 + $0xe8] ss:$56 sps:$4 sm:$0xff]  }
  0x5c   :  { %1635 = vmatpush1.bf16.msra.mxu1 %v8211_v31  ;;  %1593 = vmatprep.subr.bf16.mxu0 %v8212_v32  ;;  %v8301_v25 = vld [vmem:[#allocation5 + $0x7ec] ss:$56 sps:$4 sm:$0xff]   ;;  %v8299_v27 = vld [vmem:[#allocation5 + $0x7e8] ss:$56 sps:$4 sm:$0xff]   ;;  %v8304_v28 = vld [vmem:[#allocation5 + $0x7c] ss:$56 sps:$4 sm:$0xff]  }
  0x5d   :  { %1636 = vmatprep.subr.bf16.mxu1 %v8214_v33  ;;  %v8307_v29 = vld [vmem:[#allocation5 + $0x77c] ss:$56 sps:$4 sm:$0xff]   ;;  %v8302_v30 = vld [vmem:[#allocation5 + $0x78] ss:$56 sps:$4 sm:$0xff]   ;;  %v8310_v32 = vld [vmem:[#allocation5 + $0xc] ss:$56 sps:$4 sm:$0xff]  }
  0x5e   :  { %v8305_v31 = vld [vmem:[#allocation5 + $0x778] ss:$56 sps:$4 sm:$0xff]   ;;  %v8313_v33 = vld [vmem:[#allocation5 + $0x70c] ss:$56 sps:$4 sm:$0xff]   ;;  %s9591_s19 = scalar_lea.vmem %s7150_s4, 1024 }
  0x5f   :  { %1594 = vmatpush2.bf16.msra.mxu0 %v8216_v34  ;;  %v8308_v34 = vld [vmem:[#allocation5 + $0x8] ss:$56 sps:$4 sm:$0xff]   ;;  %p9592_p11 = scmp.ne.s32.totalorder %s7150_s4, %s9591_s19  ;;  %p9597_p13 = scmp.lt.s32.totalorder %s9591_s19, %s9591_s19 }
  0x60   :  { %1637 = vmatpush2.bf16.msra.mxu1 %v8217_v35  ;;  %1595 = vmatprep.subr.bf16.mxu0 %v8218_v36  ;;  %v8311_v35 = vld [vmem:[#allocation5 + $0x708] ss:$56 sps:$4 sm:$0xff]   ;;  %v8316_v36 = vld [vmem:[#allocation5 + $0x69c] ss:$56 sps:$4 sm:$0xff]  }
  0x61   :  { %1638 = vmatprep.subr.bf16.mxu1 %v8220_v37  ;;  %v8319_v37 = vld [vmem:[#allocation5 + $0xd9c] ss:$56 sps:$4 sm:$0xff]   ;;  %p9598_p0 = por %p9597_p13, %p9596_p12 }
  0x63   :  { %1596 = vmatpush2.bf16.msra.mxu0 %v8222_v38  ;;  %v8314_v38 = vld [vmem:[#allocation5 + $0x698] ss:$56 sps:$4 sm:$0xff]   ;;  %p9599_p1 = pnand %p9598_p0, %p9592_p11 }
  0x64   :  { %1639 = vmatpush2.bf16.msra.mxu1 %v8223_v39  ;;  %1597 = vmatprep.subr.bf16.mxu0 %v8224_v40  ;;  %v8317_v39 = vld [vmem:[#allocation5 + $0xd98] ss:$56 sps:$4 sm:$0xff]   ;;  %v8322_v40 = vld [vmem:[#allocation5 + $0x62c] ss:$56 sps:$4 sm:$0xff]  }
  0x65   :  { %1640 = vmatprep.subr.bf16.mxu1 %v8226_v41  ;;  %v8325_v41 = vld [vmem:[#allocation5 + $0xd2c] ss:$56 sps:$4 sm:$0xff]  }
  0x67   :  { %1598 = vmatpush2.bf16.msra.mxu0 %v8228_v42  ;;  %v8320_v42 = vld [vmem:[#allocation5 + $0x628] ss:$56 sps:$4 sm:$0xff]  }
  0x68   :  { %1641 = vmatpush2.bf16.msra.mxu1 %v8229_v43  ;;  %1599 = vmatprep.subr.bf16.mxu0 %v8230_v44  ;;  %v8323_v43 = vld [vmem:[#allocation5 + $0xd28] ss:$56 sps:$4 sm:$0xff]   ;;  %v8328_v44 = vld [vmem:[#allocation5 + $0x5bc] ss:$56 sps:$4 sm:$0xff]  }
  0x69   :  { %1642 = vmatprep.subr.bf16.mxu1 %v8232_v45  ;;  %v8331_v45 = vld [vmem:[#allocation5 + $0xcbc] ss:$56 sps:$4 sm:$0xff]  }
  0x6b   :  { %1600 = vmatpush2.bf16.msra.mxu0 %v8234_v46  ;;  %v8326_v46 = vld [vmem:[#allocation5 + $0x5b8] ss:$56 sps:$4 sm:$0xff]  }
  0x6c   :  { %1643 = vmatpush2.bf16.msra.mxu1 %v8235_v47  ;;  %1601 = vmatprep.subr.bf16.mxu0 %v8236_v49  ;;  %v8329_v47 = vld [vmem:[#allocation5 + $0xcb8] ss:$56 sps:$4 sm:$0xff]   ;;  %v8334_v49 = vld [vmem:[#allocation5 + $0x54c] ss:$56 sps:$4 sm:$0xff]  }
  0x6d   :  { %1644 = vmatprep.subr.bf16.mxu1 %v8238_v51  ;;  %v8337_v51 = vld [vmem:[#allocation5 + $0xc4c] ss:$56 sps:$4 sm:$0xff]  }
  0x6f   :  { %1602 = vmatpush2.bf16.msra.mxu0 %v8240_v52  ;;  %v8332_v52 = vld [vmem:[#allocation5 + $0x548] ss:$56 sps:$4 sm:$0xff]  }
  0x70   :  { %1645 = vmatpush2.bf16.msra.mxu1 %v8241_v53  ;;  %1603 = vmatprep.subr.bf16.mxu0 %v8242_v54  ;;  %v8335_v53 = vld [vmem:[#allocation5 + $0xc48] ss:$56 sps:$4 sm:$0xff]   ;;  %v8340_v54 = vld [vmem:[#allocation5 + $0x4dc] ss:$56 sps:$4 sm:$0xff]  }
  0x71   :  { %1646 = vmatprep.subr.bf16.mxu1 %v8244_v55  ;;  %v8343_v55 = vld [vmem:[#allocation5 + $0xbdc] ss:$56 sps:$4 sm:$0xff]  }
  0x73   :  { %1604 = vmatpush2.bf16.msra.mxu0 %v8246_v56  ;;  %v8338_v56 = vld [vmem:[#allocation5 + $0x4d8] ss:$56 sps:$4 sm:$0xff]  }
  0x74   :  { %1647 = vmatpush2.bf16.msra.mxu1 %v8247_v57  ;;  %1605 = vmatprep.subr.bf16.mxu0 %v8248_v58  ;;  %v8341_v57 = vld [vmem:[#allocation5 + $0xbd8] ss:$56 sps:$4 sm:$0xff]   ;;  %v8346_v58 = vld [vmem:[#allocation5 + $0x46c] ss:$56 sps:$4 sm:$0xff]  }
  0x75   :  { %1648 = vmatprep.subr.bf16.mxu1 %v8250_v59  ;;  %v8349_v59 = vld [vmem:[#allocation5 + $0xb6c] ss:$56 sps:$4 sm:$0xff]  }
  0x77   :  { %1606 = vmatpush2.bf16.msra.mxu0 %v8252_v60  ;;  %v8344_v60 = vld [vmem:[#allocation5 + $0x468] ss:$56 sps:$4 sm:$0xff]  }
  0x78   :  { %1649 = vmatpush2.bf16.msra.mxu1 %v8253_v61  ;;  %1607 = vmatprep.subr.bf16.mxu0 %v8254_v62  ;;  %v8347_v61 = vld [vmem:[#allocation5 + $0xb68] ss:$56 sps:$4 sm:$0xff]   ;;  %v8352_v62 = vld [vmem:[#allocation5 + $0x3fc] ss:$56 sps:$4 sm:$0xff]  }
  0x79   :  { %1650 = vmatprep.subr.bf16.mxu1 %v8256_v63  ;;  %v8355_v63 = vld [vmem:[#allocation5 + $0xafc] ss:$56 sps:$4 sm:$0xff]  }
  0x7b   :  { %1608 = vmatpush2.bf16.msra.mxu0 %v8258_v0  ;;  %v8350_v0 = vld [vmem:[#allocation5 + $0x3f8] ss:$56 sps:$4 sm:$0xff]  }
  0x7c   :  { %1651 = vmatpush2.bf16.msra.mxu1 %v8259_v1  ;;  %1663 = vmatprep.subr.bf16.mxu0 %v8268_v2  ;;  %v8353_v1 = vld [vmem:[#allocation5 + $0xaf8] ss:$56 sps:$4 sm:$0xff]   ;;  %v8358_v2 = vld [vmem:[#allocation5 + $0x38c] ss:$56 sps:$4 sm:$0xff]  }
  0x7d   :  { %1706 = vmatprep.subr.bf16.mxu1 %v8271_v3  ;;  %v8361_v3 = vld [vmem:[#allocation5 + $0xa8c] ss:$56 sps:$4 sm:$0xff]  }
  0x7e   :  { %1610 = vmatmul.mubr.bf16.vlgmr.msra.gmra.mxu0 %v9683_v4 }
  0x7f   :  { %1653 = vmatmul.mubr.bf16.vlgmr.msra.gmra.mxu1 %v9685_v5  ;;  %1664 = vmatpush1.bf16.msra.mxu0 %v8266_v6  ;;  %v8356_v6 = vld [vmem:[#allocation5 + $0x388] ss:$56 sps:$4 sm:$0xff]  }
  0x80   :  { %1707 = vmatpush1.bf16.msra.mxu1 %v8269_v7  ;;  %1665 = vmatprep.subr.bf16.mxu0 %v8274_v8  ;;  %v8359_v7 = vld [vmem:[#allocation5 + $0xa88] ss:$56 sps:$4 sm:$0xff]   ;;  %v8364_v8 = vld [vmem:[#allocation5 + $0x324] ss:$56 sps:$4 sm:$0xff]  }
  0x81   :  { %1708 = vmatprep.subr.bf16.mxu1 %v8277_v9  ;;  %1695 = vmatprep.mubr.bf16.mxu0 %v9677_v48  ;;  %v8367_v9 = vld [vmem:[#allocation5 + $0xa24] ss:$56 sps:$4 sm:$0xff]  }
  0x82   :  { %1738 = vmatprep.mubr.bf16.mxu1 %v9679_v50 }
  0x83   :  { %1666 = vmatpush1.bf16.msra.mxu0 %v8272_v10  ;;  %v8362_v10 = vld [vmem:[#allocation5 + $0x320] ss:$56 sps:$4 sm:$0xff]  }
  0x84   :  { %1709 = vmatpush1.bf16.msra.mxu1 %v8275_v11  ;;  %1667 = vmatprep.subr.bf16.mxu0 %v8280_v12  ;;  %v8365_v11 = vld [vmem:[#allocation5 + $0xa20] ss:$56 sps:$4 sm:$0xff]   ;;  %v8370_v12 = vld [vmem:[#allocation5 + $0x2b4] ss:$56 sps:$4 sm:$0xff]  }
  0x85   :  { %1710 = vmatprep.subr.bf16.mxu1 %v8283_v13  ;;  %v8373_v13 = vld [vmem:[#allocation5 + $0x9b4] ss:$56 sps:$4 sm:$0xff]  }
  0x87   :  { %1668 = vmatpush1.bf16.msra.mxu0 %v8278_v14  ;;  %v8368_v14 = vld [vmem:[#allocation5 + $0x2b0] ss:$56 sps:$4 sm:$0xff]  }
  0x88   :  { %1711 = vmatpush1.bf16.msra.mxu1 %v8281_v15  ;;  %1669 = vmatprep.subr.bf16.mxu0 %v8286_v16  ;;  %v8371_v15 = vld [vmem:[#allocation5 + $0x9b0] ss:$56 sps:$4 sm:$0xff]   ;;  %v8376_v16 = vld [vmem:[#allocation5 + $0x244] ss:$56 sps:$4 sm:$0xff]  }
  0x89   :  { %1712 = vmatprep.subr.bf16.mxu1 %v8289_v17  ;;  %v8379_v17 = vld [vmem:[#allocation5 + $0x944] ss:$56 sps:$4 sm:$0xff]  }
  0x8b   :  { %1670 = vmatpush1.bf16.msra.mxu0 %v8284_v18  ;;  %v8374_v18 = vld [vmem:[#allocation5 + $0x240] ss:$56 sps:$4 sm:$0xff]  }
  0x8c   :  { %1713 = vmatpush1.bf16.msra.mxu1 %v8287_v19  ;;  %1671 = vmatprep.subr.bf16.mxu0 %v8292_v20  ;;  %v8377_v19 = vld [vmem:[#allocation5 + $0x940] ss:$56 sps:$4 sm:$0xff]   ;;  %v8382_v20 = vld [vmem:[#allocation5 + $0x1d4] ss:$56 sps:$4 sm:$0xff]  }
  0x8d   :  { %1714 = vmatprep.subr.bf16.mxu1 %v8295_v21  ;;  %v8385_v21 = vld [vmem:[#allocation5 + $0x8d4] ss:$56 sps:$4 sm:$0xff]  }
  0x8f   :  { %1672 = vmatpush1.bf16.msra.mxu0 %v8290_v22  ;;  %v8380_v22 = vld [vmem:[#allocation5 + $0x1d0] ss:$56 sps:$4 sm:$0xff]  }
  0x90   :  { %1715 = vmatpush1.bf16.msra.mxu1 %v8293_v23  ;;  %1673 = vmatprep.subr.bf16.mxu0 %v8298_v24  ;;  %v8383_v23 = vld [vmem:[#allocation5 + $0x8d0] ss:$56 sps:$4 sm:$0xff]   ;;  %v8388_v24 = vld [vmem:[#allocation5 + $0x164] ss:$56 sps:$4 sm:$0xff]  }
  0x91   :  { %1716 = vmatprep.subr.bf16.mxu1 %v8301_v25  ;;  %v8391_v25 = vld [vmem:[#allocation5 + $0x864] ss:$56 sps:$4 sm:$0xff]  }
  0x93   :  { %1674 = vmatpush1.bf16.msra.mxu0 %v8296_v26  ;;  %v8386_v26 = vld [vmem:[#allocation5 + $0x160] ss:$56 sps:$4 sm:$0xff]  }
  0x94   :  { %1717 = vmatpush1.bf16.msra.mxu1 %v8299_v27  ;;  %1675 = vmatprep.subr.bf16.mxu0 %v8304_v28  ;;  %v8389_v27 = vld [vmem:[#allocation5 + $0x860] ss:$56 sps:$4 sm:$0xff]   ;;  %v8392_v28 = vld [vmem:[#allocation5 + $0xf0] ss:$56 sps:$4 sm:$0xff]  }
  0x95   :  { %1718 = vmatprep.subr.bf16.mxu1 %v8307_v29  ;;  %v8395_v29 = vld [vmem:[#allocation5 + $0x7f0] ss:$56 sps:$4 sm:$0xff]  }
  0x97   :  { %1676 = vmatpush1.bf16.msra.mxu0 %v8302_v30  ;;  %v8400_v30 = vld [vmem:[#allocation5 + $0x84] ss:$56 sps:$4 sm:$0xff]  }
  0x98   :  { %1719 = vmatpush1.bf16.msra.mxu1 %v8305_v31  ;;  %1677 = vmatprep.subr.bf16.mxu0 %v8310_v32  ;;  %v8403_v31 = vld [vmem:[#allocation5 + $0x784] ss:$56 sps:$4 sm:$0xff]   ;;  %v8398_v32 = vld [vmem:[#allocation5 + $0x80] ss:$56 sps:$4 sm:$0xff]  }
  0x99   :  { %1720 = vmatprep.subr.bf16.mxu1 %v8313_v33  ;;  %v8401_v33 = vld [vmem:[#allocation5 + $0x780] ss:$56 sps:$4 sm:$0xff]  }
  0x9b   :  { %1678 = vmatpush1.bf16.msra.mxu0 %v8308_v34  ;;  %v8406_v34 = vld [vmem:[#allocation5 + $0x14] ss:$56 sps:$4 sm:$0xff]  }
  0x9c   :  { %1721 = vmatpush1.bf16.msra.mxu1 %v8311_v35  ;;  %1679 = vmatprep.subr.bf16.mxu0 %v8316_v36  ;;  %v8409_v35 = vld [vmem:[#allocation5 + $0x714] ss:$56 sps:$4 sm:$0xff]   ;;  %v8404_v36 = vld [vmem:[#allocation5 + $0x10] ss:$56 sps:$4 sm:$0xff]  }
  0x9d   :  { %1722 = vmatprep.subr.bf16.mxu1 %v8319_v37  ;;  %v8407_v37 = vld [vmem:[#allocation5 + $0x710] ss:$56 sps:$4 sm:$0xff]  }
  0x9f   :  { %1680 = vmatpush2.bf16.msra.mxu0 %v8314_v38  ;;  %v8412_v38 = vld [vmem:[#allocation5 + $0x6a4] ss:$56 sps:$4 sm:$0xff]  }
  0xa0   :  { %1723 = vmatpush2.bf16.msra.mxu1 %v8317_v39  ;;  %1681 = vmatprep.subr.bf16.mxu0 %v8322_v40  ;;  %v8415_v39 = vld [vmem:[#allocation5 + $0xda4] ss:$56 sps:$4 sm:$0xff]   ;;  %v8410_v40 = vld [vmem:[#allocation5 + $0x6a0] ss:$56 sps:$4 sm:$0xff]  }
  0xa1   :  { %1724 = vmatprep.subr.bf16.mxu1 %v8325_v41  ;;  %v8413_v41 = vld [vmem:[#allocation5 + $0xda0] ss:$56 sps:$4 sm:$0xff]  }
  0xa3   :  { %1682 = vmatpush2.bf16.msra.mxu0 %v8320_v42  ;;  %v8418_v42 = vld [vmem:[#allocation5 + $0x634] ss:$56 sps:$4 sm:$0xff]  }
  0xa4   :  { %1725 = vmatpush2.bf16.msra.mxu1 %v8323_v43  ;;  %1683 = vmatprep.subr.bf16.mxu0 %v8328_v44  ;;  %v8421_v43 = vld [vmem:[#allocation5 + $0xd34] ss:$56 sps:$4 sm:$0xff]   ;;  %v8416_v44 = vld [vmem:[#allocation5 + $0x630] ss:$56 sps:$4 sm:$0xff]  }
  0xa5   :  { %1726 = vmatprep.subr.bf16.mxu1 %v8331_v45  ;;  %v8419_v45 = vld [vmem:[#allocation5 + $0xd30] ss:$56 sps:$4 sm:$0xff]  }
  0xa7   :  { %1684 = vmatpush2.bf16.msra.mxu0 %v8326_v46  ;;  %v8424_v46 = vld [vmem:[#allocation5 + $0x5c4] ss:$56 sps:$4 sm:$0xff]  }
  0xa8   :  { %1727 = vmatpush2.bf16.msra.mxu1 %v8329_v47  ;;  %1685 = vmatprep.subr.bf16.mxu0 %v8334_v49  ;;  %v8427_v47 = vld [vmem:[#allocation5 + $0xcc4] ss:$56 sps:$4 sm:$0xff]   ;;  %v8422_v49 = vld [vmem:[#allocation5 + $0x5c0] ss:$56 sps:$4 sm:$0xff]  }
  0xa9   :  { %1728 = vmatprep.subr.bf16.mxu1 %v8337_v51  ;;  %v8425_v51 = vld [vmem:[#allocation5 + $0xcc0] ss:$56 sps:$4 sm:$0xff]  }
  0xab   :  { %1686 = vmatpush2.bf16.msra.mxu0 %v8332_v52  ;;  %v8430_v52 = vld [vmem:[#allocation5 + $0x554] ss:$56 sps:$4 sm:$0xff]  }
  0xac   :  { %1729 = vmatpush2.bf16.msra.mxu1 %v8335_v53  ;;  %1687 = vmatprep.subr.bf16.mxu0 %v8340_v54  ;;  %v8433_v53 = vld [vmem:[#allocation5 + $0xc54] ss:$56 sps:$4 sm:$0xff]   ;;  %v8428_v54 = vld [vmem:[#allocation5 + $0x550] ss:$56 sps:$4 sm:$0xff]  }
  0xad   :  { %1730 = vmatprep.subr.bf16.mxu1 %v8343_v55  ;;  %v8431_v55 = vld [vmem:[#allocation5 + $0xc50] ss:$56 sps:$4 sm:$0xff]  }
  0xaf   :  { %1688 = vmatpush2.bf16.msra.mxu0 %v8338_v56  ;;  %v8436_v56 = vld [vmem:[#allocation5 + $0x4e4] ss:$56 sps:$4 sm:$0xff]  }
  0xb0   :  { %1731 = vmatpush2.bf16.msra.mxu1 %v8341_v57  ;;  %1689 = vmatprep.subr.bf16.mxu0 %v8346_v58  ;;  %v8439_v57 = vld [vmem:[#allocation5 + $0xbe4] ss:$56 sps:$4 sm:$0xff]   ;;  %v8434_v58 = vld [vmem:[#allocation5 + $0x4e0] ss:$56 sps:$4 sm:$0xff]  }
  0xb1   :  { %1732 = vmatprep.subr.bf16.mxu1 %v8349_v59  ;;  %v8437_v59 = vld [vmem:[#allocation5 + $0xbe0] ss:$56 sps:$4 sm:$0xff]  }
  0xb3   :  { %1690 = vmatpush2.bf16.msra.mxu0 %v8344_v60  ;;  %v8442_v60 = vld [vmem:[#allocation5 + $0x474] ss:$56 sps:$4 sm:$0xff]  }
  0xb4   :  { %1733 = vmatpush2.bf16.msra.mxu1 %v8347_v61  ;;  %1691 = vmatprep.subr.bf16.mxu0 %v8352_v62  ;;  %v8445_v61 = vld [vmem:[#allocation5 + $0xb74] ss:$56 sps:$4 sm:$0xff]   ;;  %v8440_v62 = vld [vmem:[#allocation5 + $0x470] ss:$56 sps:$4 sm:$0xff]  }
  0xb5   :  { %1734 = vmatprep.subr.bf16.mxu1 %v8355_v63  ;;  %v8443_v63 = vld [vmem:[#allocation5 + $0xb70] ss:$56 sps:$4 sm:$0xff]  }
  0xb7   :  { %1692 = vmatpush2.bf16.msra.mxu0 %v8350_v0  ;;  %v8448_v0 = vld [vmem:[#allocation5 + $0x404] ss:$56 sps:$4 sm:$0xff]  }
  0xb8   :  { %1735 = vmatpush2.bf16.msra.mxu1 %v8353_v1  ;;  %1693 = vmatprep.subr.bf16.mxu0 %v8358_v2  ;;  %v8451_v1 = vld [vmem:[#allocation5 + $0xb04] ss:$56 sps:$4 sm:$0xff]   ;;  %v8446_v2 = vld [vmem:[#allocation5 + $0x400] ss:$56 sps:$4 sm:$0xff]  }
  0xb9   :  { %1736 = vmatprep.subr.bf16.mxu1 %v8361_v3  ;;  %v8449_v3 = vld [vmem:[#allocation5 + $0xb00] ss:$56 sps:$4 sm:$0xff]  }
  0xbb   :  { %1694 = vmatpush2.bf16.msra.mxu0 %v8356_v6  ;;  %v8454_v6 = vld [vmem:[#allocation5 + $0x394] ss:$56 sps:$4 sm:$0xff]  }
  0xbc   :  { %1737 = vmatpush2.bf16.msra.mxu1 %v8359_v7  ;;  %1749 = vmatprep.subr.bf16.mxu0 %v8364_v8  ;;  %v8457_v7 = vld [vmem:[#allocation5 + $0xa94] ss:$56 sps:$4 sm:$0xff]   ;;  %v8452_v8 = vld [vmem:[#allocation5 + $0x390] ss:$56 sps:$4 sm:$0xff]  }
  0xbd   :  { %1792 = vmatprep.subr.bf16.mxu1 %v8367_v9  ;;  %v8455_v9 = vld [vmem:[#allocation5 + $0xa90] ss:$56 sps:$4 sm:$0xff]  }
  0xbe   :  { %1696 = vmatmul.mubr.bf16.vlgmr.msra.gmra.mxu0 %v9683_v4 }
  0xbf   :  { %1739 = vmatmul.mubr.bf16.vlgmr.msra.gmra.mxu1 %v9685_v5  ;;  %1750 = vmatpush1.bf16.msra.mxu0 %v8362_v10  ;;  %v8458_v10 = vld [vmem:[#allocation5 + $0x6a8] ss:$56 sps:$4 sm:$0xff]  }
  0xc0   :  { %1793 = vmatpush1.bf16.msra.mxu1 %v8365_v11  ;;  %1751 = vmatprep.subr.bf16.mxu0 %v8370_v12  ;;  %v8459_v11 = vld [vmem:[#allocation5 + $0xda8] ss:$56 sps:$4 sm:$0xff]  }
  0xc1   :  { %1794 = vmatprep.subr.bf16.mxu1 %v8373_v13  ;;  %1781 = vmatprep.mubr.bf16.mxu0 %v9677_v48  ;;  %v8394_v48 = vld [vmem:[#allocation5 + $0xf4] ss:$56 sps:$4 sm:$0xff]   ;;  %v8460_v12 = vld [vmem:[#allocation5 + $0x328] ss:$56 sps:$4 sm:$0xff]  }
  0xc2   :  { %1824 = vmatprep.mubr.bf16.mxu1 %v9679_v50  ;;  %v8397_v50 = vld [vmem:[#allocation5 + $0x7f4] ss:$56 sps:$4 sm:$0xff]   ;;  %v8461_v13 = vld [vmem:[#allocation5 + $0xa28] ss:$56 sps:$4 sm:$0xff]  }
  0xc3   :  { %1752 = vmatpush1.bf16.msra.mxu0 %v8368_v14  ;;  %v8462_v14 = vld [vmem:[#allocation5 + $0x638] ss:$56 sps:$4 sm:$0xff]  }
  0xc4   :  { %1795 = vmatpush1.bf16.msra.mxu1 %v8371_v15  ;;  %1753 = vmatprep.subr.bf16.mxu0 %v8376_v16  ;;  %v8463_v15 = vld [vmem:[#allocation5 + $0xd38] ss:$56 sps:$4 sm:$0xff]  }
  0xc5   :  { %1796 = vmatprep.subr.bf16.mxu1 %v8379_v17  ;;  %v8464_v16 = vld [vmem:[#allocation5 + $0x2b8] ss:$56 sps:$4 sm:$0xff]  }
  0xc6   :  { %v8465_v17 = vld [vmem:[#allocation5 + $0x9b8] ss:$56 sps:$4 sm:$0xff]  }
  0xc7   :  { %1754 = vmatpush1.bf16.msra.mxu0 %v8374_v18  ;;  %v8466_v18 = vld [vmem:[#allocation5 + $0x5c8] ss:$56 sps:$4 sm:$0xff]  }
  0xc8   :  { %1797 = vmatpush1.bf16.msra.mxu1 %v8377_v19  ;;  %1755 = vmatprep.subr.bf16.mxu0 %v8382_v20  ;;  %v8467_v19 = vld [vmem:[#allocation5 + $0xcc8] ss:$56 sps:$4 sm:$0xff]   ;;  %v9482_v20 = vld [vmem:[#allocation2 + $0x4] ss:$16 sps:$4 sm:$0xff]  }
  0xc9   :  { %1798 = vmatprep.subr.bf16.mxu1 %v8385_v21  ;;  %v9483_v21 = vld [vmem:[#allocation2 + $0xc] ss:$16 sps:$4 sm:$0xff]  }
  0xcb   :  { %1756 = vmatpush1.bf16.msra.mxu0 %v8380_v22  ;;  %v8468_v22 = vld [vmem:[#allocation5 + $0x248] ss:$56 sps:$4 sm:$0xff]  }
  0xcc   :  { %1799 = vmatpush1.bf16.msra.mxu1 %v8383_v23  ;;  %1757 = vmatprep.subr.bf16.mxu0 %v8388_v24  ;;  %v8469_v23 = vld [vmem:[#allocation5 + $0x948] ss:$56 sps:$4 sm:$0xff]   ;;  %v8472_v24 = vld [vmem:[#allocation5 + $0x1d8] ss:$56 sps:$4 sm:$0xff]  }
  0xcd   :  { %1800 = vmatprep.subr.bf16.mxu1 %v8391_v25  ;;  %v8473_v25 = vld [vmem:[#allocation5 + $0x8d8] ss:$56 sps:$4 sm:$0xff]  }
  0xcf   :  { %1758 = vmatpush1.bf16.msra.mxu0 %v8386_v26  ;;  %v8474_v26 = vld [vmem:[#allocation5 + $0x4e8] ss:$56 sps:$4 sm:$0xff]  }
  0xd0   :  { %1801 = vmatpush1.bf16.msra.mxu1 %v8389_v27  ;;  %1759 = vmatprep.subr.bf16.mxu0 %v8394_v48  ;;  %v8475_v27 = vld [vmem:[#allocation5 + $0xbe8] ss:$56 sps:$4 sm:$0xff]  }
  0xd1   :  { %1802 = vmatprep.subr.bf16.mxu1 %v8397_v50  ;;  %v8476_v48 = vld [vmem:[#allocation5 + $0x168] ss:$56 sps:$4 sm:$0xff]  }
  0xd2   :  { %v8477_v50 = vld [vmem:[#allocation5 + $0x868] ss:$56 sps:$4 sm:$0xff]  }
  0xd3   :  { %1760 = vmatpush1.bf16.msra.mxu0 %v8392_v28  ;;  %v8478_v28 = vld [vmem:[#allocation5 + $0x478] ss:$56 sps:$4 sm:$0xff]  }
  0xd4   :  { %1803 = vmatpush1.bf16.msra.mxu1 %v8395_v29  ;;  %1761 = vmatprep.subr.bf16.mxu0 %v8400_v30  ;;  %v8479_v29 = vld [vmem:[#allocation5 + $0xb78] ss:$56 sps:$4 sm:$0xff]  }
  0xd5   :  { %1804 = vmatprep.subr.bf16.mxu1 %v8403_v31  ;;  %v8480_v30 = vld [vmem:[#allocation5 + $0xf8] ss:$56 sps:$4 sm:$0xff]  }
  0xd6   :  { %v8481_v31 = vld [vmem:[#allocation5 + $0x7f8] ss:$56 sps:$4 sm:$0xff]  }
  0xd7   :  { %1762 = vmatpush1.bf16.msra.mxu0 %v8398_v32  ;;  %v8482_v32 = vld [vmem:[#allocation5 + $0x408] ss:$56 sps:$4 sm:$0xff]  }
  0xd8   :  { %1805 = vmatpush1.bf16.msra.mxu1 %v8401_v33  ;;  %1763 = vmatprep.subr.bf16.mxu0 %v8406_v34  ;;  %v8483_v33 = vld [vmem:[#allocation5 + $0xb08] ss:$56 sps:$4 sm:$0xff]  }
  0xd9   :  { %1806 = vmatprep.subr.bf16.mxu1 %v8409_v35  ;;  %v8484_v34 = vld [vmem:[#allocation5 + $0x88] ss:$56 sps:$4 sm:$0xff]  }
  0xda   :  { %v8485_v35 = vld [vmem:[#allocation5 + $0x788] ss:$56 sps:$4 sm:$0xff]  }
  0xdb   :  { %1764 = vmatpush1.bf16.msra.mxu0 %v8404_v36  ;;  %v8486_v36 = vld [vmem:[#allocation5 + $0x398] ss:$56 sps:$4 sm:$0xff]  }
  0xdc   :  { %1807 = vmatpush1.bf16.msra.mxu1 %v8407_v37  ;;  %1765 = vmatprep.subr.bf16.mxu0 %v8412_v38  ;;  %v8487_v37 = vld [vmem:[#allocation5 + $0xa98] ss:$56 sps:$4 sm:$0xff]  }
  0xdd   :  { %1808 = vmatprep.subr.bf16.mxu1 %v8415_v39  ;;  %v8488_v38 = vld [vmem:[#allocation5 + $0x18] ss:$56 sps:$4 sm:$0xff]  }
  0xde   :  { %v8489_v39 = vld [vmem:[#allocation5 + $0x718] ss:$56 sps:$4 sm:$0xff]  }
  0xdf   :  { %1766 = vmatpush2.bf16.msra.mxu0 %v8410_v40  ;;  %v8492_v40 = vld [vmem:[#allocation8 + $0xe4] ss:$16 sps:$4 sm:$0xff]  }
  0xe0   :  { %1809 = vmatpush2.bf16.msra.mxu1 %v8413_v41  ;;  %1767 = vmatprep.subr.bf16.mxu0 %v8418_v42  ;;  %v8531_v41 = vld [vmem:[#allocation8 + $0x2e4] ss:$16 sps:$4 sm:$0xff]   ;;  %v8490_v42 = vld [vmem:[#allocation8 + $0xe0] ss:$16 sps:$4 sm:$0xff]  }
  0xe1   :  { %1810 = vmatprep.subr.bf16.mxu1 %v8421_v43  ;;  %v8529_v43 = vld [vmem:[#allocation8 + $0x2e0] ss:$16 sps:$4 sm:$0xff]  }
  0xe3   :  { %1768 = vmatpush2.bf16.msra.mxu0 %v8416_v44  ;;  %v8495_v44 = vld [vmem:[#allocation8 + $0xc4] ss:$16 sps:$4 sm:$0xff]  }
  0xe4   :  { %1811 = vmatpush2.bf16.msra.mxu1 %v8419_v45  ;;  %1769 = vmatprep.subr.bf16.mxu0 %v8424_v46  ;;  %v8537_v45 = vld [vmem:[#allocation8 + $0x2c4] ss:$16 sps:$4 sm:$0xff]   ;;  %v8493_v46 = vld [vmem:[#allocation8 + $0xc0] ss:$16 sps:$4 sm:$0xff]  }
  0xe5   :  { %1812 = vmatprep.subr.bf16.mxu1 %v8427_v47  ;;  %v8535_v47 = vld [vmem:[#allocation8 + $0x2c0] ss:$16 sps:$4 sm:$0xff]  }
  0xe7   :  { %1770 = vmatpush2.bf16.msra.mxu0 %v8422_v49  ;;  %v9484_v49 = vld [vmem:[#allocation2] ss:$16 sps:$4 sm:$0xff]  }
  0xe8   :  { %1813 = vmatpush2.bf16.msra.mxu1 %v8425_v51  ;;  %1771 = vmatprep.subr.bf16.mxu0 %v8430_v52  ;;  %v9485_v51 = vld [vmem:[#allocation2 + $0x8] ss:$16 sps:$4 sm:$0xff]   ;;  %v8498_v52 = vld [vmem:[#allocation8 + $0xa4] ss:$16 sps:$4 sm:$0xff]  }
  0xe9   :  { %1814 = vmatprep.subr.bf16.mxu1 %v8433_v53  ;;  %v8543_v53 = vld [vmem:[#allocation8 + $0x2a4] ss:$16 sps:$4 sm:$0xff]  }
  0xeb   :  { %1772 = vmatpush2.bf16.msra.mxu0 %v8428_v54  ;;  %v8496_v54 = vld [vmem:[#allocation8 + $0xa0] ss:$16 sps:$4 sm:$0xff]  }
  0xec   :  { %1815 = vmatpush2.bf16.msra.mxu1 %v8431_v55  ;;  %1773 = vmatprep.subr.bf16.mxu0 %v8436_v56  ;;  %v8541_v55 = vld [vmem:[#allocation8 + $0x2a0] ss:$16 sps:$4 sm:$0xff]   ;;  %v8501_v56 = vld [vmem:[#allocation8 + $0x84] ss:$16 sps:$4 sm:$0xff]  }
  0xed   :  { %1816 = vmatprep.subr.bf16.mxu1 %v8439_v57  ;;  %v8549_v57 = vld [vmem:[#allocation8 + $0x284] ss:$16 sps:$4 sm:$0xff]  }
  0xef   :  { %1774 = vmatpush2.bf16.msra.mxu0 %v8434_v58  ;;  %v8499_v58 = vld [vmem:[#allocation8 + $0x80] ss:$16 sps:$4 sm:$0xff]  }
  0xf0   :  { %1817 = vmatpush2.bf16.msra.mxu1 %v8437_v59  ;;  %1775 = vmatprep.subr.bf16.mxu0 %v8442_v60  ;;  %v8547_v59 = vld [vmem:[#allocation8 + $0x280] ss:$16 sps:$4 sm:$0xff]   ;;  %v8504_v60 = vld [vmem:[#allocation8 + $0x64] ss:$16 sps:$4 sm:$0xff]  }
  0xf1   :  { %1818 = vmatprep.subr.bf16.mxu1 %v8445_v61  ;;  %v8552_v61 = vld [vmem:[#allocation8 + $0x264] ss:$16 sps:$4 sm:$0xff]  }
  0xf3   :  { %1776 = vmatpush2.bf16.msra.mxu0 %v8440_v62  ;;  %v8502_v62 = vld [vmem:[#allocation8 + $0x60] ss:$16 sps:$4 sm:$0xff]  }
  0xf4   :  { %1819 = vmatpush2.bf16.msra.mxu1 %v8443_v63  ;;  %1777 = vmatprep.subr.bf16.mxu0 %v8448_v0  ;;  %v8550_v63 = vld [vmem:[#allocation8 + $0x260] ss:$16 sps:$4 sm:$0xff]   ;;  %v8507_v0 = vld [vmem:[#allocation8 + $0x44] ss:$16 sps:$4 sm:$0xff]  }
  0xf5   :  { %1820 = vmatprep.subr.bf16.mxu1 %v8451_v1  ;;  %v8555_v1 = vld [vmem:[#allocation8 + $0x244] ss:$16 sps:$4 sm:$0xff]  }
  0xf7   :  { %1778 = vmatpush2.bf16.msra.mxu0 %v8446_v2  ;;  %v8505_v2 = vld [vmem:[#allocation8 + $0x40] ss:$16 sps:$4 sm:$0xff]  }
  0xf8   :  { %1821 = vmatpush2.bf16.msra.mxu1 %v8449_v3  ;;  %1779 = vmatprep.subr.bf16.mxu0 %v8454_v6  ;;  %v8553_v3 = vld [vmem:[#allocation8 + $0x240] ss:$16 sps:$4 sm:$0xff]   ;;  %v8510_v6 = vld [vmem:[#allocation8 + $0x24] ss:$16 sps:$4 sm:$0xff]  }
  0xf9   :  { %1822 = vmatprep.subr.bf16.mxu1 %v8457_v7  ;;  %v8558_v7 = vld [vmem:[#allocation8 + $0x224] ss:$16 sps:$4 sm:$0xff]  }
  0xfb   :  { %1780 = vmatpush2.bf16.msra.mxu0 %v8452_v8  ;;  %v8508_v8 = vld [vmem:[#allocation8 + $0x20] ss:$16 sps:$4 sm:$0xff]  }
  0xfc   :  { %1823 = vmatpush2.bf16.msra.mxu1 %v8455_v9  ;;  %8063 = vmatprep.subr.bf16.mxu0 %v8458_v10  ;;  %v92_v9 = vlaneseq  ;;  %v8556_v10 = vld [vmem:[#allocation8 + $0x220] ss:$16 sps:$4 sm:$0xff]  }
  0xfd   :  { %8085 = vmatprep.subr.bf16.mxu1 %v8459_v11  ;;  %v8513_v11 = vld [vmem:[#allocation8 + $0x4] ss:$16 sps:$4 sm:$0xff]  }
  0xfe   :  { %1782 = vmatmul.mubr.bf16.vlgmr.msra.gmra.mxu0 %v9683_v4  ;;  %v8470_v4 = vld [vmem:[#allocation5 + $0x558] ss:$56 sps:$4 sm:$0xff]  }
  0xff   :  { %1825 = vmatmul.mubr.bf16.vlgmr.msra.gmra.mxu1 %v9685_v5  ;;  %8064 = vmatpush3.bf16.msra.mxu0 %v8460_v12  ;;  %v8471_v5 = vld [vmem:[#allocation5 + $0xc58] ss:$56 sps:$4 sm:$0xff]  }
 0x100   :  { %8086 = vmatpush3.bf16.msra.mxu1 %v8461_v13  ;;  %8065 = vmatprep.subr.bf16.mxu0 %v8462_v14  ;;  %v8561_v12 = vld [vmem:[#allocation8 + $0x204] ss:$16 sps:$4 sm:$0xff]   ;;  %v8511_v13 = vld [vmem:[#allocation8] ss:$16 sps:$4 sm:$0xff]   ;;  %v9697_v14 = vshrl.u32 %v92_v9, 7 }
 0x101   :  { %8087 = vmatprep.subr.bf16.mxu1 %v8463_v15  ;;  %1867 = vmatprep.mubr.bf16.mxu0 %v9482_v20  ;;  %v8559_v15 = vld [vmem:[#allocation8 + $0x200] ss:$16 sps:$4 sm:$0xff]   ;;  %v8588_v9 = vld [vmem:[#allocation8 + $0x4e4] ss:$16 sps:$4 sm:$0xff]  }
 0x102   :  { %1908 = vmatprep.mubr.bf16.mxu1 %v9483_v21  ;;  %v9702_v20 = vsub.s32 1, %v9697_v14  ;;  %v8562_v21 = vld [vmem:[#allocation8 + $0x3e0] ss:$16 sps:$4 sm:$0xff]  }
 0x103   :  { %8066 = vmatpush3.bf16.msra.mxu0 %v8464_v16  ;;  %v8516_v16 = vld [vmem:[#allocation8 + $0x1e4] ss:$16 sps:$4 sm:$0xff]  }
 0x104   :  { %8088 = vmatpush3.bf16.msra.mxu1 %v8465_v17  ;;  %8067 = vmatprep.subr.bf16.mxu0 %v8466_v18  ;;  %v8564_v17 = vld [vmem:[#allocation8 + $0x3e4] ss:$16 sps:$4 sm:$0xff]  }
 0x105   :  { %8089 = vmatprep.subr.bf16.mxu1 %v8467_v19  ;;  %v9699_v18 = vld [vmem:[#allocation7] sm:$0xff] }
 0x106   :  { %v8514_v19 = vld [vmem:[#allocation8 + $0x1e0] ss:$16 sps:$4 sm:$0xff]  }
 0x107   :  { %8068 = vmatpush3.bf16.msra.mxu0 %v8468_v22  ;;  %v8519_v22 = vld [vmem:[#allocation8 + $0x1c4] ss:$16 sps:$4 sm:$0xff]  }
 0x108   :  { %8090 = vmatpush3.bf16.msra.mxu1 %v8469_v23  ;;  %8069 = vmatprep.subr.bf16.mxu0 %v8470_v4  ;;  %v8567_v23 = vld [vmem:[#allocation8 + $0x3c4] ss:$16 sps:$4 sm:$0xff]   ;;  %v377_v4 = vrot.slane %v9699_v18, %v9702_v20 }
 0x109   :  { %8091 = vmatprep.subr.bf16.mxu1 %v8471_v5  ;;  %v8517_v5 = vld [vmem:[#allocation8 + $0x1c0] ss:$16 sps:$4 sm:$0xff]  }
 0x10b   :  { %8070 = vmatpush3.bf16.msra.mxu0 %v8472_v24 }
 0x10c   :  { %8092 = vmatpush3.bf16.msra.mxu1 %v8473_v25  ;;  %8071 = vmatprep.subr.bf16.mxu0 %v8474_v26  ;;  %v8522_v26 = vld [vmem:[#allocation8 + $0x1a4] ss:$16 sps:$4 sm:$0xff]  }
 0x10d   :  { %8093 = vmatprep.subr.bf16.mxu1 %v8475_v27  ;;  %v8565_v27 = vld [vmem:[#allocation8 + $0x3c0] ss:$16 sps:$4 sm:$0xff]  }
 0x10f   :  { %8072 = vmatpush3.bf16.msra.mxu0 %v8476_v48 }
 0x110   :  { %8094 = vmatpush3.bf16.msra.mxu1 %v8477_v50  ;;  %8073 = vmatprep.subr.bf16.mxu0 %v8478_v28  ;;  %v8570_v28 = vld [vmem:[#allocation8 + $0x3a4] ss:$16 sps:$4 sm:$0xff]  }
 0x111   :  { %8095 = vmatprep.subr.bf16.mxu1 %v8479_v29 }
 0x113   :  { %8074 = vmatpush3.bf16.msra.mxu0 %v8480_v30  ;;  %v8520_v30 = vld [vmem:[#allocation8 + $0x1a0] ss:$16 sps:$4 sm:$0xff]  }
 0x114   :  { %8096 = vmatpush3.bf16.msra.mxu1 %v8481_v31  ;;  %8075 = vmatprep.subr.bf16.mxu0 %v8482_v32 }
 0x115   :  { %8097 = vmatprep.subr.bf16.mxu1 %v8483_v33  ;;  %v8525_v33 = vld [vmem:[#allocation8 + $0x184] ss:$16 sps:$4 sm:$0xff]  }
 0x117   :  { %8076 = vmatpush3.bf16.msra.mxu0 %v8484_v34  ;;  %v8568_v34 = vld [vmem:[#allocation8 + $0x3a0] ss:$16 sps:$4 sm:$0xff]  }
 0x118   :  { %8098 = vmatpush3.bf16.msra.mxu1 %v8485_v35  ;;  %8077 = vmatprep.subr.bf16.mxu0 %v8486_v36  ;;  %v8573_v36 = vld [vmem:[#allocation8 + $0x384] ss:$16 sps:$4 sm:$0xff]  }
 0x119   :  { %8099 = vmatprep.subr.bf16.mxu1 %v8487_v37 }
 0x11b   :  { %8078 = vmatpush3.bf16.msra.mxu0 %v8488_v38 }
 0x11c   :  { %8100 = vmatpush3.bf16.msra.mxu1 %v8489_v39  ;;  %3282 = vmatprep.subr.bf16.mxu0 %v8492_v40  ;;  %v8523_v39 = vld [vmem:[#allocation8 + $0x180] ss:$16 sps:$4 sm:$0xff]  }
 0x11d   :  { %3325 = vmatprep.subr.bf16.mxu1 %v8531_v41  ;;  %v8528_v41 = vld [vmem:[#allocation8 + $0x164] ss:$16 sps:$4 sm:$0xff]  }
 0x11e   :  { %1868 = vmatmul.mubr.bf16.vlgmr.msra.gmra.mxu0 %v9484_v49  ;;  %v9709_v49 = vsub.s32 0, %v9697_v14 }
 0x11f   :  { %1909 = vmatmul.mubr.bf16.vlgmr.msra.gmra.mxu1 %v9485_v51  ;;  %3283 = vmatpush1.bf16.msra.mxu0 %v8490_v42 }
 0x120   :  { %3326 = vmatpush1.bf16.msra.mxu1 %v8529_v43  ;;  %3284 = vmatprep.subr.bf16.mxu0 %v8495_v44  ;;  %v8571_v43 = vld [vmem:[#allocation8 + $0x380] ss:$16 sps:$4 sm:$0xff]   ;;  %v8576_v44 = vld [vmem:[#allocation8 + $0x364] ss:$16 sps:$4 sm:$0xff]  }
 0x121   :  { %3327 = vmatprep.subr.bf16.mxu1 %v8537_v45 }
 0x123   :  { %3285 = vmatpush1.bf16.msra.mxu0 %v8493_v46 }
 0x124   :  { %3328 = vmatpush1.bf16.msra.mxu1 %v8535_v47  ;;  %3286 = vmatprep.subr.bf16.mxu0 %v8498_v52  ;;  %v8526_v47 = vld [vmem:[#allocation8 + $0x160] ss:$16 sps:$4 sm:$0xff]  }
 0x125   :  { %3329 = vmatprep.subr.bf16.mxu1 %v8543_v53  ;;  %v8574_v52 = vld [vmem:[#allocation8 + $0x360] ss:$16 sps:$4 sm:$0xff]   ;;  %v8534_v53 = vld [vmem:[#allocation8 + $0x144] ss:$16 sps:$4 sm:$0xff]  }
 0x127   :  { %3287 = vmatpush1.bf16.msra.mxu0 %v8496_v54  ;;  %v8579_v54 = vld [vmem:[#allocation8 + $0x344] ss:$16 sps:$4 sm:$0xff]  }
 0x128   :  { %3330 = vmatpush1.bf16.msra.mxu1 %v8541_v55  ;;  %3288 = vmatprep.subr.bf16.mxu0 %v8501_v56  ;;  %v373_v55 = vrot.slane %v9699_v18, %v9709_v49  ;;  %v8532_v56 = vld [vmem:[#allocation8 + $0x140] ss:$16 sps:$4 sm:$0xff]  }
 0x129   :  { %3331 = vmatprep.subr.bf16.mxu1 %v8549_v57  ;;  %v8577_v57 = vld [vmem:[#allocation8 + $0x340] ss:$16 sps:$4 sm:$0xff]  }
 0x12b   :  { %3289 = vmatpush1.bf16.msra.mxu0 %v8499_v58 }
 0x12c   :  { %3332 = vmatpush1.bf16.msra.mxu1 %v8547_v59  ;;  %3290 = vmatprep.subr.bf16.mxu0 %v8504_v60  ;;  %v8540_v59 = vld [vmem:[#allocation8 + $0x124] ss:$16 sps:$4 sm:$0xff]  }
 0x12d   :  { %3333 = vmatprep.subr.bf16.mxu1 %v8552_v61  ;;  %v8582_v60 = vld [vmem:[#allocation8 + $0x324] ss:$16 sps:$4 sm:$0xff]  }
 0x12f   :  { %3291 = vmatpush1.bf16.msra.mxu0 %v8502_v62  ;;  %v8538_v62 = vld [vmem:[#allocation8 + $0x120] ss:$16 sps:$4 sm:$0xff]  }
 0x130   :  { %3334 = vmatpush1.bf16.msra.mxu1 %v8550_v63  ;;  %3292 = vmatprep.subr.bf16.mxu0 %v8507_v0  ;;  %v8580_v63 = vld [vmem:[#allocation8 + $0x320] ss:$16 sps:$4 sm:$0xff]  }
 0x131   :  { %3335 = vmatprep.subr.bf16.mxu1 %v8555_v1  ;;  %v8546_v1 = vld [vmem:[#allocation8 + $0x104] ss:$16 sps:$4 sm:$0xff]  }
 0x133   :  { %3293 = vmatpush1.bf16.msra.mxu0 %v8505_v2  ;;  %v8585_v2 = vld [vmem:[#allocation8 + $0x304] ss:$16 sps:$4 sm:$0xff]  }
 0x134   :  { %3336 = vmatpush1.bf16.msra.mxu1 %v8553_v3  ;;  %3294 = vmatprep.subr.bf16.mxu0 %v8510_v6  ;;  %v8544_v6 = vld [vmem:[#allocation8 + $0x100] ss:$16 sps:$4 sm:$0xff]  }
 0x135   :  { %3337 = vmatprep.subr.bf16.mxu1 %v8558_v7  ;;  %v8583_v7 = vld [vmem:[#allocation8 + $0x300] ss:$16 sps:$4 sm:$0xff]  }
 0x137   :  { %3295 = vmatpush1.bf16.msra.mxu0 %v8508_v8 }
 0x138   :  { %3338 = vmatpush1.bf16.msra.mxu1 %v8556_v10  ;;  %3296 = vmatprep.subr.bf16.mxu0 %v8513_v11  ;;  %v8639_v10 = vld [vmem:[#allocation8 + $0x6e4] ss:$16 sps:$4 sm:$0xff]  }
 0x139   :  { %3339 = vmatprep.subr.bf16.mxu1 %v8561_v12  ;;  %v8586_v12 = vld [vmem:[#allocation8 + $0x4e0] ss:$16 sps:$4 sm:$0xff]  }
 0x13b   :  { %3297 = vmatpush1.bf16.msra.mxu0 %v8511_v13  ;;  %v8591_v13 = vld [vmem:[#allocation8 + $0x4c4] ss:$16 sps:$4 sm:$0xff]  }
 0x13c   :  { %3340 = vmatpush1.bf16.msra.mxu1 %v8559_v15  ;;  %3298 = vmatprep.subr.bf16.mxu0 %v8516_v16  ;;  %v8589_v16 = vld [vmem:[#allocation8 + $0x4c0] ss:$16 sps:$4 sm:$0xff]  }
 0x13d   :  { %3341 = vmatprep.subr.bf16.mxu1 %v8564_v17  ;;  %v8594_v17 = vld [vmem:[#allocation8 + $0x4a4] ss:$16 sps:$4 sm:$0xff]  }
 0x13e   :  { %v1611_v24 = vpop.f32.mrf.mxu0 }
 0x13f   :  { %v9706_v25 = vpop.f32.mrf.mxu1  ;;  %3299 = vmatpush2.bf16.msra.mxu0 %v8514_v19  ;;  %v1612_v61 = vadd.f32 %v1611_v24, %v373_v55  ;;  %v8592_v19 = vld [vmem:[#allocation8 + $0x4a0] ss:$16 sps:$4 sm:$0xff]  }
 0x140   :  { %3342 = vmatpush2.bf16.msra.mxu1 %v8562_v21  ;;  %v1613_v48 = vpop.f32.mrf.mxu0  ;;  %3300 = vmatprep.subr.bf16.mxu0 %v8519_v22  ;;  %v8597_v21 = vld [vmem:[#allocation8 + $0x484] ss:$16 sps:$4 sm:$0xff]   ;;  %v8595_v22 = vld [vmem:[#allocation8 + $0x480] ss:$16 sps:$4 sm:$0xff]  }
 0x141   :  { %v1656_v50 = vpop.f32.mrf.mxu1  ;;  %3343 = vmatprep.subr.bf16.mxu1 %v8567_v23  ;;  %v1614_v29 = vadd.f32 %v1613_v48, %v377_v4  ;;  %v1655_v3 = vadd.f32 %v9706_v25, %v1612_v61  ;;  %v8600_v23 = vld [vmem:[#allocation8 + $0x464] ss:$16 sps:$4 sm:$0xff]   ;;  %v8601_v24 = vld [vmem:[#allocation8 + $0x440] ss:$16 sps:$4 sm:$0xff]  }
 0x142   :  { %v1615_v31 = vpop.f32.mrf.mxu0  ;;  %v8606_v25 = vld [vmem:[#allocation8 + $0x424] ss:$16 sps:$4 sm:$0xff]   ;;  %v8607_v48 = vld [vmem:[#allocation8 + $0x400] ss:$16 sps:$4 sm:$0xff]  }
 0x143   :  { %v1658_v32 = vpop.f32.mrf.mxu1  ;;  %3301 = vmatpush2.bf16.msra.mxu0 %v8517_v5  ;;  %v1657_v37 = vadd.f32 %v1656_v50, %v1614_v29  ;;  %v1616_v58 = vadd.f32 %v1615_v31, %v373_v55  ;;  %v1917_v11 = vmax.f32 %v1655_v3, 0.0  ;;  %v8603_v5 = vld [vmem:[#allocation8 + $0x444] ss:$16 sps:$4 sm:$0xff]   ;;  %v8610_v29 = vld [vmem:[#allocation8 + $0x5e0] ss:$16 sps:$4 sm:$0xff]  }
 0x144   :  { %3344 = vmatpush2.bf16.msra.mxu1 %v8565_v27  ;;  %v1617_v35 = vpop.f32.mrf.mxu0  ;;  %3302 = vmatprep.subr.bf16.mxu0 %v8522_v26  ;;  %v8604_v26 = vld [vmem:[#allocation8 + $0x420] ss:$16 sps:$4 sm:$0xff]   ;;  %v8609_v27 = vld [vmem:[#allocation8 + $0x404] ss:$16 sps:$4 sm:$0xff]  }
 0x145   :  { %3345 = vmatprep.subr.bf16.mxu1 %v8570_v28  ;;  %v1618_v38 = vadd.f32 %v1617_v35, %v377_v4  ;;  %v1660_v40 = vpop.f32.mrf.mxu1  ;;  %v1918_v45 = vmax.f32 %v1657_v37, 0.0  ;;  %v1659_v0 = vadd.f32 %v1658_v32, %v1616_v58  ;;  %v8598_v4 = vld [vmem:[#allocation8 + $0x460] ss:$16 sps:$4 sm:$0xff]   ;;  %v8612_v50 = vld [vmem:[#allocation8 + $0x5e4] ss:$16 sps:$4 sm:$0xff]   ;;  %v9721_v28 = vsub.s32 3, %v9697_v14 }
 0x146   :  { %v8615_v31 = vld [vmem:[#allocation8 + $0x5c4] ss:$16 sps:$4 sm:$0xff]  }
 0x147   :  { %v1661_v42 = vadd.f32 %v1660_v40, %v1618_v38  ;;  %3303 = vmatpush2.bf16.msra.mxu0 %v8520_v30  ;;  %v1924_v8 = vmax.f32 %v1659_v0, 0.0  ;;  %v9724_v30 = vsub.s32 2, %v9697_v14  ;;  %v385_v32 = vrot.slane %v9699_v18, %v9721_v28 }
 0x148   :  { %3346 = vmatpush2.bf16.msra.mxu1 %v8568_v34  ;;  %3304 = vmatprep.subr.bf16.mxu0 %v8525_v33  ;;  %v8613_v33 = vld [vmem:[#allocation8 + $0x5c0] ss:$16 sps:$4 sm:$0xff]  }
 0x149   :  { %3347 = vmatprep.subr.bf16.mxu1 %v8573_v36  ;;  %v1925_v46 = vmax.f32 %v1661_v42, 0.0  ;;  %v9717_v15 = vpack.c.bf16 %v1924_v8, %v1917_v11  ;;  %v381_v34 = vrot.slane %v9699_v18, %v9724_v30  ;;  %v8643_v8 = vld [vmem:[#allocation8 + $0x6c0] ss:$16 sps:$4 sm:$0xff]  }
 0x14a   :  { %v8628_v11 = vld [vmem:[#allocation8 + $0x520] ss:$16 sps:$4 sm:$0xff]  }
 0x14b   :  { %v9711_v51 = vpack.c.bf16 %v1925_v46, %v1918_v45  ;;  %3305 = vmatpush2.bf16.msra.mxu0 %v8523_v39  ;;  %v8618_v39 = vld [vmem:[#allocation8 + $0x5a4] ss:$16 sps:$4 sm:$0xff]  }
 0x14c   :  { %3348 = vmatpush2.bf16.msra.mxu1 %v8571_v43  ;;  %3306 = vmatprep.subr.bf16.mxu0 %v8528_v41  ;;  %v8616_v41 = vld [vmem:[#allocation8 + $0x5a0] ss:$16 sps:$4 sm:$0xff]  }
 0x14d   :  { %3349 = vmatprep.subr.bf16.mxu1 %v8576_v44  ;;  %3314 = vmatprep.mubr.bf16.mxu0 %v9711_v51 }
 0x14f   :  { %3307 = vmatpush2.bf16.msra.mxu0 %v8526_v47  ;;  %v8621_v47 = vld [vmem:[#allocation8 + $0x584] ss:$16 sps:$4 sm:$0xff]  }
 0x150   :  { %3350 = vmatpush2.bf16.msra.mxu1 %v8574_v52  ;;  %3308 = vmatprep.subr.bf16.mxu0 %v8534_v53 }
 0x151   :  { %3351 = vmatprep.subr.bf16.mxu1 %v8579_v54  ;;  %v8619_v54 = vld [vmem:[#allocation8 + $0x580] ss:$16 sps:$4 sm:$0xff]  }
 0x153   :  { %3309 = vmatpush2.bf16.msra.mxu0 %v8532_v56 }
 0x154   :  { %3352 = vmatpush2.bf16.msra.mxu1 %v8577_v57  ;;  %3310 = vmatprep.subr.bf16.mxu0 %v8540_v59  ;;  %v8624_v59 = vld [vmem:[#allocation8 + $0x564] ss:$16 sps:$4 sm:$0xff]  }
 0x155   :  { %3353 = vmatprep.subr.bf16.mxu1 %v8582_v60 }
 0x157   :  { %3311 = vmatpush2.bf16.msra.mxu0 %v8538_v62  ;;  %v8622_v62 = vld [vmem:[#allocation8 + $0x560] ss:$16 sps:$4 sm:$0xff]  }
 0x158   :  { %3354 = vmatpush2.bf16.msra.mxu1 %v8580_v63  ;;  %3312 = vmatprep.subr.bf16.mxu0 %v8546_v1  ;;  %v8637_v63 = vld [vmem:[#allocation8 + $0x6e0] ss:$16 sps:$4 sm:$0xff]   ;;  %v8627_v1 = vld [vmem:[#allocation8 + $0x544] ss:$16 sps:$4 sm:$0xff]  }
 0x159   :  { %3355 = vmatprep.subr.bf16.mxu1 %v8585_v2 }
 0x15b   :  { %3313 = vmatpush2.bf16.msra.mxu0 %v8544_v6  ;;  %v8645_v6 = vld [vmem:[#allocation8 + $0x6c4] ss:$16 sps:$4 sm:$0xff]  }
 0x15c   :  { %3356 = vmatpush2.bf16.msra.mxu1 %v8583_v7  ;;  %3368 = vmatprep.subr.bf16.mxu0 %v8588_v9  ;;  %v8625_v7 = vld [vmem:[#allocation8 + $0x540] ss:$16 sps:$4 sm:$0xff]   ;;  %v8630_v9 = vld [vmem:[#allocation8 + $0x524] ss:$16 sps:$4 sm:$0xff]  }
 0x15d   :  { %3411 = vmatprep.subr.bf16.mxu1 %v8639_v10  ;;  %v8651_v10 = vld [vmem:[#allocation8 + $0x6a4] ss:$16 sps:$4 sm:$0xff]  }
 0x15e   :  { %3315 = vmatmul.mubr.bf16.vlgmr.msra.gmra.mxu0 %v9717_v15 }
 0x15f   :  { %3369 = vmatpush1.bf16.msra.mxu0 %v8586_v12  ;;  %v8649_v12 = vld [vmem:[#allocation8 + $0x6a0] ss:$16 sps:$4 sm:$0xff]  }
 0x160   :  { %3370 = vmatprep.subr.bf16.mxu0 %v8591_v13  ;;  %v9628_v13 = vmov 0  }
 0x163   :  { %3371 = vmatpush1.bf16.msra.mxu0 %v8589_v16  ;;  %v8633_v16 = vld [vmem:[#allocation8 + $0x504] ss:$16 sps:$4 sm:$0xff]  }
 0x164   :  { %3372 = vmatprep.subr.bf16.mxu0 %v8594_v17  ;;  %v8657_v17 = vld [vmem:[#allocation8 + $0x684] ss:$16 sps:$4 sm:$0xff]  }
 0x167   :  { %3373 = vmatpush1.bf16.msra.mxu0 %v8592_v19  ;;  %v8631_v19 = vld [vmem:[#allocation8 + $0x500] ss:$16 sps:$4 sm:$0xff]  }
 0x168   :  { %3374 = vmatprep.subr.bf16.mxu0 %v8597_v21  ;;  %v8655_v21 = vld [vmem:[#allocation8 + $0x680] ss:$16 sps:$4 sm:$0xff]  }
 0x16b   :  { %3375 = vmatpush1.bf16.msra.mxu0 %v8595_v22  ;;  %v8636_v22 = vld [vmem:[#allocation8 + $0x2ec] ss:$16 sps:$4 sm:$0xff]  }
 0x16c   :  { %3376 = vmatprep.subr.bf16.mxu0 %v8600_v23  ;;  %v8663_v23 = vld [vmem:[#allocation8 + $0x664] ss:$16 sps:$4 sm:$0xff]  }
 0x16f   :  { %3377 = vmatpush1.bf16.msra.mxu0 %v8598_v4  ;;  %v8661_v4 = vld [vmem:[#allocation8 + $0x660] ss:$16 sps:$4 sm:$0xff]  }
 0x170   :  { %3378 = vmatprep.subr.bf16.mxu0 %v8603_v5  ;;  %v8669_v5 = vld [vmem:[#allocation8 + $0x644] ss:$16 sps:$4 sm:$0xff]  }
 0x173   :  { %3379 = vmatpush1.bf16.msra.mxu0 %v8601_v24  ;;  %v8667_v24 = vld [vmem:[#allocation8 + $0x640] ss:$16 sps:$4 sm:$0xff]  }
 0x174   :  { %3380 = vmatprep.subr.bf16.mxu0 %v8606_v25  ;;  %v8675_v25 = vld [vmem:[#allocation8 + $0x624] ss:$16 sps:$4 sm:$0xff]  }
 0x177   :  { %3381 = vmatpush1.bf16.msra.mxu0 %v8604_v26  ;;  %v8673_v26 = vld [vmem:[#allocation8 + $0x620] ss:$16 sps:$4 sm:$0xff]  }
 0x178   :  { %3382 = vmatprep.subr.bf16.mxu0 %v8609_v27  ;;  %v8681_v27 = vld [vmem:[#allocation8 + $0x604] ss:$16 sps:$4 sm:$0xff]  }
 0x17b   :  { %3383 = vmatpush1.bf16.msra.mxu0 %v8607_v48  ;;  %v8679_v48 = vld [vmem:[#allocation8 + $0x600] ss:$16 sps:$4 sm:$0xff]  }
 0x17c   :  { %3384 = vmatprep.subr.bf16.mxu0 %v8612_v50  ;;  %v8687_v50 = vld [vmem:[#allocation8 + $0xec] ss:$16 sps:$4 sm:$0xff]  }
 0x17e   :  { %v1697_v35 = vpop.f32.mrf.mxu0 }
 0x17f   :  { %v1740_v36 = vpop.f32.mrf.mxu1  ;;  %3385 = vmatpush2.bf16.msra.mxu0 %v8610_v29  ;;  %v1698_v42 = vadd.f32 %v1697_v35, %v381_v34  ;;  %v388_v29 = vsub.s32 4, %v9697_v14 }
 0x180   :  { %v1699_v37 = vpop.f32.mrf.mxu0  ;;  %3386 = vmatprep.subr.bf16.mxu0 %v8615_v31  ;;  %v392_v31 = vsub.s32 5, %v9697_v14 }
 0x181   :  { %v1742_v38 = vpop.f32.mrf.mxu1  ;;  %v1700_v40 = vadd.f32 %v1699_v37, %v385_v32  ;;  %v1741_v55 = vadd.f32 %v1740_v36, %v1698_v42 }
 0x182   :  { %v1701_v43 = vpop.f32.mrf.mxu0 }
 0x183   :  { %v1744_v44 = vpop.f32.mrf.mxu1  ;;  %v1702_v45 = vadd.f32 %v1701_v43, %v381_v34  ;;  %3387 = vmatpush2.bf16.msra.mxu0 %v8613_v33  ;;  %v1743_v52 = vadd.f32 %v1742_v38, %v1700_v40  ;;  %v1919_v0 = vmax.f32 %v1741_v55, 0.0 }
 0x184   :  { %v1703_v46 = vpop.f32.mrf.mxu0  ;;  %3388 = vmatprep.subr.bf16.mxu0 %v8618_v39 }
 0x185   :  { %v1745_v53 = vadd.f32 %v1744_v44, %v1702_v45  ;;  %v1704_v18 = vadd.f32 %v1703_v46, %v385_v32  ;;  %v1746_v56 = vpop.f32.mrf.mxu1  ;;  %v1920_v60 = vmax.f32 %v1743_v52, 0.0  ;;  %v9486_v32 = vld [vmem:[#allocation7] sm:$0xff] }
 0x186   :  { %v393_v33 = vrot.slane %v9486_v32, %v392_v31  ;;  %v389_v34 = vrot.slane %v9486_v32, %v388_v29 }
 0x187   :  { %v1747_v57 = vadd.f32 %v1746_v56, %v1704_v18  ;;  %3389 = vmatpush2.bf16.msra.mxu0 %v8616_v41  ;;  %v1926_v58 = vmax.f32 %v1745_v53, 0.0 }
 0x188   :  { %3390 = vmatprep.subr.bf16.mxu0 %v8621_v47 }
 0x189   :  { %v1927_v61 = vmax.f32 %v1747_v57, 0.0  ;;  %v9732_v3 = vpack.c.bf16 %v1926_v58, %v1919_v0  ;;  %v8634_v57 = vld [vmem:[#allocation8 + $0x2e8] ss:$16 sps:$4 sm:$0xff]  }
 0x18a   :  { %v8646_v0 = vld [vmem:[#allocation8 + $0x2a8] ss:$16 sps:$4 sm:$0xff]  }
 0x18b   :  { %v9730_v2 = vpack.c.bf16 %v1927_v61, %v1920_v60  ;;  %3391 = vmatpush2.bf16.msra.mxu0 %v8619_v54 }
 0x18c   :  { %3392 = vmatprep.subr.bf16.mxu0 %v8624_v59  ;;  %v8642_v59 = vld [vmem:[#allocation8 + $0x2cc] ss:$16 sps:$4 sm:$0xff]  }
 0x18d   :  { %3357 = vmatprep.mubr.bf16.mxu1 %v9730_v2 }
 0x18e   :  { %3358 = vmatmul.mubr.bf16.vlgmr.msra.gmra.mxu1 %v9732_v3 }
 0x18f   :  { %3393 = vmatpush2.bf16.msra.mxu0 %v8622_v62  ;;  %3412 = vmatpush1.bf16.msra.mxu1 %v8637_v63  ;;  %v8640_v62 = vld [vmem:[#allocation8 + $0x2c8] ss:$16 sps:$4 sm:$0xff]   ;;  %v8648_v63 = vld [vmem:[#allocation8 + $0x2ac] ss:$16 sps:$4 sm:$0xff]  }
 0x190   :  { %3394 = vmatprep.subr.bf16.mxu0 %v8627_v1  ;;  %3413 = vmatprep.subr.bf16.mxu1 %v8645_v6  ;;  %v8654_v1 = vld [vmem:[#allocation8 + $0x28c] ss:$16 sps:$4 sm:$0xff]   ;;  %v8652_v6 = vld [vmem:[#allocation8 + $0x288] ss:$16 sps:$4 sm:$0xff]  }
 0x191   :  { %3443 = vmatprep.mubr.bf16.mxu1 %v9628_v13 }
 0x193   :  { %3395 = vmatpush2.bf16.msra.mxu0 %v8625_v7  ;;  %3414 = vmatpush1.bf16.msra.mxu1 %v8643_v8  ;;  %v8660_v7 = vld [vmem:[#allocation8 + $0x26c] ss:$16 sps:$4 sm:$0xff]   ;;  %v8658_v8 = vld [vmem:[#allocation8 + $0x268] ss:$16 sps:$4 sm:$0xff]  }
 0x194   :  { %3396 = vmatprep.subr.bf16.mxu0 %v8630_v9  ;;  %3415 = vmatprep.subr.bf16.mxu1 %v8651_v10  ;;  %v396_v9 = vsub.s32 6, %v9697_v14  ;;  %v8666_v10 = vld [vmem:[#allocation8 + $0x24c] ss:$16 sps:$4 sm:$0xff]  }
 0x195   :  { %v9340_v14 = vld [vmem:[#allocation8 + $0xaec] ss:$16 sps:$4 sm:$0xff]  }
 0x197   :  { %3397 = vmatpush2.bf16.msra.mxu0 %v8628_v11  ;;  %3416 = vmatpush1.bf16.msra.mxu1 %v8649_v12 }
 0x198   :  { %3398 = vmatprep.subr.bf16.mxu0 %v8633_v16  ;;  %3417 = vmatprep.subr.bf16.mxu1 %v8657_v17  ;;  %v8664_v16 = vld [vmem:[#allocation8 + $0x248] ss:$16 sps:$4 sm:$0xff]  }
 0x19b   :  { %3399 = vmatpush2.bf16.msra.mxu0 %v8631_v19  ;;  %3418 = vmatpush1.bf16.msra.mxu1 %v8655_v21  ;;  %v8672_v21 = vld [vmem:[#allocation8 + $0x22c] ss:$16 sps:$4 sm:$0xff]  }
 0x19c   :  { %3497 = vmatprep.subr.bf16.mxu0 %v8636_v22  ;;  %3419 = vmatprep.subr.bf16.mxu1 %v8663_v23 }
 0x19f   :  { %3420 = vmatpush1.bf16.msra.mxu1 %v8661_v4 }
 0x1a0   :  { %3421 = vmatprep.subr.bf16.mxu1 %v8669_v5 }
 0x1a3   :  { %3422 = vmatpush1.bf16.msra.mxu1 %v8667_v24  ;;  %v8670_v24 = vld [vmem:[#allocation8 + $0x228] ss:$16 sps:$4 sm:$0xff]  }
 0x1a4   :  { %3423 = vmatprep.subr.bf16.mxu1 %v8675_v25 }
 0x1a7   :  { %3424 = vmatpush1.bf16.msra.mxu1 %v8673_v26 }
 0x1a8   :  { %3425 = vmatprep.subr.bf16.mxu1 %v8681_v27  ;;  %v8678_v27 = vld [vmem:[#allocation8 + $0x20c] ss:$16 sps:$4 sm:$0xff]  }
 0x1ab   :  { %3426 = vmatpush1.bf16.msra.mxu1 %v8679_v48 }
 0x1ac   :  { %3454 = vmatprep.subr.bf16.mxu1 %v8687_v50 }
 0x1be   :  { %v1783_v35 = vpop.f32.mrf.mxu0 }
 0x1bf   :  { %v1826_v36 = vpop.f32.mrf.mxu1  ;;  %v1784_v40 = vadd.f32 %v1783_v35, %v389_v34  ;;  %v8676_v35 = vld [vmem:[#allocation8 + $0x208] ss:$16 sps:$4 sm:$0xff]  }
 0x1c0   :  { %v1785_v37 = vpop.f32.mrf.mxu0 }
 0x1c1   :  { %v1828_v38 = vpop.f32.mrf.mxu1  ;;  %v1786_v39 = vadd.f32 %v1785_v37, %v393_v33  ;;  %v1827_v52 = vadd.f32 %v1826_v36, %v1784_v40  ;;  %v8684_v36 = vld [vmem:[#allocation8 + $0x3ec] ss:$16 sps:$4 sm:$0xff]  }
 0x1c2   :  { %v1787_v41 = vpop.f32.mrf.mxu0 }
 0x1c3   :  { %v1830_v42 = vpop.f32.mrf.mxu1  ;;  %v1788_v43 = vadd.f32 %v1787_v41, %v389_v34  ;;  %v1829_v45 = vadd.f32 %v1828_v38, %v1786_v39  ;;  %v1921_v58 = vmax.f32 %v1827_v52, 0.0  ;;  %v8682_v38 = vld [vmem:[#allocation8 + $0x3e8] ss:$16 sps:$4 sm:$0xff]   ;;  %v8699_v52 = vld [vmem:[#allocation8 + $0xac] ss:$16 sps:$4 sm:$0xff]  }
 0x1c4   :  { %v1789_v44 = vpop.f32.mrf.mxu0  ;;  %v8685_v41 = vld [vmem:[#allocation8 + $0xe8] ss:$16 sps:$4 sm:$0xff]  }
 0x1c5   :  { %v1831_v46 = vadd.f32 %v1830_v42, %v1788_v43  ;;  %v1790_v47 = vadd.f32 %v1789_v44, %v393_v33  ;;  %v1832_v53 = vpop.f32.mrf.mxu1  ;;  %v1922_v55 = vmax.f32 %v1829_v45, 0.0  ;;  %v8690_v42 = vld [vmem:[#allocation8 + $0x3cc] ss:$16 sps:$4 sm:$0xff]   ;;  %v8688_v45 = vld [vmem:[#allocation8 + $0x3c8] ss:$16 sps:$4 sm:$0xff]  }
 0x1c6   :  { %v8693_v44 = vld [vmem:[#allocation8 + $0xcc] ss:$16 sps:$4 sm:$0xff]  }
 0x1c7   :  { %v1833_v18 = vadd.f32 %v1832_v53, %v1790_v47  ;;  %v1928_v54 = vmax.f32 %v1831_v46, 0.0  ;;  %v8691_v46 = vld [vmem:[#allocation8 + $0xc8] ss:$16 sps:$4 sm:$0xff]   ;;  %v8696_v47 = vld [vmem:[#allocation8 + $0x3ac] ss:$16 sps:$4 sm:$0xff]  }
 0x1c8   :  { %v8694_v53 = vld [vmem:[#allocation8 + $0x3a8] ss:$16 sps:$4 sm:$0xff]  }
 0x1c9   :  { %v1929_v56 = vmax.f32 %v1833_v18, 0.0  ;;  %v9745_v61 = vpack.c.bf16 %v1928_v54, %v1921_v58  ;;  %v8697_v18 = vld [vmem:[#allocation8 + $0xa8] ss:$16 sps:$4 sm:$0xff]   ;;  %v8702_v54 = vld [vmem:[#allocation8 + $0x38c] ss:$16 sps:$4 sm:$0xff]  }
 0x1ca   :  { %v8708_v58 = vld [vmem:[#allocation8 + $0x36c] ss:$16 sps:$4 sm:$0xff]  }
 0x1cb   :  { %v9743_v60 = vpack.c.bf16 %v1929_v56, %v1922_v55  ;;  %v8705_v55 = vld [vmem:[#allocation8 + $0x8c] ss:$16 sps:$4 sm:$0xff]   ;;  %v8700_v56 = vld [vmem:[#allocation8 + $0x388] ss:$16 sps:$4 sm:$0xff]  }
 0x1cd   :  { %3400 = vmatprep.mubr.bf16.mxu0 %v9743_v60 }
 0x1ce   :  { %3401 = vmatmul.mubr.bf16.vlgmr.msra.gmra.mxu0 %v9745_v61 }
 0x1cf   :  { %3498 = vmatpush1.bf16.msra.mxu0 %v8634_v57  ;;  %3529 = vmatprep.mubr.bf16.mxu0 %v9730_v2  ;;  %v397_v2 = vrot.slane %v9486_v32, %v396_v9  ;;  %v8703_v57 = vld [vmem:[#allocation8 + $0x88] ss:$16 sps:$4 sm:$0xff]  }
 0x1d0   :  { %3499 = vmatprep.subr.bf16.mxu0 %v8642_v59  ;;  %v8706_v59 = vld [vmem:[#allocation8 + $0x368] ss:$16 sps:$4 sm:$0xff]  }
 0x1d3   :  { %3500 = vmatpush1.bf16.msra.mxu0 %v8640_v62  ;;  %v8709_v62 = vld [vmem:[#allocation8 + $0x68] ss:$16 sps:$4 sm:$0xff]  }
 0x1d4   :  { %3501 = vmatprep.subr.bf16.mxu0 %v8648_v63  ;;  %v8714_v63 = vld [vmem:[#allocation8 + $0x34c] ss:$16 sps:$4 sm:$0xff]  }
 0x1d7   :  { %3502 = vmatpush1.bf16.msra.mxu0 %v8646_v0  ;;  %v8717_v0 = vld [vmem:[#allocation8 + $0x4c] ss:$16 sps:$4 sm:$0xff]  }
 0x1d8   :  { %3503 = vmatprep.subr.bf16.mxu0 %v8654_v1  ;;  %v8712_v1 = vld [vmem:[#allocation8 + $0x348] ss:$16 sps:$4 sm:$0xff]  }
 0x1db   :  { %3504 = vmatpush1.bf16.msra.mxu0 %v8652_v6  ;;  %v8715_v6 = vld [vmem:[#allocation8 + $0x48] ss:$16 sps:$4 sm:$0xff]  }
 0x1dc   :  { %3505 = vmatprep.subr.bf16.mxu0 %v8660_v7  ;;  %v8720_v7 = vld [vmem:[#allocation8 + $0x32c] ss:$16 sps:$4 sm:$0xff]  }
 0x1de   :  { %v8079_v11 = vpop.f32.mrf.mxu0 }
 0x1df   :  { %v8101_v12 = vpop.f32.mrf.mxu1  ;;  %3506 = vmatpush1.bf16.msra.mxu0 %v8658_v8  ;;  %v8723_v8 = vld [vmem:[#allocation8 + $0x2c] ss:$16 sps:$4 sm:$0xff]  }
 0x1e0   :  { %v8080_v17 = vpop.f32.mrf.mxu0  ;;  %3507 = vmatprep.subr.bf16.mxu0 %v8666_v10  ;;  %v8718_v10 = vld [vmem:[#allocation8 + $0x328] ss:$16 sps:$4 sm:$0xff]  }
 0x1e1   :  { %v8102_v19 = vpop.f32.mrf.mxu1  ;;  %v8081_v22 = vadd.f32 %v8080_v17, %v8079_v11  ;;  %v8721_v11 = vld [vmem:[#allocation8 + $0x28] ss:$16 sps:$4 sm:$0xff]  }
 0x1e2   :  { %v8082_v23 = vpop.f32.mrf.mxu0  ;;  %v8103_v48 = vadd.f32 %v8102_v19, %v8101_v12  ;;  %v8726_v12 = vld [vmem:[#allocation8 + $0x30c] ss:$16 sps:$4 sm:$0xff]   ;;  %v8727_v17 = vld [vmem:[#allocation8 + $0x8] ss:$16 sps:$4 sm:$0xff]  }
 0x1e3   :  { %v8104_v4 = vpop.f32.mrf.mxu1  ;;  %v1870_v5 = vadd.f32 %v8081_v22, %v397_v2  ;;  %3508 = vmatpush1.bf16.msra.mxu0 %v8664_v16  ;;  %v8724_v16 = vld [vmem:[#allocation8 + $0x308] ss:$16 sps:$4 sm:$0xff]   ;;  %v8732_v19 = vld [vmem:[#allocation8 + $0x6ec] ss:$16 sps:$4 sm:$0xff]  }
 0x1e4   :  { %v8083_v25 = vpop.f32.mrf.mxu0  ;;  %3509 = vmatprep.subr.bf16.mxu0 %v8672_v21  ;;  %v8735_v21 = vld [vmem:[#allocation8 + $0x1ec] ss:$16 sps:$4 sm:$0xff]   ;;  %v8730_v22 = vld [vmem:[#allocation8 + $0x6e8] ss:$16 sps:$4 sm:$0xff]  }
 0x1e5   :  { %v8105_v26 = vpop.f32.mrf.mxu1  ;;  %v8084_v50 = vadd.f32 %v8083_v25, %v8082_v23  ;;  %v1911_v33 = vadd.f32 %v8103_v48, %v1870_v5  ;;  %v8733_v23 = vld [vmem:[#allocation8 + $0x1e8] ss:$16 sps:$4 sm:$0xff]   ;;  %v8741_v5 = vld [vmem:[#allocation8 + $0x1cc] ss:$16 sps:$4 sm:$0xff]  }
 0x1e6   :  { %v8106_v32 = vadd.f32 %v8105_v26, %v8104_v4  ;;  %v8738_v4 = vld [vmem:[#allocation8 + $0x6cc] ss:$16 sps:$4 sm:$0xff]   ;;  %v8739_v25 = vld [vmem:[#allocation8 + $0x1c8] ss:$16 sps:$4 sm:$0xff]  }
 0x1e7   :  { %v1873_v34 = vadd.f32 %v8084_v50, %v397_v2  ;;  %3510 = vmatpush1.bf16.msra.mxu0 %v8670_v24  ;;  %v1923_v39 = vmax.f32 %v1911_v33, 0.0  ;;  %v8729_v2 = vld [vmem:[#allocation8 + $0xc] ss:$16 sps:$4 sm:$0xff]   ;;  %v8736_v24 = vld [vmem:[#allocation8 + $0x6c8] ss:$16 sps:$4 sm:$0xff]  }
 0x1e8   :  { %3511 = vmatprep.subr.bf16.mxu0 %v8678_v27  ;;  %v8744_v26 = vld [vmem:[#allocation8 + $0x6ac] ss:$16 sps:$4 sm:$0xff]   ;;  %v8742_v48 = vld [vmem:[#allocation8 + $0x6a8] ss:$16 sps:$4 sm:$0xff]  }
 0x1e9   :  { %v1914_v37 = vadd.f32 %v8106_v32, %v1873_v34  ;;  %v8747_v27 = vld [vmem:[#allocation8 + $0x1ac] ss:$16 sps:$4 sm:$0xff]   ;;  %v8745_v50 = vld [vmem:[#allocation8 + $0x1a8] ss:$16 sps:$4 sm:$0xff]  }
 0x1ea   :  { %v8750_v33 = vld [vmem:[#allocation8 + $0x68c] ss:$16 sps:$4 sm:$0xff]   ;;  %v8751_v32 = vld [vmem:[#allocation8 + $0x188] ss:$16 sps:$4 sm:$0xff]  }
 0x1eb   :  { %v1930_v40 = vmax.f32 %v1914_v37, 0.0  ;;  %3512 = vmatpush1.bf16.msra.mxu0 %v8676_v35  ;;  %v8753_v34 = vld [vmem:[#allocation8 + $0x18c] ss:$16 sps:$4 sm:$0xff]   ;;  %v8754_v37 = vld [vmem:[#allocation8 + $0x668] ss:$16 sps:$4 sm:$0xff]  }
 0x1ec   :  { %3513 = vmatprep.subr.bf16.mxu0 %v8684_v36  ;;  %v8756_v35 = vld [vmem:[#allocation8 + $0x66c] ss:$16 sps:$4 sm:$0xff]  }
 0x1ed   :  { %v9753_v43 = vpack.c.bf16 %v1930_v40, %v1923_v39  ;;  %v8759_v36 = vld [vmem:[#allocation8 + $0x16c] ss:$16 sps:$4 sm:$0xff]  }
 0x1ee   :  { %v8762_v39 = vld [vmem:[#allocation8 + $0x64c] ss:$16 sps:$4 sm:$0xff]  }
 0x1ef   :  { %3514 = vmatpush2.bf16.msra.mxu0 %v8682_v38  ;;  %3444 = vmatmul.mubr.bf16.vlgmr.msra.gmra.mxu1 %v9753_v43  ;;  %v8757_v38 = vld [vmem:[#allocation8 + $0x168] ss:$16 sps:$4 sm:$0xff]   ;;  %v8765_v40 = vld [vmem:[#allocation8 + $0x14c] ss:$16 sps:$4 sm:$0xff]  }
 0x1f0   :  { %3455 = vmatpush1.bf16.msra.mxu1 %v8685_v41  ;;  %3486 = vmatprep.mubr.bf16.mxu1 %v9711_v51  ;;  %v8711_v51 = vld [vmem:[#allocation8 + $0x6c] ss:$16 sps:$4 sm:$0xff]   ;;  %v8760_v41 = vld [vmem:[#allocation8 + $0x648] ss:$16 sps:$4 sm:$0xff]  }
 0x1f1   :  { %3515 = vmatprep.subr.bf16.mxu0 %v8690_v42  ;;  %3456 = vmatprep.subr.bf16.mxu1 %v8693_v44  ;;  %v8763_v42 = vld [vmem:[#allocation8 + $0x148] ss:$16 sps:$4 sm:$0xff]   ;;  %v8768_v44 = vld [vmem:[#allocation8 + $0x62c] ss:$16 sps:$4 sm:$0xff]  }
 0x1f3   :  { %3516 = vmatpush2.bf16.msra.mxu0 %v8688_v45  ;;  %v8771_v45 = vld [vmem:[#allocation8 + $0x12c] ss:$16 sps:$4 sm:$0xff]  }
 0x1f4   :  { %3457 = vmatpush1.bf16.msra.mxu1 %v8691_v46  ;;  %3517 = vmatprep.subr.bf16.mxu0 %v8696_v47  ;;  %v8766_v46 = vld [vmem:[#allocation8 + $0x628] ss:$16 sps:$4 sm:$0xff]  }
 0x1f5   :  { %3458 = vmatprep.subr.bf16.mxu1 %v8699_v52  ;;  %v8769_v47 = vld [vmem:[#allocation8 + $0x128] ss:$16 sps:$4 sm:$0xff]   ;;  %v8774_v52 = vld [vmem:[#allocation8 + $0x60c] ss:$16 sps:$4 sm:$0xff]  }
 0x1f7   :  { %3518 = vmatpush2.bf16.msra.mxu0 %v8694_v53  ;;  %v8777_v53 = vld [vmem:[#allocation8 + $0x10c] ss:$16 sps:$4 sm:$0xff]  }
 0x1f8   :  { %3459 = vmatpush1.bf16.msra.mxu1 %v8697_v18  ;;  %3519 = vmatprep.subr.bf16.mxu0 %v8702_v54  ;;  %v8772_v18 = vld [vmem:[#allocation8 + $0x608] ss:$16 sps:$4 sm:$0xff]  }
 0x1f9   :  { %3460 = vmatprep.subr.bf16.mxu1 %v8705_v55  ;;  %v8775_v54 = vld [vmem:[#allocation8 + $0x108] ss:$16 sps:$4 sm:$0xff]   ;;  %v8780_v55 = vld [vmem:[#allocation8 + $0x4ec] ss:$16 sps:$4 sm:$0xff]  }
 0x1fb   :  { %3520 = vmatpush2.bf16.msra.mxu0 %v8700_v56  ;;  %v8816_v56 = vld [vmem:[#allocation5 + $0x330] ss:$56 sps:$4 sm:$0xff]  }
 0x1fc   :  { %3461 = vmatpush1.bf16.msra.mxu1 %v8703_v57  ;;  %3521 = vmatprep.subr.bf16.mxu0 %v8708_v58  ;;  %v8814_v57 = vld [vmem:[#allocation5 + $0x32c] ss:$56 sps:$4 sm:$0xff]  }
 0x1fd   :  { %3462 = vmatprep.subr.bf16.mxu1 %v8711_v51  ;;  %v8778_v58 = vld [vmem:[#allocation8 + $0x4e8] ss:$16 sps:$4 sm:$0xff]   ;;  %v8783_v51 = vld [vmem:[#allocation8 + $0x4cc] ss:$16 sps:$4 sm:$0xff]  }
 0x1ff   :  { %3522 = vmatpush2.bf16.msra.mxu0 %v8706_v59  ;;  %v8822_v59 = vld [vmem:[#allocation5 + $0x2c0] ss:$56 sps:$4 sm:$0xff]  }
 0x200   :  { %3463 = vmatpush1.bf16.msra.mxu1 %v8709_v62  ;;  %3523 = vmatprep.subr.bf16.mxu0 %v8714_v63  ;;  %v8820_v62 = vld [vmem:[#allocation5 + $0x2bc] ss:$56 sps:$4 sm:$0xff]  }
 0x201   :  { %3464 = vmatprep.subr.bf16.mxu1 %v8717_v0  ;;  %v8781_v63 = vld [vmem:[#allocation8 + $0x4c8] ss:$16 sps:$4 sm:$0xff]  }
 0x202   :  { %v8828_v0 = vld [vmem:[#allocation5 + $0x250] ss:$56 sps:$4 sm:$0xff]  }
 0x203   :  { %3524 = vmatpush2.bf16.msra.mxu0 %v8712_v1  ;;  %v8786_v1 = vld [vmem:[#allocation8 + $0x4ac] ss:$16 sps:$4 sm:$0xff]  }
 0x204   :  { %3465 = vmatpush1.bf16.msra.mxu1 %v8715_v6  ;;  %3525 = vmatprep.subr.bf16.mxu0 %v8720_v7  ;;  %v9762_v6 = vld [vmem:[#allocation2 + $0x4] ss:$16 sps:$4 sm:$0xff]  }
 0x205   :  { %3466 = vmatprep.subr.bf16.mxu1 %v8723_v8  ;;  %v8826_v7 = vld [vmem:[#allocation5 + $0x24c] ss:$56 sps:$4 sm:$0xff]  }
 0x206   :  { %v8789_v8 = vld [vmem:[#allocation8 + $0x48c] ss:$16 sps:$4 sm:$0xff]  }
 0x207   :  { %3526 = vmatpush2.bf16.msra.mxu0 %v8718_v10  ;;  %v8832_v10 = vld [vmem:[#allocation5 + $0x1dc] ss:$56 sps:$4 sm:$0xff]  }
 0x208   :  { %3467 = vmatpush1.bf16.msra.mxu1 %v8721_v11  ;;  %3527 = vmatprep.subr.bf16.mxu0 %v8726_v12  ;;  %v8840_v11 = vld [vmem:[#allocation5 + $0x170] ss:$56 sps:$4 sm:$0xff]  }
 0x209   :  { %3468 = vmatprep.subr.bf16.mxu1 %v8729_v2  ;;  %v8792_v12 = vld [vmem:[#allocation8 + $0x46c] ss:$16 sps:$4 sm:$0xff]  }
 0x20a   :  { %v8838_v2 = vld [vmem:[#allocation5 + $0x16c] ss:$56 sps:$4 sm:$0xff]  }
 0x20b   :  { %3528 = vmatpush2.bf16.msra.mxu0 %v8724_v16  ;;  %v8790_v16 = vld [vmem:[#allocation8 + $0x468] ss:$16 sps:$4 sm:$0xff]  }
 0x20c   :  { %3469 = vmatpush1.bf16.msra.mxu1 %v8727_v17  ;;  %3583 = vmatprep.subr.bf16.mxu0 %v8732_v19  ;;  %v8846_v17 = vld [vmem:[#allocation5 + $0x100] ss:$56 sps:$4 sm:$0xff]  }
 0x20d   :  { %3470 = vmatprep.subr.bf16.mxu1 %v8735_v21  ;;  %v8795_v19 = vld [vmem:[#allocation8 + $0x44c] ss:$16 sps:$4 sm:$0xff]  }
 0x20e   :  { %3530 = vmatmul.mubr.bf16.vlgmr.msra.gmra.mxu0 %v9732_v3  ;;  %v8748_v3 = vld [vmem:[#allocation8 + $0x688] ss:$16 sps:$4 sm:$0xff]  }
 0x20f   :  { %3584 = vmatpush1.bf16.msra.mxu0 %v8730_v22  ;;  %3615 = vmatprep.mubr.bf16.mxu0 %v9628_v13  ;;  %v8844_v21 = vld [vmem:[#allocation5 + $0xfc] ss:$56 sps:$4 sm:$0xff]  }
 0x210   :  { %3471 = vmatpush2.bf16.msra.mxu1 %v8733_v23  ;;  %3585 = vmatprep.subr.bf16.mxu0 %v8738_v4  ;;  %v8793_v22 = vld [vmem:[#allocation8 + $0x448] ss:$16 sps:$4 sm:$0xff]   ;;  %v8798_v4 = vld [vmem:[#allocation8 + $0x42c] ss:$16 sps:$4 sm:$0xff]  }
 0x211   :  { %3472 = vmatprep.subr.bf16.mxu1 %v8741_v5  ;;  %v8852_v23 = vld [vmem:[#allocation5 + $0x90] ss:$56 sps:$4 sm:$0xff]   ;;  %v8850_v5 = vld [vmem:[#allocation5 + $0x8c] ss:$56 sps:$4 sm:$0xff]  }
 0x213   :  { %3586 = vmatpush1.bf16.msra.mxu0 %v8736_v24  ;;  %v8796_v24 = vld [vmem:[#allocation8 + $0x428] ss:$16 sps:$4 sm:$0xff]  }
 0x214   :  { %3473 = vmatpush2.bf16.msra.mxu1 %v8739_v25  ;;  %3587 = vmatprep.subr.bf16.mxu0 %v8744_v26  ;;  %v8858_v25 = vld [vmem:[#allocation5 + $0x20] ss:$56 sps:$4 sm:$0xff]  }
 0x215   :  { %3474 = vmatprep.subr.bf16.mxu1 %v8747_v27  ;;  %v8801_v26 = vld [vmem:[#allocation8 + $0x40c] ss:$16 sps:$4 sm:$0xff]  }
 0x216   :  { %v8856_v27 = vld [vmem:[#allocation5 + $0x1c] ss:$56 sps:$4 sm:$0xff]  }
 0x217   :  { %3588 = vmatpush1.bf16.msra.mxu0 %v8742_v48  ;;  %v8799_v48 = vld [vmem:[#allocation8 + $0x408] ss:$16 sps:$4 sm:$0xff]  }
 0x218   :  { %3475 = vmatpush2.bf16.msra.mxu1 %v8745_v50  ;;  %3589 = vmatprep.subr.bf16.mxu0 %v8750_v33  ;;  %v8864_v50 = vld [vmem:[#allocation5 + $0x6b0] ss:$56 sps:$4 sm:$0xff]  }
 0x219   :  { %3476 = vmatprep.subr.bf16.mxu1 %v8753_v34  ;;  %v8804_v33 = vld [vmem:[#allocation8 + $0x5ec] ss:$16 sps:$4 sm:$0xff]  }
 0x21b   :  { %3590 = vmatpush1.bf16.msra.mxu0 %v8748_v3  ;;  %v8862_v3 = vld [vmem:[#allocation5 + $0x6ac] ss:$56 sps:$4 sm:$0xff]  }
 0x21c   :  { %3477 = vmatpush2.bf16.msra.mxu1 %v8751_v32  ;;  %3591 = vmatprep.subr.bf16.mxu0 %v8756_v35  ;;  %v8802_v32 = vld [vmem:[#allocation8 + $0x5e8] ss:$16 sps:$4 sm:$0xff]  }
 0x21d   :  { %3478 = vmatprep.subr.bf16.mxu1 %v8759_v36  ;;  %v8870_v35 = vld [vmem:[#allocation5 + $0x640] ss:$56 sps:$4 sm:$0xff]  }
 0x21e   :  { %v3316_v34 = vpop.f32.mrf.mxu0  ;;  %v8807_v36 = vld [vmem:[#allocation8 + $0x5cc] ss:$16 sps:$4 sm:$0xff]  }
 0x21f   :  { %3592 = vmatpush1.bf16.msra.mxu0 %v8754_v37 }
 0x220   :  { %3479 = vmatpush2.bf16.msra.mxu1 %v8757_v38  ;;  %3593 = vmatprep.subr.bf16.mxu0 %v8762_v39  ;;  %v3318_v37 = vpop.f32.mrf.mxu0 }
 0x221   :  { %3480 = vmatprep.subr.bf16.mxu1 %v8765_v40  ;;  %v8868_v40 = vld [vmem:[#allocation5 + $0x63c] ss:$56 sps:$4 sm:$0xff]  }
 0x223   :  { %3594 = vmatpush1.bf16.msra.mxu0 %v8760_v41 }
 0x224   :  { %3481 = vmatpush2.bf16.msra.mxu1 %v8763_v42  ;;  %3595 = vmatprep.subr.bf16.mxu0 %v8768_v44  ;;  %v8805_v42 = vld [vmem:[#allocation8 + $0x5c8] ss:$16 sps:$4 sm:$0xff]  }
 0x225   :  { %3482 = vmatprep.subr.bf16.mxu1 %v8771_v45  ;;  %v8876_v44 = vld [vmem:[#allocation5 + $0x5d0] ss:$56 sps:$4 sm:$0xff]  }
 0x227   :  { %3596 = vmatpush1.bf16.msra.mxu0 %v8766_v46  ;;  %v8810_v46 = vld [vmem:[#allocation8 + $0x5ac] ss:$16 sps:$4 sm:$0xff]  }
 0x228   :  { %3483 = vmatpush2.bf16.msra.mxu1 %v8769_v47  ;;  %3597 = vmatprep.subr.bf16.mxu0 %v8774_v52  ;;  %v3320_v47 = vpop.f32.mrf.mxu0 }
 0x229   :  { %3484 = vmatprep.subr.bf16.mxu1 %v8777_v53 }
 0x22b   :  { %3598 = vmatpush1.bf16.msra.mxu0 %v8772_v18  ;;  %v8874_v18 = vld [vmem:[#allocation5 + $0x5cc] ss:$56 sps:$4 sm:$0xff]  }
 0x22c   :  { %3485 = vmatpush2.bf16.msra.mxu1 %v8775_v54  ;;  %5079 = vmatprep.subr.bf16.mxu0 %v8816_v56  ;;  %v8808_v54 = vld [vmem:[#allocation8 + $0x5a8] ss:$16 sps:$4 sm:$0xff]   ;;  %v8813_v56 = vld [vmem:[#allocation8 + $0x58c] ss:$16 sps:$4 sm:$0xff]  }
 0x22d   :  { %3540 = vmatprep.subr.bf16.mxu1 %v8780_v55  ;;  %v8882_v55 = vld [vmem:[#allocation5 + $0x560] ss:$56 sps:$4 sm:$0xff]  }
 0x22e   :  { %3616 = vmatmul.mubr.bf16.vlgmr.msra.gmra.mxu0 %v9753_v43  ;;  %v8784_v43 = vld [vmem:[#allocation8 + $0x4a8] ss:$16 sps:$4 sm:$0xff]  }
 0x22f   :  { %3487 = vmatmul.mubr.bf16.vlgmr.msra.gmra.mxu1 %v9717_v15  ;;  %5080 = vmatpush1.bf16.msra.mxu0 %v8814_v57  ;;  %v8834_v15 = vld [vmem:[#allocation5 + $0x1e0] ss:$56 sps:$4 sm:$0xff]   ;;  %v8880_v57 = vld [vmem:[#allocation5 + $0x55c] ss:$56 sps:$4 sm:$0xff]  }
 0x230   :  { %3541 = vmatpush1.bf16.msra.mxu1 %v8778_v58  ;;  %3572 = vmatprep.mubr.bf16.mxu1 %v9743_v60  ;;  %v8787_v60 = vld [vmem:[#allocation8 + $0x488] ss:$16 sps:$4 sm:$0xff]  }
 0x231   :  { %3542 = vmatprep.subr.bf16.mxu1 %v8783_v51  ;;  %5081 = vmatprep.subr.bf16.mxu0 %v8822_v59  ;;  %v8811_v58 = vld [vmem:[#allocation8 + $0x588] ss:$16 sps:$4 sm:$0xff]   ;;  %v8819_v59 = vld [vmem:[#allocation8 + $0x56c] ss:$16 sps:$4 sm:$0xff]  }
 0x232   :  { %5111 = vmatprep.mubr.bf16.mxu0 %v9762_v6  ;;  %v8888_v51 = vld [vmem:[#allocation5 + $0x4f0] ss:$56 sps:$4 sm:$0xff]  }
 0x233   :  { %5082 = vmatpush1.bf16.msra.mxu0 %v8820_v62  ;;  %v8886_v62 = vld [vmem:[#allocation5 + $0x4ec] ss:$56 sps:$4 sm:$0xff]  }
 0x234   :  { %3543 = vmatpush1.bf16.msra.mxu1 %v8781_v63  ;;  %5083 = vmatprep.subr.bf16.mxu0 %v8828_v0  ;;  %v8817_v63 = vld [vmem:[#allocation8 + $0x568] ss:$16 sps:$4 sm:$0xff]  }
 0x235   :  { %3544 = vmatprep.subr.bf16.mxu1 %v8786_v1  ;;  %v8894_v0 = vld [vmem:[#allocation5 + $0x480] ss:$56 sps:$4 sm:$0xff]  }
 0x236   :  { %v8825_v1 = vld [vmem:[#allocation8 + $0x54c] ss:$16 sps:$4 sm:$0xff]  }
 0x237   :  { %5084 = vmatpush1.bf16.msra.mxu0 %v8826_v7  ;;  %v8892_v7 = vld [vmem:[#allocation5 + $0x47c] ss:$56 sps:$4 sm:$0xff]  }
 0x238   :  { %3545 = vmatpush1.bf16.msra.mxu1 %v8784_v43  ;;  %5085 = vmatprep.subr.bf16.mxu0 %v8834_v15  ;;  %v8823_v43 = vld [vmem:[#allocation8 + $0x548] ss:$16 sps:$4 sm:$0xff]  }
 0x239   :  { %3546 = vmatprep.subr.bf16.mxu1 %v8789_v8  ;;  %v8900_v15 = vld [vmem:[#allocation5 + $0x410] ss:$56 sps:$4 sm:$0xff]  }
 0x23a   :  { %v8831_v8 = vld [vmem:[#allocation8 + $0x52c] ss:$16 sps:$4 sm:$0xff]  }
 0x23b   :  { %5086 = vmatpush1.bf16.msra.mxu0 %v8832_v10  ;;  %v8898_v10 = vld [vmem:[#allocation5 + $0x40c] ss:$56 sps:$4 sm:$0xff]  }
 0x23c   :  { %3547 = vmatpush1.bf16.msra.mxu1 %v8787_v60  ;;  %5087 = vmatprep.subr.bf16.mxu0 %v8840_v11  ;;  %v8829_v60 = vld [vmem:[#allocation8 + $0x528] ss:$16 sps:$4 sm:$0xff]  }
 0x23d   :  { %3548 = vmatprep.subr.bf16.mxu1 %v8792_v12  ;;  %v8906_v11 = vld [vmem:[#allocation5 + $0x3a0] ss:$56 sps:$4 sm:$0xff]  }
 0x23e   :  { %v8837_v12 = vld [vmem:[#allocation8 + $0x50c] ss:$16 sps:$4 sm:$0xff]  }
 0x23f   :  { %5088 = vmatpush1.bf16.msra.mxu0 %v8838_v2  ;;  %v8904_v2 = vld [vmem:[#allocation5 + $0x39c] ss:$56 sps:$4 sm:$0xff]  }
 0x240   :  { %3549 = vmatpush1.bf16.msra.mxu1 %v8790_v16  ;;  %5089 = vmatprep.subr.bf16.mxu0 %v8846_v17  ;;  %v8835_v16 = vld [vmem:[#allocation8 + $0x508] ss:$16 sps:$4 sm:$0xff]  }
 0x241   :  { %3550 = vmatprep.subr.bf16.mxu1 %v8795_v19  ;;  %v8912_v17 = vld [vmem:[#allocation5 + $0x338] ss:$56 sps:$4 sm:$0xff]  }
 0x242   :  { %v8843_v19 = vld [vmem:[#allocation5 + $0xa30] ss:$56 sps:$4 sm:$0xff]  }
 0x243   :  { %5090 = vmatpush1.bf16.msra.mxu0 %v8844_v21  ;;  %v8910_v21 = vld [vmem:[#allocation5 + $0x334] ss:$56 sps:$4 sm:$0xff]  }
 0x244   :  { %3551 = vmatpush1.bf16.msra.mxu1 %v8793_v22  ;;  %5091 = vmatprep.subr.bf16.mxu0 %v8852_v23  ;;  %v8841_v22 = vld [vmem:[#allocation5 + $0xa2c] ss:$56 sps:$4 sm:$0xff]   ;;  %v8918_v23 = vld [vmem:[#allocation5 + $0x2c8] ss:$56 sps:$4 sm:$0xff]  }
 0x245   :  { %3552 = vmatprep.subr.bf16.mxu1 %v8798_v4  ;;  %v8849_v4 = vld [vmem:[#allocation5 + $0x9c0] ss:$56 sps:$4 sm:$0xff]  }
 0x247   :  { %5092 = vmatpush1.bf16.msra.mxu0 %v8850_v5  ;;  %v9771_v5 = vld [vmem:[#allocation2] ss:$16 sps:$4 sm:$0xff]  }
 0x248   :  { %3553 = vmatpush1.bf16.msra.mxu1 %v8796_v24  ;;  %5093 = vmatprep.subr.bf16.mxu0 %v8858_v25  ;;  %v8916_v24 = vld [vmem:[#allocation5 + $0x2c4] ss:$56 sps:$4 sm:$0xff]  }
 0x249   :  { %3554 = vmatprep.subr.bf16.mxu1 %v8801_v26  ;;  %v8847_v25 = vld [vmem:[#allocation5 + $0x9bc] ss:$56 sps:$4 sm:$0xff]   ;;  %v8924_v26 = vld [vmem:[#allocation5 + $0x258] ss:$56 sps:$4 sm:$0xff]  }
 0x24b   :  { %5094 = vmatpush1.bf16.msra.mxu0 %v8856_v27  ;;  %v8855_v27 = vld [vmem:[#allocation5 + $0x950] ss:$56 sps:$4 sm:$0xff]  }
 0x24c   :  { %3555 = vmatpush1.bf16.msra.mxu1 %v8799_v48  ;;  %5095 = vmatprep.subr.bf16.mxu0 %v8864_v50  ;;  %v9775_v48 = vld [vmem:[#allocation2 + $0xc] ss:$16 sps:$4 sm:$0xff]  }
 0x24d   :  { %3556 = vmatprep.subr.bf16.mxu1 %v8804_v33  ;;  %v8922_v50 = vld [vmem:[#allocation5 + $0x254] ss:$56 sps:$4 sm:$0xff]  }
 0x24e   :  { %v3359_v38 = vpop.f32.mrf.mxu1  ;;  %v8853_v33 = vld [vmem:[#allocation5 + $0x94c] ss:$56 sps:$4 sm:$0xff]  }
 0x24f   :  { %v9765_v39 = vadd.f32 %v3359_v38, %v3316_v34  ;;  %5096 = vmatpush2.bf16.msra.mxu0 %v8862_v3  ;;  %v8861_v34 = vld [vmem:[#allocation5 + $0x8e0] ss:$56 sps:$4 sm:$0xff]   ;;  %v8928_v3 = vld [vmem:[#allocation5 + $0x1e4] ss:$56 sps:$4 sm:$0xff]  }
 0x250   :  { %3557 = vmatpush2.bf16.msra.mxu1 %v8802_v32  ;;  %v3361_v41 = vpop.f32.mrf.mxu1  ;;  %5097 = vmatprep.subr.bf16.mxu0 %v8870_v35  ;;  %v8859_v32 = vld [vmem:[#allocation5 + $0x8dc] ss:$56 sps:$4 sm:$0xff]   ;;  %v8936_v35 = vld [vmem:[#allocation5 + $0x178] ss:$56 sps:$4 sm:$0xff]   ;;  %v8865_v38 = vld [vmem:[#allocation5 + $0x86c] ss:$56 sps:$4 sm:$0xff]  }
 0x251   :  { %v9767_v45 = vadd.f32 %v3361_v41, %v3318_v37  ;;  %3558 = vmatprep.subr.bf16.mxu1 %v8807_v36  ;;  %v8867_v36 = vld [vmem:[#allocation5 + $0x870] ss:$56 sps:$4 sm:$0xff]   ;;  %v8934_v37 = vld [vmem:[#allocation5 + $0x174] ss:$56 sps:$4 sm:$0xff]   ;;  %v8873_v41 = vld [vmem:[#allocation5 + $0x800] ss:$56 sps:$4 sm:$0xff]  }
 0x252   :  { %v3363_v52 = vpop.f32.mrf.mxu1 }
 0x253   :  { %v9769_v53 = vadd.f32 %v3363_v52, %v3320_v47  ;;  %5098 = vmatpush2.bf16.msra.mxu0 %v8868_v40  ;;  %v8942_v40 = vld [vmem:[#allocation5 + $0x108] ss:$56 sps:$4 sm:$0xff]   ;;  %v8946_v52 = vld [vmem:[#allocation5 + $0x94] ss:$56 sps:$4 sm:$0xff]  }
 0x254   :  { %3559 = vmatpush2.bf16.msra.mxu1 %v8805_v42  ;;  %5099 = vmatprep.subr.bf16.mxu0 %v8876_v44  ;;  %v8940_v42 = vld [vmem:[#allocation5 + $0x104] ss:$56 sps:$4 sm:$0xff]   ;;  %v8879_v47 = vld [vmem:[#allocation5 + $0x790] ss:$56 sps:$4 sm:$0xff]  }
 0x255   :  { %3560 = vmatprep.subr.bf16.mxu1 %v8810_v46  ;;  %v8871_v44 = vld [vmem:[#allocation5 + $0x7fc] ss:$56 sps:$4 sm:$0xff]   ;;  %v8948_v46 = vld [vmem:[#allocation5 + $0x98] ss:$56 sps:$4 sm:$0xff]  }
 0x257   :  { %5100 = vmatpush2.bf16.msra.mxu0 %v8874_v18  ;;  %v8877_v18 = vld [vmem:[#allocation5 + $0x78c] ss:$56 sps:$4 sm:$0xff]  }
 0x258   :  { %3561 = vmatpush2.bf16.msra.mxu1 %v8808_v54  ;;  %5101 = vmatprep.subr.bf16.mxu0 %v8882_v55  ;;  %v8954_v54 = vld [vmem:[#allocation5 + $0x28] ss:$56 sps:$4 sm:$0xff]  }
 0x259   :  { %3562 = vmatprep.subr.bf16.mxu1 %v8813_v56  ;;  %v8885_v55 = vld [vmem:[#allocation5 + $0x720] ss:$56 sps:$4 sm:$0xff]   ;;  %v8952_v56 = vld [vmem:[#allocation5 + $0x24] ss:$56 sps:$4 sm:$0xff]  }
 0x25b   :  { %5102 = vmatpush2.bf16.msra.mxu0 %v8880_v57  ;;  %v8883_v57 = vld [vmem:[#allocation5 + $0x71c] ss:$56 sps:$4 sm:$0xff]  }
 0x25c   :  { %3563 = vmatpush2.bf16.msra.mxu1 %v8811_v58  ;;  %5103 = vmatprep.subr.bf16.mxu0 %v8888_v51  ;;  %v8960_v58 = vld [vmem:[#allocation5 + $0x6b8] ss:$56 sps:$4 sm:$0xff]  }
 0x25d   :  { %3564 = vmatprep.subr.bf16.mxu1 %v8819_v59  ;;  %v8891_v51 = vld [vmem:[#allocation5 + $0xdb0] ss:$56 sps:$4 sm:$0xff]   ;;  %v8958_v59 = vld [vmem:[#allocation5 + $0x6b4] ss:$56 sps:$4 sm:$0xff]  }
 0x25f   :  { %5104 = vmatpush2.bf16.msra.mxu0 %v8886_v62  ;;  %v3322_v62 = vpop.f32.mrf.mxu0 }
 0x260   :  { %3565 = vmatpush2.bf16.msra.mxu1 %v8817_v63  ;;  %5105 = vmatprep.subr.bf16.mxu0 %v8894_v0  ;;  %v8889_v63 = vld [vmem:[#allocation5 + $0xdac] ss:$56 sps:$4 sm:$0xff]   ;;  %v8966_v0 = vld [vmem:[#allocation5 + $0x648] ss:$56 sps:$4 sm:$0xff]  }
 0x261   :  { %3566 = vmatprep.subr.bf16.mxu1 %v8825_v1  ;;  %v8897_v1 = vld [vmem:[#allocation5 + $0xd40] ss:$56 sps:$4 sm:$0xff]  }
 0x263   :  { %5106 = vmatpush2.bf16.msra.mxu0 %v8892_v7 }
 0x264   :  { %3567 = vmatpush2.bf16.msra.mxu1 %v8823_v43  ;;  %5107 = vmatprep.subr.bf16.mxu0 %v8900_v15  ;;  %v8964_v15 = vld [vmem:[#allocation5 + $0x644] ss:$56 sps:$4 sm:$0xff]  }
 0x265   :  { %3568 = vmatprep.subr.bf16.mxu1 %v8831_v8  ;;  %v3365_v8 = vpop.f32.mrf.mxu1 }
 0x267   :  { %5108 = vmatpush2.bf16.msra.mxu0 %v8898_v10 }
 0x268   :  { %3569 = vmatpush2.bf16.msra.mxu1 %v8829_v60  ;;  %5109 = vmatprep.subr.bf16.mxu0 %v8906_v11  ;;  %v8895_v60 = vld [vmem:[#allocation5 + $0xd3c] ss:$56 sps:$4 sm:$0xff]   ;;  %v8972_v11 = vld [vmem:[#allocation5 + $0x5d8] ss:$56 sps:$4 sm:$0xff]  }
 0x269   :  { %3570 = vmatprep.subr.bf16.mxu1 %v8837_v12 }
 0x26b   :  { %5110 = vmatpush2.bf16.msra.mxu0 %v8904_v2  ;;  %v8903_v2 = vld [vmem:[#allocation5 + $0xcd0] ss:$56 sps:$4 sm:$0xff]  }
 0x26c   :  { %3571 = vmatpush2.bf16.msra.mxu1 %v8835_v16  ;;  %5165 = vmatprep.subr.bf16.mxu0 %v8912_v17  ;;  %v3366_v17 = vadd.f32 %v3365_v8, %v3322_v62  ;;  %v9026_v8 = vld [vmem:[#allocation5 + $0x1f0] ss:$56 sps:$4 sm:$0xff]  }
 0x26d   :  { %5122 = vmatprep.subr.bf16.mxu1 %v8843_v19 }
 0x26e   :  { %5112 = vmatmul.mubr.bf16.vlgmr.msra.gmra.mxu0 %v9771_v5 }
 0x26f   :  { %3573 = vmatmul.mubr.bf16.vlgmr.msra.gmra.mxu1 %v9745_v61  ;;  %5166 = vmatpush1.bf16.msra.mxu0 %v8910_v21  ;;  %v8930_v61 = vld [vmem:[#allocation5 + $0x1e8] ss:$56 sps:$4 sm:$0xff]  }
 0x270   :  { %5123 = vmatpush1.bf16.msra.mxu1 %v8841_v22  ;;  %5167 = vmatprep.subr.bf16.mxu0 %v8918_v23  ;;  %v8901_v22 = vld [vmem:[#allocation5 + $0xccc] ss:$56 sps:$4 sm:$0xff]   ;;  %v8978_v23 = vld [vmem:[#allocation5 + $0x568] ss:$56 sps:$4 sm:$0xff]  }
 0x271   :  { %5124 = vmatprep.subr.bf16.mxu1 %v8849_v4  ;;  %5154 = vmatprep.mubr.bf16.mxu1 %v9775_v48 }
 0x272   :  { %5197 = vmatprep.mubr.bf16.mxu0 %v9762_v6 }
 0x273   :  { %5168 = vmatpush1.bf16.msra.mxu0 %v8916_v24  ;;  %v8909_v24 = vld [vmem:[#allocation5 + $0xc60] ss:$56 sps:$4 sm:$0xff]  }
 0x274   :  { %5125 = vmatpush1.bf16.msra.mxu1 %v8847_v25  ;;  %5169 = vmatprep.subr.bf16.mxu0 %v8924_v26  ;;  %v8907_v25 = vld [vmem:[#allocation5 + $0xc5c] ss:$56 sps:$4 sm:$0xff]   ;;  %v8984_v26 = vld [vmem:[#allocation5 + $0x4f8] ss:$56 sps:$4 sm:$0xff]  }
 0x275   :  { %5126 = vmatprep.subr.bf16.mxu1 %v8855_v27  ;;  %v8982_v27 = vld [vmem:[#allocation5 + $0x4f4] ss:$56 sps:$4 sm:$0xff]  }
 0x277   :  { %5170 = vmatpush1.bf16.msra.mxu0 %v8922_v50  ;;  %v8913_v50 = vld [vmem:[#allocation5 + $0xbec] ss:$56 sps:$4 sm:$0xff]  }
 0x278   :  { %5127 = vmatpush1.bf16.msra.mxu1 %v8853_v33  ;;  %5171 = vmatprep.subr.bf16.mxu0 %v8930_v61  ;;  %v8990_v33 = vld [vmem:[#allocation5 + $0x488] ss:$56 sps:$4 sm:$0xff]  }
 0x279   :  { %5128 = vmatprep.subr.bf16.mxu1 %v8861_v34  ;;  %v8921_v61 = vld [vmem:[#allocation5 + $0xb80] ss:$56 sps:$4 sm:$0xff]   ;;  %v8988_v34 = vld [vmem:[#allocation5 + $0x484] ss:$56 sps:$4 sm:$0xff]  }
 0x27b   :  { %5172 = vmatpush1.bf16.msra.mxu0 %v8928_v3  ;;  %v8919_v3 = vld [vmem:[#allocation5 + $0xb7c] ss:$56 sps:$4 sm:$0xff]  }
 0x27c   :  { %5129 = vmatpush1.bf16.msra.mxu1 %v8859_v32  ;;  %5173 = vmatprep.subr.bf16.mxu0 %v8936_v35  ;;  %v8996_v32 = vld [vmem:[#allocation5 + $0x418] ss:$56 sps:$4 sm:$0xff]  }
 0x27d   :  { %5130 = vmatprep.subr.bf16.mxu1 %v8867_v36  ;;  %v8927_v35 = vld [vmem:[#allocation5 + $0xb10] ss:$56 sps:$4 sm:$0xff]   ;;  %v8994_v36 = vld [vmem:[#allocation5 + $0x414] ss:$56 sps:$4 sm:$0xff]  }
 0x27f   :  { %5174 = vmatpush1.bf16.msra.mxu0 %v8934_v37  ;;  %v8925_v37 = vld [vmem:[#allocation5 + $0xb0c] ss:$56 sps:$4 sm:$0xff]  }
 0x280   :  { %5131 = vmatpush1.bf16.msra.mxu1 %v8865_v38  ;;  %5175 = vmatprep.subr.bf16.mxu0 %v8942_v40  ;;  %v9002_v38 = vld [vmem:[#allocation5 + $0x3a8] ss:$56 sps:$4 sm:$0xff]  }
 0x281   :  { %5132 = vmatprep.subr.bf16.mxu1 %v8873_v41  ;;  %v8933_v40 = vld [vmem:[#allocation5 + $0xaa0] ss:$56 sps:$4 sm:$0xff]   ;;  %v9000_v41 = vld [vmem:[#allocation5 + $0x3a4] ss:$56 sps:$4 sm:$0xff]  }
 0x283   :  { %5176 = vmatpush1.bf16.msra.mxu0 %v8940_v42  ;;  %v8931_v42 = vld [vmem:[#allocation5 + $0xa9c] ss:$56 sps:$4 sm:$0xff]  }
 0x284   :  { %5133 = vmatpush1.bf16.msra.mxu1 %v8871_v44  ;;  %5177 = vmatprep.subr.bf16.mxu0 %v8948_v46  ;;  %v9008_v44 = vld [vmem:[#allocation5 + $0x340] ss:$56 sps:$4 sm:$0xff]  }
 0x285   :  { %5134 = vmatprep.subr.bf16.mxu1 %v8879_v47  ;;  %v8939_v46 = vld [vmem:[#allocation5 + $0xa38] ss:$56 sps:$4 sm:$0xff]   ;;  %v9006_v47 = vld [vmem:[#allocation5 + $0x33c] ss:$56 sps:$4 sm:$0xff]  }
 0x287   :  { %5178 = vmatpush1.bf16.msra.mxu0 %v8946_v52  ;;  %v8937_v52 = vld [vmem:[#allocation5 + $0xa34] ss:$56 sps:$4 sm:$0xff]  }
 0x288   :  { %5135 = vmatpush1.bf16.msra.mxu1 %v8877_v18  ;;  %5179 = vmatprep.subr.bf16.mxu0 %v8954_v54  ;;  %v9014_v18 = vld [vmem:[#allocation5 + $0x2d0] ss:$56 sps:$4 sm:$0xff]  }
 0x289   :  { %5136 = vmatprep.subr.bf16.mxu1 %v8885_v55  ;;  %v8945_v54 = vld [vmem:[#allocation5 + $0x9c8] ss:$56 sps:$4 sm:$0xff]  }
 0x28a   :  { %v9791_v55 = vld [vmem:[#allocation2 + $0x8] ss:$16 sps:$4 sm:$0xff]  }
 0x28b   :  { %5180 = vmatpush1.bf16.msra.mxu0 %v8952_v56 }
 0x28c   :  { %5137 = vmatpush1.bf16.msra.mxu1 %v8883_v57  ;;  %5181 = vmatprep.subr.bf16.mxu0 %v8960_v58  ;;  %v9012_v57 = vld [vmem:[#allocation5 + $0x2cc] ss:$56 sps:$4 sm:$0xff]  }
 0x28d   :  { %5138 = vmatprep.subr.bf16.mxu1 %v8891_v51  ;;  %v8943_v51 = vld [vmem:[#allocation5 + $0x9c4] ss:$56 sps:$4 sm:$0xff]  }
 0x28e   :  { %v3402_v7 = vpop.f32.mrf.mxu0 }
 0x28f   :  { %v9780_v43 = vadd.f32 %v3402_v7, %v9765_v39  ;;  %5182 = vmatpush2.bf16.msra.mxu0 %v8958_v59  ;;  %v8970_v39 = vld [vmem:[#allocation5 + $0x5d4] ss:$56 sps:$4 sm:$0xff]   ;;  %v9020_v59 = vld [vmem:[#allocation5 + $0x260] ss:$56 sps:$4 sm:$0xff]  }
 0x290   :  { %5139 = vmatpush2.bf16.msra.mxu1 %v8889_v63  ;;  %v3404_v10 = vpop.f32.mrf.mxu0  ;;  %5183 = vmatprep.subr.bf16.mxu0 %v8966_v0  ;;  %v8951_v63 = vld [vmem:[#allocation5 + $0x958] ss:$56 sps:$4 sm:$0xff]   ;;  %v9018_v7 = vld [vmem:[#allocation5 + $0x25c] ss:$56 sps:$4 sm:$0xff]  }
 0x291   :  { %v9783_v12 = vadd.f32 %v3404_v10, %v9767_v45  ;;  %5140 = vmatprep.subr.bf16.mxu1 %v8897_v1  ;;  %v8976_v45 = vld [vmem:[#allocation5 + $0x564] ss:$56 sps:$4 sm:$0xff]  }
 0x292   :  { %v3406_v16 = vpop.f32.mrf.mxu0 }
 0x293   :  { %v9786_v19 = vadd.f32 %v3406_v16, %v9769_v53  ;;  %5184 = vmatpush2.bf16.msra.mxu0 %v8964_v15  ;;  %v8915_v53 = vld [vmem:[#allocation5 + $0xbf0] ss:$56 sps:$4 sm:$0xff]   ;;  %v8949_v15 = vld [vmem:[#allocation5 + $0x954] ss:$56 sps:$4 sm:$0xff]   ;;  %v9032_v16 = vld [vmem:[#allocation5 + $0x180] ss:$56 sps:$4 sm:$0xff]  }
 0x294   :  { %5141 = vmatpush2.bf16.msra.mxu1 %v8895_v60  ;;  %v3408_v21 = vpop.f32.mrf.mxu0  ;;  %5185 = vmatprep.subr.bf16.mxu0 %v8972_v11  ;;  %v8957_v60 = vld [vmem:[#allocation5 + $0x8e8] ss:$56 sps:$4 sm:$0xff]  }
 0x295   :  { %v9788_v4 = vadd.f32 %v3408_v21, %v3366_v17  ;;  %5142 = vmatprep.subr.bf16.mxu1 %v8903_v2  ;;  %v8955_v2 = vld [vmem:[#allocation5 + $0x8e4] ss:$56 sps:$4 sm:$0xff]   ;;  %v8963_v17 = vld [vmem:[#allocation5 + $0x878] ss:$56 sps:$4 sm:$0xff]  }
 0x296   :  { %v9038_v21 = vld [vmem:[#allocation5 + $0x110] ss:$56 sps:$4 sm:$0xff]  }
 0x297   :  { %5186 = vmatpush2.bf16.msra.mxu0 %v8970_v39  ;;  %v8961_v39 = vld [vmem:[#allocation5 + $0x874] ss:$56 sps:$4 sm:$0xff]  }
 0x298   :  { %5143 = vmatpush2.bf16.msra.mxu1 %v8901_v22  ;;  %5187 = vmatprep.subr.bf16.mxu0 %v8978_v23  ;;  %v8969_v22 = vld [vmem:[#allocation5 + $0x808] ss:$56 sps:$4 sm:$0xff]   ;;  %v9036_v23 = vld [vmem:[#allocation5 + $0x10c] ss:$56 sps:$4 sm:$0xff]  }
 0x299   :  { %5144 = vmatprep.subr.bf16.mxu1 %v8909_v24  ;;  %v9044_v24 = vld [vmem:[#allocation5 + $0xa0] ss:$56 sps:$4 sm:$0xff]  }
 0x29b   :  { %5188 = vmatpush2.bf16.msra.mxu0 %v8976_v45  ;;  %v8975_v45 = vld [vmem:[#allocation5 + $0x798] ss:$56 sps:$4 sm:$0xff]  }
 0x29c   :  { %5145 = vmatpush2.bf16.msra.mxu1 %v8907_v25  ;;  %5189 = vmatprep.subr.bf16.mxu0 %v8984_v26  ;;  %v9042_v25 = vld [vmem:[#allocation5 + $0x9c] ss:$56 sps:$4 sm:$0xff]  }
 0x29d   :  { %5146 = vmatprep.subr.bf16.mxu1 %v8915_v53  ;;  %v8973_v26 = vld [vmem:[#allocation5 + $0x794] ss:$56 sps:$4 sm:$0xff]   ;;  %v9050_v53 = vld [vmem:[#allocation5 + $0x30] ss:$56 sps:$4 sm:$0xff]  }
 0x29f   :  { %5190 = vmatpush2.bf16.msra.mxu0 %v8982_v27  ;;  %v8981_v27 = vld [vmem:[#allocation5 + $0x728] ss:$56 sps:$4 sm:$0xff]  }
 0x2a0   :  { %5147 = vmatpush2.bf16.msra.mxu1 %v8913_v50  ;;  %5191 = vmatprep.subr.bf16.mxu0 %v8990_v33  ;;  %v9048_v50 = vld [vmem:[#allocation5 + $0x2c] ss:$56 sps:$4 sm:$0xff]  }
 0x2a1   :  { %5148 = vmatprep.subr.bf16.mxu1 %v8921_v61  ;;  %v8979_v33 = vld [vmem:[#allocation5 + $0x724] ss:$56 sps:$4 sm:$0xff]   ;;  %v9056_v61 = vld [vmem:[#allocation5 + $0x6c0] ss:$56 sps:$4 sm:$0xff]  }
 0x2a3   :  { %5192 = vmatpush2.bf16.msra.mxu0 %v8988_v34  ;;  %v8987_v34 = vld [vmem:[#allocation5 + $0xdb8] ss:$56 sps:$4 sm:$0xff]  }
 0x2a4   :  { %5149 = vmatpush2.bf16.msra.mxu1 %v8919_v3  ;;  %5193 = vmatprep.subr.bf16.mxu0 %v8996_v32  ;;  %v9054_v3 = vld [vmem:[#allocation5 + $0x6bc] ss:$56 sps:$4 sm:$0xff]  }
 0x2a5   :  { %5150 = vmatprep.subr.bf16.mxu1 %v8927_v35  ;;  %v8985_v32 = vld [vmem:[#allocation5 + $0xdb4] ss:$56 sps:$4 sm:$0xff]   ;;  %v9062_v35 = vld [vmem:[#allocation5 + $0x650] ss:$56 sps:$4 sm:$0xff]  }
 0x2a7   :  { %5194 = vmatpush2.bf16.msra.mxu0 %v8994_v36  ;;  %v8993_v36 = vld [vmem:[#allocation5 + $0xd48] ss:$56 sps:$4 sm:$0xff]  }
 0x2a8   :  { %5151 = vmatpush2.bf16.msra.mxu1 %v8925_v37  ;;  %5195 = vmatprep.subr.bf16.mxu0 %v9002_v38  ;;  %v9060_v37 = vld [vmem:[#allocation5 + $0x64c] ss:$56 sps:$4 sm:$0xff]  }
 0x2a9   :  { %5152 = vmatprep.subr.bf16.mxu1 %v8933_v40  ;;  %v8991_v38 = vld [vmem:[#allocation5 + $0xd44] ss:$56 sps:$4 sm:$0xff]   ;;  %v9068_v40 = vld [vmem:[#allocation5 + $0x5e0] ss:$56 sps:$4 sm:$0xff]  }
 0x2ab   :  { %5196 = vmatpush2.bf16.msra.mxu0 %v9000_v41  ;;  %v8999_v41 = vld [vmem:[#allocation5 + $0xcd8] ss:$56 sps:$4 sm:$0xff]  }
 0x2ac   :  { %5153 = vmatpush2.bf16.msra.mxu1 %v8931_v42  ;;  %5251 = vmatprep.subr.bf16.mxu0 %v9008_v44  ;;  %v9066_v42 = vld [vmem:[#allocation5 + $0x5dc] ss:$56 sps:$4 sm:$0xff]  }
 0x2ad   :  { %5208 = vmatprep.subr.bf16.mxu1 %v8939_v46  ;;  %v8997_v44 = vld [vmem:[#allocation5 + $0xcd4] ss:$56 sps:$4 sm:$0xff]   ;;  %v9074_v46 = vld [vmem:[#allocation5 + $0x570] ss:$56 sps:$4 sm:$0xff]  }
 0x2ae   :  { %5198 = vmatmul.mubr.bf16.vlgmr.msra.gmra.mxu0 %v9771_v5 }
 0x2af   :  { %5155 = vmatmul.mubr.bf16.vlgmr.msra.gmra.mxu1 %v9791_v55  ;;  %v3445_v56 = vpop.f32.mrf.mxu1  ;;  %5252 = vmatpush1.bf16.msra.mxu0 %v9006_v47  ;;  %v9005_v47 = vld [vmem:[#allocation5 + $0xc68] ss:$56 sps:$4 sm:$0xff]  }
 0x2b0   :  { %v9795_v58 = vadd.f32 %v3445_v56, %v9780_v43  ;;  %5209 = vmatpush1.bf16.msra.mxu1 %v8937_v52  ;;  %5253 = vmatprep.subr.bf16.mxu0 %v9014_v18  ;;  %v9072_v52 = vld [vmem:[#allocation5 + $0x56c] ss:$56 sps:$4 sm:$0xff]   ;;  %v9011_v56 = vld [vmem:[#allocation5 + $0xbf8] ss:$56 sps:$4 sm:$0xff]  }
 0x2b1   :  { %v3447_v62 = vpop.f32.mrf.mxu1  ;;  %5210 = vmatprep.subr.bf16.mxu1 %v8945_v54  ;;  %5240 = vmatprep.mubr.bf16.mxu1 %v9775_v48  ;;  %v9003_v18 = vld [vmem:[#allocation5 + $0xc64] ss:$56 sps:$4 sm:$0xff]   ;;  %v9080_v54 = vld [vmem:[#allocation5 + $0x500] ss:$56 sps:$4 sm:$0xff]  }
 0x2b2   :  { %v9799_v0 = vadd.f32 %v3447_v62, %v9783_v12  ;;  %5283 = vmatprep.mubr.bf16.mxu0 %v9762_v6  ;;  %v9024_v12 = vld [vmem:[#allocation5 + $0x1ec] ss:$56 sps:$4 sm:$0xff]   ;;  %v9017_v62 = vld [vmem:[#allocation5 + $0xb88] ss:$56 sps:$4 sm:$0xff]  }
 0x2b3   :  { %v3449_v1 = vpop.f32.mrf.mxu1  ;;  %5254 = vmatpush1.bf16.msra.mxu0 %v9012_v57  ;;  %v9078_v57 = vld [vmem:[#allocation5 + $0x4fc] ss:$56 sps:$4 sm:$0xff]  }
 0x2b4   :  { %v9803_v43 = vadd.f32 %v3449_v1, %v9786_v19  ;;  %5211 = vmatpush1.bf16.msra.mxu1 %v8943_v51  ;;  %5255 = vmatprep.subr.bf16.mxu0 %v9020_v59  ;;  %v9030_v19 = vld [vmem:[#allocation5 + $0x17c] ss:$56 sps:$4 sm:$0xff]   ;;  %v9086_v59 = vld [vmem:[#allocation5 + $0x490] ss:$56 sps:$4 sm:$0xff]  }
 0x2b5   :  { %v3451_v10 = vpop.f32.mrf.mxu1  ;;  %5212 = vmatprep.subr.bf16.mxu1 %v8951_v63  ;;  %v9009_v51 = vld [vmem:[#allocation5 + $0xbf4] ss:$56 sps:$4 sm:$0xff]   ;;  %v9015_v1 = vld [vmem:[#allocation5 + $0xb84] ss:$56 sps:$4 sm:$0xff]  }
 0x2b6   :  { %v9806_v11 = vadd.f32 %v3451_v10, %v9788_v4  ;;  %v8967_v4 = vld [vmem:[#allocation5 + $0x804] ss:$56 sps:$4 sm:$0xff]   ;;  %v9021_v10 = vld [vmem:[#allocation5 + $0xb14] ss:$56 sps:$4 sm:$0xff]  }
 0x2b7   :  { %5256 = vmatpush1.bf16.msra.mxu0 %v9018_v7  ;;  %v9084_v63 = vld [vmem:[#allocation5 + $0x48c] ss:$56 sps:$4 sm:$0xff]   ;;  %v9092_v7 = vld [vmem:[#allocation5 + $0x420] ss:$56 sps:$4 sm:$0xff]  }
 0x2b8   :  { %5213 = vmatpush1.bf16.msra.mxu1 %v8949_v15  ;;  %5257 = vmatprep.subr.bf16.mxu0 %v9026_v8  ;;  %v9023_v15 = vld [vmem:[#allocation5 + $0xb18] ss:$56 sps:$4 sm:$0xff]   ;;  %v9090_v8 = vld [vmem:[#allocation5 + $0x41c] ss:$56 sps:$4 sm:$0xff]  }
 0x2b9   :  { %5214 = vmatprep.subr.bf16.mxu1 %v8957_v60  ;;  %v9098_v60 = vld [vmem:[#allocation5 + $0x3b0] ss:$56 sps:$4 sm:$0xff]  }
 0x2bb   :  { %5258 = vmatpush1.bf16.msra.mxu0 %v9024_v12  ;;  %v9029_v12 = vld [vmem:[#allocation5 + $0xaa8] ss:$56 sps:$4 sm:$0xff]  }
 0x2bc   :  { %5215 = vmatpush1.bf16.msra.mxu1 %v8955_v2  ;;  %5259 = vmatprep.subr.bf16.mxu0 %v9032_v16  ;;  %v9096_v2 = vld [vmem:[#allocation5 + $0x3ac] ss:$56 sps:$4 sm:$0xff]  }
 0x2bd   :  { %5216 = vmatprep.subr.bf16.mxu1 %v8963_v17  ;;  %v9027_v16 = vld [vmem:[#allocation5 + $0xaa4] ss:$56 sps:$4 sm:$0xff]  }
 0x2be   :  { %v9102_v17 = vld [vmem:[#allocation5 + $0x6c4] ss:$56 sps:$4 sm:$0xff]  }
 0x2bf   :  { %5260 = vmatpush1.bf16.msra.mxu0 %v9030_v19 }
 0x2c0   :  { %5217 = vmatpush1.bf16.msra.mxu1 %v8961_v39  ;;  %5261 = vmatprep.subr.bf16.mxu0 %v9038_v21  ;;  %v9035_v39 = vld [vmem:[#allocation5 + $0xa40] ss:$56 sps:$4 sm:$0xff]   ;;  %v9103_v21 = vld [vmem:[#allocation5 + $0x344] ss:$56 sps:$4 sm:$0xff]  }
 0x2c1   :  { %5218 = vmatprep.subr.bf16.mxu1 %v8969_v22  ;;  %v9033_v22 = vld [vmem:[#allocation5 + $0xa3c] ss:$56 sps:$4 sm:$0xff]  }
 0x2c3   :  { %5262 = vmatpush1.bf16.msra.mxu0 %v9036_v23  ;;  %v9107_v23 = vld [vmem:[#allocation5 + $0x654] ss:$56 sps:$4 sm:$0xff]  }
 0x2c4   :  { %5219 = vmatpush1.bf16.msra.mxu1 %v8967_v4  ;;  %5263 = vmatprep.subr.bf16.mxu0 %v9044_v24  ;;  %v9041_v24 = vld [vmem:[#allocation5 + $0x9d0] ss:$56 sps:$4 sm:$0xff]  }
 0x2c5   :  { %5220 = vmatprep.subr.bf16.mxu1 %v8975_v45 }
 0x2c7   :  { %5264 = vmatpush1.bf16.msra.mxu0 %v9042_v25  ;;  %v9108_v25 = vld [vmem:[#allocation5 + $0x2d4] ss:$56 sps:$4 sm:$0xff]  }
 0x2c8   :  { %5221 = vmatpush1.bf16.msra.mxu1 %v8973_v26  ;;  %5265 = vmatprep.subr.bf16.mxu0 %v9050_v53  ;;  %v9039_v53 = vld [vmem:[#allocation5 + $0x9cc] ss:$56 sps:$4 sm:$0xff]  }
 0x2c9   :  { %5222 = vmatprep.subr.bf16.mxu1 %v8981_v27  ;;  %v9112_v27 = vld [vmem:[#allocation5 + $0x5e4] ss:$56 sps:$4 sm:$0xff]  }
 0x2cb   :  { %5266 = vmatpush1.bf16.msra.mxu0 %v9048_v50 }
 0x2cc   :  { %5223 = vmatpush1.bf16.msra.mxu1 %v8979_v33  ;;  %5267 = vmatprep.subr.bf16.mxu0 %v9056_v61  ;;  %v9047_v61 = vld [vmem:[#allocation5 + $0x960] ss:$56 sps:$4 sm:$0xff]  }
 0x2cd   :  { %5224 = vmatprep.subr.bf16.mxu1 %v8987_v34 }
 0x2ce   :  { %v3531_v19 = vpop.f32.mrf.mxu0 }
 0x2cf   :  { %5268 = vmatpush2.bf16.msra.mxu0 %v9054_v3 }
 0x2d0   :  { %5225 = vmatpush2.bf16.msra.mxu1 %v8985_v32  ;;  %5269 = vmatprep.subr.bf16.mxu0 %v9062_v35  ;;  %v3533_v4 = vpop.f32.mrf.mxu0  ;;  %v9113_v32 = vld [vmem:[#allocation5 + $0x264] ss:$56 sps:$4 sm:$0xff]  }
 0x2d1   :  { %5226 = vmatprep.subr.bf16.mxu1 %v8993_v36  ;;  %v9045_v36 = vld [vmem:[#allocation5 + $0x95c] ss:$56 sps:$4 sm:$0xff]  }
 0x2d2   :  { %v3535_v50 = vpop.f32.mrf.mxu0 }
 0x2d3   :  { %5270 = vmatpush2.bf16.msra.mxu0 %v9060_v37  ;;  %v9117_v37 = vld [vmem:[#allocation5 + $0x574] ss:$56 sps:$4 sm:$0xff]  }
 0x2d4   :  { %5227 = vmatpush2.bf16.msra.mxu1 %v8991_v38  ;;  %5271 = vmatprep.subr.bf16.mxu0 %v9068_v40  ;;  %v3537_v38 = vpop.f32.mrf.mxu0 }
 0x2d5   :  { %5228 = vmatprep.subr.bf16.mxu1 %v8999_v41  ;;  %v9053_v41 = vld [vmem:[#allocation5 + $0x8f0] ss:$56 sps:$4 sm:$0xff]  }
 0x2d7   :  { %5272 = vmatpush2.bf16.msra.mxu0 %v9066_v42 }
 0x2d8   :  { %5229 = vmatpush2.bf16.msra.mxu1 %v8997_v44  ;;  %5273 = vmatprep.subr.bf16.mxu0 %v9074_v46  ;;  %v9118_v44 = vld [vmem:[#allocation5 + $0x1f4] ss:$56 sps:$4 sm:$0xff]  }
 0x2d9   :  { %5230 = vmatprep.subr.bf16.mxu1 %v9005_v47  ;;  %v9051_v46 = vld [vmem:[#allocation5 + $0x8ec] ss:$56 sps:$4 sm:$0xff]   ;;  %v9059_v47 = vld [vmem:[#allocation5 + $0x880] ss:$56 sps:$4 sm:$0xff]  }
 0x2db   :  { %5274 = vmatpush2.bf16.msra.mxu0 %v9072_v52  ;;  %v9123_v52 = vld [vmem:[#allocation5 + $0x184] ss:$56 sps:$4 sm:$0xff]  }
 0x2dc   :  { %5231 = vmatpush2.bf16.msra.mxu1 %v9003_v18  ;;  %5275 = vmatprep.subr.bf16.mxu0 %v9080_v54  ;;  %v9057_v18 = vld [vmem:[#allocation5 + $0x87c] ss:$56 sps:$4 sm:$0xff]  }
 0x2dd   :  { %5232 = vmatprep.subr.bf16.mxu1 %v9011_v56  ;;  %v9126_v54 = vld [vmem:[#allocation5 + $0x494] ss:$56 sps:$4 sm:$0xff]   ;;  %v9065_v56 = vld [vmem:[#allocation5 + $0x810] ss:$56 sps:$4 sm:$0xff]  }
 0x2df   :  { %5276 = vmatpush2.bf16.msra.mxu0 %v9078_v57  ;;  %v9127_v57 = vld [vmem:[#allocation5 + $0x114] ss:$56 sps:$4 sm:$0xff]  }
 0x2e0   :  { %5233 = vmatpush2.bf16.msra.mxu1 %v9009_v51  ;;  %5277 = vmatprep.subr.bf16.mxu0 %v9086_v59  ;;  %v9063_v51 = vld [vmem:[#allocation5 + $0x80c] ss:$56 sps:$4 sm:$0xff]  }
 0x2e1   :  { %5234 = vmatprep.subr.bf16.mxu1 %v9017_v62  ;;  %v9130_v59 = vld [vmem:[#allocation5 + $0x424] ss:$56 sps:$4 sm:$0xff]   ;;  %v9071_v62 = vld [vmem:[#allocation5 + $0x7a0] ss:$56 sps:$4 sm:$0xff]  }
 0x2e3   :  { %5278 = vmatpush2.bf16.msra.mxu0 %v9084_v63  ;;  %v9131_v63 = vld [vmem:[#allocation5 + $0xa4] ss:$56 sps:$4 sm:$0xff]  }
 0x2e4   :  { %5235 = vmatpush2.bf16.msra.mxu1 %v9015_v1  ;;  %5279 = vmatprep.subr.bf16.mxu0 %v9092_v7  ;;  %v9069_v1 = vld [vmem:[#allocation5 + $0x79c] ss:$56 sps:$4 sm:$0xff]  }
 0x2e5   :  { %5236 = vmatprep.subr.bf16.mxu1 %v9023_v15  ;;  %v9134_v7 = vld [vmem:[#allocation5 + $0x3b4] ss:$56 sps:$4 sm:$0xff]   ;;  %v9077_v15 = vld [vmem:[#allocation5 + $0x730] ss:$56 sps:$4 sm:$0xff]  }
 0x2e7   :  { %5280 = vmatpush2.bf16.msra.mxu0 %v9090_v8  ;;  %v9135_v8 = vld [vmem:[#allocation5 + $0x34] ss:$56 sps:$4 sm:$0xff]  }
 0x2e8   :  { %5237 = vmatpush2.bf16.msra.mxu1 %v9021_v10  ;;  %5281 = vmatprep.subr.bf16.mxu0 %v9098_v60  ;;  %v9075_v10 = vld [vmem:[#allocation5 + $0x72c] ss:$56 sps:$4 sm:$0xff]  }
 0x2e9   :  { %5238 = vmatprep.subr.bf16.mxu1 %v9029_v12  ;;  %v9140_v60 = vld [vmem:[#allocation8 + $0x7e4] ss:$16 sps:$4 sm:$0xff]  }
 0x2ea   :  { %v9083_v12 = vld [vmem:[#allocation5 + $0xdc0] ss:$56 sps:$4 sm:$0xff]  }
 0x2eb   :  { %5282 = vmatpush2.bf16.msra.mxu0 %v9096_v2  ;;  %v9138_v2 = vld [vmem:[#allocation8 + $0x7e0] ss:$16 sps:$4 sm:$0xff]  }
 0x2ec   :  { %5239 = vmatpush2.bf16.msra.mxu1 %v9027_v16  ;;  %8107 = vmatprep.subr.bf16.mxu0 %v9102_v17  ;;  %v9081_v16 = vld [vmem:[#allocation5 + $0xdbc] ss:$56 sps:$4 sm:$0xff]  }
 0x2ed   :  { %5294 = vmatprep.subr.bf16.mxu1 %v9035_v39  ;;  %v9145_v17 = vld [vmem:[#allocation8 + $0x7c4] ss:$16 sps:$4 sm:$0xff]   ;;  %v9143_v39 = vld [vmem:[#allocation8 + $0x7c0] ss:$16 sps:$4 sm:$0xff]  }
 0x2ee   :  { %5284 = vmatmul.mubr.bf16.vlgmr.msra.gmra.mxu0 %v9771_v5 }
 0x2ef   :  { %v3488_v45 = vpop.f32.mrf.mxu1  ;;  %5241 = vmatmul.mubr.bf16.vlgmr.msra.gmra.mxu1 %v9791_v55  ;;  %8108 = vmatpush3.bf16.msra.mxu0 %v9103_v21  ;;  %v9087_v21 = vld [vmem:[#allocation5 + $0xd4c] ss:$56 sps:$4 sm:$0xff]  }
 0x2f0   :  { %v9810_v26 = vadd.f32 %v3531_v19, %v3488_v45  ;;  %5295 = vmatpush1.bf16.msra.mxu1 %v9033_v22  ;;  %8109 = vmatprep.subr.bf16.mxu0 %v9107_v23  ;;  %v9089_v19 = vld [vmem:[#allocation5 + $0xd50] ss:$56 sps:$4 sm:$0xff]   ;;  %v9095_v23 = vld [vmem:[#allocation5 + $0xce0] ss:$56 sps:$4 sm:$0xff]  }
 0x2f1   :  { %v3490_v33 = vpop.f32.mrf.mxu1  ;;  %5296 = vmatprep.subr.bf16.mxu1 %v9041_v24  ;;  %5326 = vmatprep.mubr.bf16.mxu1 %v9775_v48  ;;  %v9150_v22 = vld [vmem:[#allocation8 + $0x7a4] ss:$16 sps:$4 sm:$0xff]  }
 0x2f2   :  { %v9813_v34 = vadd.f32 %v3533_v4, %v3490_v33  ;;  %5369 = vmatprep.mubr.bf16.mxu0 %v9762_v6  ;;  %v9122_v6 = vld [vmem:[#allocation5 + $0x504] ss:$56 sps:$4 sm:$0xff]  }
 0x2f3   :  { %v3492_v3 = vpop.f32.mrf.mxu1  ;;  %8110 = vmatpush3.bf16.msra.mxu0 %v9108_v25  ;;  %v9148_v4 = vld [vmem:[#allocation8 + $0x7a0] ss:$16 sps:$4 sm:$0xff]   ;;  %v9155_v45 = vld [vmem:[#allocation8 + $0x784] ss:$16 sps:$4 sm:$0xff]  }
 0x2f4   :  { %v9816_v35 = vadd.f32 %v3535_v50, %v3492_v3  ;;  %5297 = vmatpush1.bf16.msra.mxu1 %v9039_v53  ;;  %8111 = vmatprep.subr.bf16.mxu0 %v9112_v27  ;;  %v9093_v24 = vld [vmem:[#allocation5 + $0xcdc] ss:$56 sps:$4 sm:$0xff]   ;;  %v9101_v25 = vld [vmem:[#allocation5 + $0xc70] ss:$56 sps:$4 sm:$0xff]   ;;  %v9106_v50 = vld [vmem:[#allocation5 + $0xc00] ss:$56 sps:$4 sm:$0xff]  }
 0x2f5   :  { %v3494_v40 = vpop.f32.mrf.mxu1  ;;  %5298 = vmatprep.subr.bf16.mxu1 %v9047_v61  ;;  %v9153_v53 = vld [vmem:[#allocation8 + $0x780] ss:$16 sps:$4 sm:$0xff]   ;;  %v9160_v27 = vld [vmem:[#allocation8 + $0x764] ss:$16 sps:$4 sm:$0xff]  }
 0x2f6   :  { %v9818_v42 = vadd.f32 %v3537_v38, %v3494_v40  ;;  %v9158_v33 = vld [vmem:[#allocation8 + $0x760] ss:$16 sps:$4 sm:$0xff]   ;;  %v9163_v3 = vld [vmem:[#allocation8 + $0x744] ss:$16 sps:$4 sm:$0xff]  }
 0x2f7   :  { %8112 = vmatpush3.bf16.msra.mxu0 %v9113_v32  ;;  %v9104_v61 = vld [vmem:[#allocation5 + $0xbfc] ss:$56 sps:$4 sm:$0xff]   ;;  %v9111_v32 = vld [vmem:[#allocation5 + $0xb90] ss:$56 sps:$4 sm:$0xff]   ;;  %v9116_v40 = vld [vmem:[#allocation5 + $0xb20] ss:$56 sps:$4 sm:$0xff]  }
 0x2f8   :  { %5299 = vmatpush1.bf16.msra.mxu1 %v9045_v36  ;;  %8113 = vmatprep.subr.bf16.mxu0 %v9117_v37  ;;  %v9161_v36 = vld [vmem:[#allocation8 + $0x740] ss:$16 sps:$4 sm:$0xff]   ;;  %v9166_v38 = vld [vmem:[#allocation8 + $0x724] ss:$16 sps:$4 sm:$0xff]  }
 0x2f9   :  { %5300 = vmatprep.subr.bf16.mxu1 %v9053_v41  ;;  %v9109_v37 = vld [vmem:[#allocation5 + $0xb8c] ss:$56 sps:$4 sm:$0xff]  }
 0x2fa   :  { %v9164_v41 = vld [vmem:[#allocation8 + $0x720] ss:$16 sps:$4 sm:$0xff]  }
 0x2fb   :  { %8114 = vmatpush3.bf16.msra.mxu0 %v9118_v44  ;;  %v9114_v44 = vld [vmem:[#allocation5 + $0xb1c] ss:$56 sps:$4 sm:$0xff]  }
 0x2fc   :  { %5301 = vmatpush1.bf16.msra.mxu1 %v9051_v46  ;;  %8115 = vmatprep.subr.bf16.mxu0 %v9122_v6  ;;  %v9169_v46 = vld [vmem:[#allocation8 + $0x704] ss:$16 sps:$4 sm:$0xff]  }
 0x2fd   :  { %5302 = vmatprep.subr.bf16.mxu1 %v9059_v47  ;;  %v9121_v6 = vld [vmem:[#allocation5 + $0xab0] ss:$56 sps:$4 sm:$0xff]  }
 0x2fe   :  { %v9167_v47 = vld [vmem:[#allocation8 + $0x700] ss:$16 sps:$4 sm:$0xff]  }
 0x2ff   :  { %8116 = vmatpush3.bf16.msra.mxu0 %v9123_v52  ;;  %v9119_v52 = vld [vmem:[#allocation5 + $0xaac] ss:$56 sps:$4 sm:$0xff]  }
 0x300   :  { %5303 = vmatpush1.bf16.msra.mxu1 %v9057_v18  ;;  %8117 = vmatprep.subr.bf16.mxu0 %v9126_v54  ;;  %v9172_v18 = vld [vmem:[#allocation8 + $0x8e4] ss:$16 sps:$4 sm:$0xff]  }
 0x301   :  { %5304 = vmatprep.subr.bf16.mxu1 %v9065_v56  ;;  %v9124_v54 = vld [vmem:[#allocation5 + $0xdc4] ss:$56 sps:$4 sm:$0xff]   ;;  %v9821_v56 = vpop.f32.mrf.mxu0 }
 0x303   :  { %8118 = vmatpush3.bf16.msra.mxu0 %v9127_v57  ;;  %v9170_v57 = vld [vmem:[#allocation8 + $0x8e0] ss:$16 sps:$4 sm:$0xff]  }
 0x304   :  { %5305 = vmatpush1.bf16.msra.mxu1 %v9063_v51  ;;  %8119 = vmatprep.subr.bf16.mxu0 %v9130_v59  ;;  %v9125_v51 = vld [vmem:[#allocation5 + $0xa44] ss:$56 sps:$4 sm:$0xff]   ;;  %v9128_v59 = vld [vmem:[#allocation5 + $0xd54] ss:$56 sps:$4 sm:$0xff]  }
 0x305   :  { %5306 = vmatprep.subr.bf16.mxu1 %v9071_v62  ;;  %v9175_v62 = vld [vmem:[#allocation8 + $0x8c4] ss:$16 sps:$4 sm:$0xff]  }
 0x307   :  { %8120 = vmatpush3.bf16.msra.mxu0 %v9131_v63  ;;  %v9823_v63 = vpop.f32.mrf.mxu0 }
 0x308   :  { %5307 = vmatpush1.bf16.msra.mxu1 %v9069_v1  ;;  %8121 = vmatprep.subr.bf16.mxu0 %v9134_v7  ;;  %v9173_v7 = vld [vmem:[#allocation8 + $0x8c0] ss:$16 sps:$4 sm:$0xff]  }
 0x309   :  { %5308 = vmatprep.subr.bf16.mxu1 %v9077_v15 }
 0x30b   :  { %8122 = vmatpush3.bf16.msra.mxu0 %v9135_v8  ;;  %v9129_v8 = vld [vmem:[#allocation5 + $0x9d4] ss:$56 sps:$4 sm:$0xff]  }
 0x30c   :  { %5309 = vmatpush1.bf16.msra.mxu1 %v9075_v10  ;;  %6784 = vmatprep.subr.bf16.mxu0 %v9140_v60  ;;  %v9178_v10 = vld [vmem:[#allocation8 + $0x8a4] ss:$16 sps:$4 sm:$0xff]  }
 0x30d   :  { %5310 = vmatprep.subr.bf16.mxu1 %v9083_v12  ;;  %v9132_v12 = vld [vmem:[#allocation5 + $0xce4] ss:$56 sps:$4 sm:$0xff]  }
 0x30e   :  { %5370 = vmatmul.mubr.bf16.vlgmr.msra.gmra.mxu0 %v9771_v5  ;;  %v9099_v5 = vld [vmem:[#allocation5 + $0xc6c] ss:$56 sps:$4 sm:$0xff]  }
 0x30f   :  { %6785 = vmatpush1.bf16.msra.mxu0 %v9138_v2 }
 0x310   :  { %5311 = vmatpush2.bf16.msra.mxu1 %v9081_v16  ;;  %6786 = vmatprep.subr.bf16.mxu0 %v9145_v17  ;;  %v9833_v16 = vpop.f32.mrf.mxu0 }
 0x311   :  { %5312 = vmatprep.subr.bf16.mxu1 %v9089_v19  ;;  %v9176_v19 = vld [vmem:[#allocation8 + $0x8a0] ss:$16 sps:$4 sm:$0xff]  }
 0x313   :  { %6787 = vmatpush1.bf16.msra.mxu0 %v9143_v39  ;;  %v9133_v39 = vld [vmem:[#allocation5 + $0x964] ss:$56 sps:$4 sm:$0xff]  }
 0x314   :  { %5313 = vmatpush2.bf16.msra.mxu1 %v9087_v21  ;;  %6788 = vmatprep.subr.bf16.mxu0 %v9150_v22  ;;  %v9136_v22 = vld [vmem:[#allocation5 + $0xc74] ss:$56 sps:$4 sm:$0xff]  }
 0x315   :  { %5314 = vmatprep.subr.bf16.mxu1 %v9095_v23 }
 0x317   :  { %6789 = vmatpush1.bf16.msra.mxu0 %v9148_v4  ;;  %v3623_v4 = vpop.f32.mrf.mxu0 }
 0x318   :  { %5315 = vmatpush2.bf16.msra.mxu1 %v9093_v24  ;;  %6790 = vmatprep.subr.bf16.mxu0 %v9155_v45  ;;  %v9137_v45 = vld [vmem:[#allocation5 + $0x8f4] ss:$56 sps:$4 sm:$0xff]  }
 0x319   :  { %5316 = vmatprep.subr.bf16.mxu1 %v9101_v25  ;;  %v9184_v25 = vld [vmem:[#allocation8 + $0x864] ss:$16 sps:$4 sm:$0xff]  }
 0x31b   :  { %6791 = vmatpush1.bf16.msra.mxu0 %v9153_v53  ;;  %v9182_v53 = vld [vmem:[#allocation8 + $0x860] ss:$16 sps:$4 sm:$0xff]  }
 0x31c   :  { %5317 = vmatpush2.bf16.msra.mxu1 %v9099_v5  ;;  %6792 = vmatprep.subr.bf16.mxu0 %v9160_v27  ;;  %v9142_v5 = vld [vmem:[#allocation5 + $0x884] ss:$56 sps:$4 sm:$0xff]  }
 0x31d   :  { %5318 = vmatprep.subr.bf16.mxu1 %v9106_v50  ;;  %v9187_v27 = vld [vmem:[#allocation8 + $0x844] ss:$16 sps:$4 sm:$0xff]  }
 0x31e   :  { %v9146_v50 = vld [vmem:[#allocation5 + $0xb94] ss:$56 sps:$4 sm:$0xff]  }
 0x31f   :  { %6793 = vmatpush1.bf16.msra.mxu0 %v9158_v33  ;;  %v9147_v33 = vld [vmem:[#allocation5 + $0x814] ss:$56 sps:$4 sm:$0xff]  }
 0x320   :  { %5319 = vmatpush2.bf16.msra.mxu1 %v9104_v61  ;;  %6794 = vmatprep.subr.bf16.mxu0 %v9163_v3  ;;  %v9190_v61 = vld [vmem:[#allocation8 + $0x824] ss:$16 sps:$4 sm:$0xff]  }
 0x321   :  { %5320 = vmatprep.subr.bf16.mxu1 %v9111_v32  ;;  %v9151_v3 = vld [vmem:[#allocation5 + $0xb24] ss:$56 sps:$4 sm:$0xff]  }
 0x322   :  { %v9188_v32 = vld [vmem:[#allocation8 + $0x820] ss:$16 sps:$4 sm:$0xff]  }
 0x323   :  { %6795 = vmatpush1.bf16.msra.mxu0 %v9161_v36  ;;  %v9152_v36 = vld [vmem:[#allocation5 + $0x7a4] ss:$56 sps:$4 sm:$0xff]  }
 0x324   :  { %5321 = vmatpush2.bf16.msra.mxu1 %v9109_v37  ;;  %6796 = vmatprep.subr.bf16.mxu0 %v9166_v38  ;;  %v9193_v37 = vld [vmem:[#allocation8 + $0x804] ss:$16 sps:$4 sm:$0xff]  }
 0x325   :  { %5322 = vmatprep.subr.bf16.mxu1 %v9116_v40  ;;  %v9156_v38 = vld [vmem:[#allocation5 + $0xab4] ss:$56 sps:$4 sm:$0xff]  }
 0x326   :  { %v9191_v40 = vld [vmem:[#allocation8 + $0x800] ss:$16 sps:$4 sm:$0xff]  }
 0x327   :  { %6797 = vmatpush1.bf16.msra.mxu0 %v9164_v41  ;;  %v9157_v41 = vld [vmem:[#allocation5 + $0x734] ss:$56 sps:$4 sm:$0xff]  }
 0x328   :  { %5323 = vmatpush2.bf16.msra.mxu1 %v9114_v44  ;;  %6798 = vmatprep.subr.bf16.mxu0 %v9169_v46  ;;  %v9244_v44 = vld [vmem:[#allocation8 + $0xbe4] ss:$16 sps:$4 sm:$0xff]  }
 0x329   :  { %5324 = vmatprep.subr.bf16.mxu1 %v9121_v6  ;;  %v9196_v46 = vld [vmem:[#allocation8 + $0x9e4] ss:$16 sps:$4 sm:$0xff]   ;;  %v9194_v6 = vld [vmem:[#allocation8 + $0x9e0] ss:$16 sps:$4 sm:$0xff]  }
 0x32b   :  { %6799 = vmatpush1.bf16.msra.mxu0 %v9167_v47  ;;  %v9199_v47 = vld [vmem:[#allocation8 + $0x9c4] ss:$16 sps:$4 sm:$0xff]  }
 0x32c   :  { %5325 = vmatpush2.bf16.msra.mxu1 %v9119_v52  ;;  %6800 = vmatprep.subr.bf16.mxu0 %v9172_v18  ;;  %v9197_v52 = vld [vmem:[#allocation8 + $0x9c0] ss:$16 sps:$4 sm:$0xff]   ;;  %v9202_v18 = vld [vmem:[#allocation8 + $0x9a4] ss:$16 sps:$4 sm:$0xff]  }
 0x32d   :  { %8129 = vmatprep.subr.bf16.mxu1 %v9124_v54  ;;  %v9200_v54 = vld [vmem:[#allocation8 + $0x9a0] ss:$16 sps:$4 sm:$0xff]  }
 0x32f   :  { %v3574_v1 = vpop.f32.mrf.mxu1  ;;  %5327 = vmatmul.mubr.bf16.vlgmr.msra.gmra.mxu1 %v9791_v55  ;;  %6801 = vmatpush2.bf16.msra.mxu0 %v9170_v57  ;;  %v9205_v57 = vld [vmem:[#allocation8 + $0x984] ss:$16 sps:$4 sm:$0xff]  }
 0x330   :  { %v9827_v15 = vadd.f32 %v3574_v1, %v9810_v26  ;;  %8130 = vmatpush3.bf16.msra.mxu1 %v9125_v51  ;;  %5410 = vmatprep.mubr.bf16.mxu1 %v9775_v48  ;;  %v9181_v48 = vld [vmem:[#allocation8 + $0x884] ss:$16 sps:$4 sm:$0xff]   ;;  %v9203_v51 = vld [vmem:[#allocation8 + $0x980] ss:$16 sps:$4 sm:$0xff]  }
 0x331   :  { %v3576_v60 = vpop.f32.mrf.mxu1  ;;  %8131 = vmatprep.subr.bf16.mxu1 %v9128_v59  ;;  %6802 = vmatprep.subr.bf16.mxu0 %v9175_v62  ;;  %v9208_v59 = vld [vmem:[#allocation8 + $0x964] ss:$16 sps:$4 sm:$0xff]   ;;  %v9206_v62 = vld [vmem:[#allocation8 + $0x960] ss:$16 sps:$4 sm:$0xff]  }
 0x332   :  { %v9831_v2 = vadd.f32 %v3576_v60, %v9813_v34  ;;  %v9179_v34 = vld [vmem:[#allocation8 + $0x880] ss:$16 sps:$4 sm:$0xff]   ;;  %v9211_v1 = vld [vmem:[#allocation8 + $0x944] ss:$16 sps:$4 sm:$0xff]  }
 0x333   :  { %v3578_v17 = vpop.f32.mrf.mxu1  ;;  %6803 = vmatpush2.bf16.msra.mxu0 %v9173_v7  ;;  %v9209_v7 = vld [vmem:[#allocation8 + $0x940] ss:$16 sps:$4 sm:$0xff]   ;;  %v9217_v60 = vld [vmem:[#allocation8 + $0x904] ss:$16 sps:$4 sm:$0xff]  }
 0x334   :  { %v9836_v26 = vadd.f32 %v3578_v17, %v9816_v35  ;;  %8132 = vmatpush3.bf16.msra.mxu1 %v9129_v8  ;;  %6804 = vmatprep.subr.bf16.mxu0 %v9178_v10  ;;  %v9141_v35 = vld [vmem:[#allocation5 + $0xc04] ss:$56 sps:$4 sm:$0xff]   ;;  %v5113_v10 = vpop.f32.mrf.mxu0 }
 0x335   :  { %v3580_v21 = vpop.f32.mrf.mxu1  ;;  %8133 = vmatprep.subr.bf16.mxu1 %v9132_v12  ;;  %v9212_v8 = vld [vmem:[#allocation8 + $0x920] ss:$16 sps:$4 sm:$0xff]  }
 0x336   :  { %v3581_v23 = vadd.f32 %v3580_v21, %v9818_v42  ;;  %v9185_v42 = vld [vmem:[#allocation8 + $0x840] ss:$16 sps:$4 sm:$0xff]  }
 0x337   :  { %6805 = vmatpush2.bf16.msra.mxu0 %v9176_v19  ;;  %v9215_v12 = vld [vmem:[#allocation8 + $0x900] ss:$16 sps:$4 sm:$0xff]   ;;  %v5115_v19 = vpop.f32.mrf.mxu0 }
 0x338   :  { %v9839_v24 = vadd.f32 %v3623_v4, %v3581_v23  ;;  %8134 = vmatpush3.bf16.msra.mxu1 %v9133_v39  ;;  %6806 = vmatprep.subr.bf16.mxu0 %v9181_v48  ;;  %v9842_v17 = vld [vmem:[#allocation7 + $0x7] sm:$0xff]  ;;  %v9220_v39 = vld [vmem:[#allocation8 + $0xae4] ss:$16 sps:$4 sm:$0xff]  }
 0x339   :  { %8135 = vmatprep.subr.bf16.mxu1 %v9136_v22  ;;  %v3899_v48 = vrot.slane %v9842_v17, %v9702_v20  ;;  %v9218_v21 = vld [vmem:[#allocation8 + $0xae0] ss:$16 sps:$4 sm:$0xff]   ;;  %v3895_v22 = vrot.slane %v9842_v17, %v9709_v49  ;;  %v5117_v23 = vpop.f32.mrf.mxu0  ;;  %v9223_v4 = vld [vmem:[#allocation8 + $0xac4] ss:$16 sps:$4 sm:$0xff]  }
 0x33b   :  { %6807 = vmatpush2.bf16.msra.mxu0 %v9179_v34 }
 0x33c   :  { %8136 = vmatpush3.bf16.msra.mxu1 %v9137_v45  ;;  %6808 = vmatprep.subr.bf16.mxu0 %v9184_v25  ;;  %v5116_v45 = vadd.f32 %v5115_v19, %v3899_v48  ;;  %v9221_v25 = vld [vmem:[#allocation8 + $0xac0] ss:$16 sps:$4 sm:$0xff]   ;;  %v9241_v19 = vld [vmem:[#allocation8 + $0xa04] ss:$16 sps:$4 sm:$0xff]  }
 0x33d   :  { %8137 = vmatprep.subr.bf16.mxu1 %v9141_v35  ;;  %v5114_v35 = vadd.f32 %v5113_v10, %v3895_v22  ;;  %v9248_v10 = vld [vmem:[#allocation8 + $0xba0] ss:$16 sps:$4 sm:$0xff]  }
 0x33f   :  { %6809 = vmatpush2.bf16.msra.mxu0 %v9182_v53  ;;  %v5119_v53 = vpop.f32.mrf.mxu0 }
 0x340   :  { %8138 = vmatpush3.bf16.msra.mxu1 %v9142_v5  ;;  %6810 = vmatprep.subr.bf16.mxu0 %v9187_v27  ;;  %v9226_v27 = vld [vmem:[#allocation8 + $0xaa4] ss:$16 sps:$4 sm:$0xff]  }
 0x341   :  { %8139 = vmatprep.subr.bf16.mxu1 %v9146_v50  ;;  %v5118_v50 = vadd.f32 %v5117_v23, %v3895_v22  ;;  %v9295_v22 = vld [vmem:[#allocation8 + $0xde4] ss:$16 sps:$4 sm:$0xff]   ;;  %v9254_v23 = vld [vmem:[#allocation8 + $0xb60] ss:$16 sps:$4 sm:$0xff]  }
 0x343   :  { %6811 = vmatpush2.bf16.msra.mxu0 %v9185_v42 }
 0x344   :  { %8140 = vmatpush3.bf16.msra.mxu1 %v9147_v33  ;;  %6812 = vmatprep.subr.bf16.mxu0 %v9190_v61  ;;  %v5120_v33 = vadd.f32 %v5119_v53, %v3899_v48  ;;  %v9256_v48 = vld [vmem:[#allocation8 + $0xb64] ss:$16 sps:$4 sm:$0xff]   ;;  %v9263_v53 = vld [vmem:[#allocation8 + $0xb00] ss:$16 sps:$4 sm:$0xff]  }
 0x345   :  { %8141 = vmatprep.subr.bf16.mxu1 %v9151_v3 }
 0x347   :  { %6813 = vmatpush2.bf16.msra.mxu0 %v9188_v32  ;;  %v9224_v32 = vld [vmem:[#allocation8 + $0xaa0] ss:$16 sps:$4 sm:$0xff]  }
 0x348   :  { %8142 = vmatpush3.bf16.msra.mxu1 %v9152_v36  ;;  %6814 = vmatprep.subr.bf16.mxu0 %v9193_v37 }
 0x349   :  { %8143 = vmatprep.subr.bf16.mxu1 %v9156_v38  ;;  %v9229_v38 = vld [vmem:[#allocation8 + $0xa84] ss:$16 sps:$4 sm:$0xff]  }
 0x34b   :  { %6815 = vmatpush2.bf16.msra.mxu0 %v9191_v40 }
 0x34c   :  { %8144 = vmatpush3.bf16.msra.mxu1 %v9157_v41  ;;  %6870 = vmatprep.subr.bf16.mxu0 %v9244_v44 }
 0x34d   :  { %6827 = vmatprep.subr.bf16.mxu1 %v9196_v46 }
 0x34f   :  { %5411 = vmatmul.mubr.bf16.vlgmr.msra.gmra.mxu1 %v9791_v55  ;;  %v9214_v55 = vld [vmem:[#allocation8 + $0x924] ss:$16 sps:$4 sm:$0xff]  }
 0x350   :  { %6828 = vmatpush1.bf16.msra.mxu1 %v9194_v6  ;;  %v9227_v6 = vld [vmem:[#allocation8 + $0xa80] ss:$16 sps:$4 sm:$0xff]  }
 0x351   :  { %6829 = vmatprep.subr.bf16.mxu1 %v9199_v47 }
 0x354   :  { %6830 = vmatpush1.bf16.msra.mxu1 %v9197_v52  ;;  %v9232_v52 = vld [vmem:[#allocation8 + $0xa64] ss:$16 sps:$4 sm:$0xff]  }
 0x355   :  { %6831 = vmatprep.subr.bf16.mxu1 %v9202_v18 }
 0x358   :  { %6832 = vmatpush1.bf16.msra.mxu1 %v9200_v54  ;;  %v9242_v54 = vld [vmem:[#allocation8 + $0xbe0] ss:$16 sps:$4 sm:$0xff]  }
 0x359   :  { %6833 = vmatprep.subr.bf16.mxu1 %v9205_v57 }
 0x35c   :  { %6834 = vmatpush1.bf16.msra.mxu1 %v9203_v51  ;;  %v9247_v51 = vld [vmem:[#allocation8 + $0xbc4] ss:$16 sps:$4 sm:$0xff]  }
 0x35d   :  { %6835 = vmatprep.subr.bf16.mxu1 %v9208_v59  ;;  %v9230_v59 = vld [vmem:[#allocation8 + $0xa60] ss:$16 sps:$4 sm:$0xff]  }
 0x360   :  { %6836 = vmatpush1.bf16.msra.mxu1 %v9206_v62  ;;  %v9235_v62 = vld [vmem:[#allocation8 + $0xa44] ss:$16 sps:$4 sm:$0xff]  }
 0x361   :  { %6837 = vmatprep.subr.bf16.mxu1 %v9211_v1  ;;  %v9245_v1 = vld [vmem:[#allocation8 + $0xbc0] ss:$16 sps:$4 sm:$0xff]  }
 0x364   :  { %6838 = vmatpush1.bf16.msra.mxu1 %v9209_v7  ;;  %v9250_v7 = vld [vmem:[#allocation8 + $0xba4] ss:$16 sps:$4 sm:$0xff]  }
 0x365   :  { %6839 = vmatprep.subr.bf16.mxu1 %v9214_v55  ;;  %v9233_v55 = vld [vmem:[#allocation8 + $0xa40] ss:$16 sps:$4 sm:$0xff]  }
 0x368   :  { %6840 = vmatpush1.bf16.msra.mxu1 %v9212_v8  ;;  %v9238_v8 = vld [vmem:[#allocation8 + $0xa24] ss:$16 sps:$4 sm:$0xff]  }
 0x369   :  { %6841 = vmatprep.subr.bf16.mxu1 %v9217_v60  ;;  %v9253_v60 = vld [vmem:[#allocation8 + $0xb84] ss:$16 sps:$4 sm:$0xff]  }
 0x36c   :  { %6842 = vmatpush1.bf16.msra.mxu1 %v9215_v12  ;;  %v9236_v12 = vld [vmem:[#allocation8 + $0xa20] ss:$16 sps:$4 sm:$0xff]  }
 0x36d   :  { %6843 = vmatprep.subr.bf16.mxu1 %v9220_v39  ;;  %v9251_v39 = vld [vmem:[#allocation8 + $0xb80] ss:$16 sps:$4 sm:$0xff]  }
 0x36f   :  { %v5156_v34 = vpop.f32.mrf.mxu1 }
 0x370   :  { %6844 = vmatpush2.bf16.msra.mxu1 %v9218_v21  ;;  %v5157_v36 = vadd.f32 %v5156_v34, %v5114_v35  ;;  %v9239_v21 = vld [vmem:[#allocation8 + $0xa00] ss:$16 sps:$4 sm:$0xff]   ;;  %v9265_v35 = vld [vmem:[#allocation8 + $0xb04] ss:$16 sps:$4 sm:$0xff]  }
 0x371   :  { %v5158_v5 = vpop.f32.mrf.mxu1  ;;  %6845 = vmatprep.subr.bf16.mxu1 %v9223_v4  ;;  %v9259_v4 = vld [vmem:[#allocation8 + $0xb44] ss:$16 sps:$4 sm:$0xff]   ;;  %v9257_v34 = vld [vmem:[#allocation8 + $0xb40] ss:$16 sps:$4 sm:$0xff]  }
 0x372   :  { %v5159_v61 = vadd.f32 %v5158_v5, %v5116_v45  ;;  %v5419_v47 = vmax.f32 %v5157_v36, 0.0  ;;  %v9262_v45 = vld [vmem:[#allocation8 + $0xb24] ss:$16 sps:$4 sm:$0xff]   ;;  %v9275_v36 = vld [vmem:[#allocation8 + $0xc80] ss:$16 sps:$4 sm:$0xff]  }
 0x373   :  { %v5160_v42 = vpop.f32.mrf.mxu1  ;;  %v9268_v5 = vld [vmem:[#allocation8 + $0xce4] ss:$16 sps:$4 sm:$0xff]  }
 0x374   :  { %v5161_v3 = vadd.f32 %v5160_v42, %v5118_v50  ;;  %6846 = vmatpush2.bf16.msra.mxu1 %v9221_v25  ;;  %v5420_v44 = vmax.f32 %v5159_v61, 0.0  ;;  %v9260_v25 = vld [vmem:[#allocation8 + $0xb20] ss:$16 sps:$4 sm:$0xff]   ;;  %v9271_v50 = vld [vmem:[#allocation8 + $0xcc4] ss:$16 sps:$4 sm:$0xff]  }
 0x375   :  { %v5162_v37 = vpop.f32.mrf.mxu1  ;;  %6847 = vmatprep.subr.bf16.mxu1 %v9226_v27  ;;  %v9266_v27 = vld [vmem:[#allocation8 + $0xce0] ss:$16 sps:$4 sm:$0xff]  }
 0x376   :  { %v5163_v40 = vadd.f32 %v5162_v37, %v5120_v33  ;;  %v5426_v41 = vmax.f32 %v5161_v3, 0.0  ;;  %v9269_v42 = vld [vmem:[#allocation8 + $0xcc0] ss:$16 sps:$4 sm:$0xff]   ;;  %v9274_v33 = vld [vmem:[#allocation8 + $0xca4] ss:$16 sps:$4 sm:$0xff]  }
 0x377   :  { %v9272_v61 = vld [vmem:[#allocation8 + $0xca0] ss:$16 sps:$4 sm:$0xff]   ;;  %v9277_v3 = vld [vmem:[#allocation8 + $0xc84] ss:$16 sps:$4 sm:$0xff]  }
 0x378   :  { %v5427_v46 = vmax.f32 %v5163_v40, 0.0  ;;  %6848 = vmatpush2.bf16.msra.mxu1 %v9224_v32  ;;  %v9850_v57 = vpack.c.bf16 %v5426_v41, %v5419_v47  ;;  %v5199_v32 = vpop.f32.mrf.mxu0  ;;  %v9280_v37 = vld [vmem:[#allocation8 + $0xc64] ss:$16 sps:$4 sm:$0xff]   ;;  %v9278_v40 = vld [vmem:[#allocation8 + $0xc60] ss:$16 sps:$4 sm:$0xff]  }
 0x379   :  { %6849 = vmatprep.subr.bf16.mxu1 %v9229_v38  ;;  %v9283_v41 = vld [vmem:[#allocation8 + $0xc44] ss:$16 sps:$4 sm:$0xff]   ;;  %v9281_v47 = vld [vmem:[#allocation8 + $0xc40] ss:$16 sps:$4 sm:$0xff]  }
 0x37a   :  { %v9848_v18 = vpack.c.bf16 %v5427_v46, %v5420_v44  ;;  %v5201_v38 = vpop.f32.mrf.mxu0  ;;  %v3907_v44 = vrot.slane %v9842_v17, %v9721_v28  ;;  %v3903_v46 = vrot.slane %v9842_v17, %v9724_v30 }
 0x37c   :  { %6816 = vmatprep.mubr.bf16.mxu0 %v9848_v18  ;;  %6850 = vmatpush2.bf16.msra.mxu1 %v9227_v6  ;;  %v5203_v6 = vpop.f32.mrf.mxu0 }
 0x37d   :  { %6817 = vmatmul.mubr.bf16.vlgmr.msra.gmra.mxu0 %v9850_v57  ;;  %6851 = vmatprep.subr.bf16.mxu1 %v9232_v52 }
 0x37e   :  { %6871 = vmatpush1.bf16.msra.mxu0 %v9242_v54  ;;  %v9286_v54 = vld [vmem:[#allocation8 + $0xc24] ss:$16 sps:$4 sm:$0xff]  }
 0x37f   :  { %6872 = vmatprep.subr.bf16.mxu0 %v9247_v51  ;;  %v5202_v51 = vadd.f32 %v5201_v38, %v3907_v44  ;;  %v9323_v38 = vld [vmem:[#allocation8 + $0xd40] ss:$16 sps:$4 sm:$0xff]  }
 0x380   :  { %6852 = vmatpush2.bf16.msra.mxu1 %v9230_v59  ;;  %v5200_v59 = vadd.f32 %v5199_v32, %v3903_v46  ;;  %v9319_v32 = vld [vmem:[#allocation8 + $0xd64] ss:$16 sps:$4 sm:$0xff]  }
 0x381   :  { %6853 = vmatprep.subr.bf16.mxu1 %v9235_v62  ;;  %v5205_v62 = vpop.f32.mrf.mxu0 }
 0x382   :  { %6873 = vmatpush1.bf16.msra.mxu0 %v9245_v1 }
 0x383   :  { %6874 = vmatprep.subr.bf16.mxu0 %v9250_v7  ;;  %v5204_v7 = vadd.f32 %v5203_v6, %v3903_v46  ;;  %v9335_v46 = vld [vmem:[#allocation8 + $0xd00] ss:$16 sps:$4 sm:$0xff]   ;;  %v9343_v6 = vld [vmem:[#allocation8 + $0x7ec] ss:$16 sps:$4 sm:$0xff]  }
 0x384   :  { %6854 = vmatpush2.bf16.msra.mxu1 %v9233_v55  ;;  %v9284_v55 = vld [vmem:[#allocation8 + $0xc20] ss:$16 sps:$4 sm:$0xff]  }
 0x385   :  { %6855 = vmatprep.subr.bf16.mxu1 %v9238_v8 }
 0x386   :  { %6875 = vmatpush1.bf16.msra.mxu0 %v9248_v10  ;;  %v9289_v10 = vld [vmem:[#allocation8 + $0xc04] ss:$16 sps:$4 sm:$0xff]  }
 0x387   :  { %6876 = vmatprep.subr.bf16.mxu0 %v9253_v60  ;;  %v5206_v60 = vadd.f32 %v5205_v62, %v3907_v44  ;;  %v9337_v44 = vld [vmem:[#allocation8 + $0xd04] ss:$16 sps:$4 sm:$0xff]  }
 0x388   :  { %6856 = vmatpush2.bf16.msra.mxu1 %v9236_v12 }
 0x389   :  { %6857 = vmatprep.subr.bf16.mxu1 %v9241_v19 }
 0x38a   :  { %6877 = vmatpush1.bf16.msra.mxu0 %v9251_v39 }
 0x38b   :  { %6878 = vmatprep.subr.bf16.mxu0 %v9256_v48 }
 0x38c   :  { %6858 = vmatpush2.bf16.msra.mxu1 %v9239_v21 }
 0x38d   :  { %6913 = vmatprep.subr.bf16.mxu1 %v9295_v22  ;;  %v9287_v22 = vld [vmem:[#allocation8 + $0xc00] ss:$16 sps:$4 sm:$0xff]  }
 0x38e   :  { %6879 = vmatpush1.bf16.msra.mxu0 %v9254_v23 }
 0x38f   :  { %6880 = vmatprep.subr.bf16.mxu0 %v9259_v4  ;;  %v9292_v4 = vld [vmem:[#allocation8 + $0x9ec] ss:$16 sps:$4 sm:$0xff]  }
 0x392   :  { %6881 = vmatpush1.bf16.msra.mxu0 %v9257_v34 }
 0x393   :  { %6882 = vmatprep.subr.bf16.mxu0 %v9262_v45 }
 0x396   :  { %6883 = vmatpush1.bf16.msra.mxu0 %v9260_v25 }
 0x397   :  { %6884 = vmatprep.subr.bf16.mxu0 %v9265_v35 }
 0x39a   :  { %6885 = vmatpush1.bf16.msra.mxu0 %v9263_v53  ;;  %v9293_v53 = vld [vmem:[#allocation8 + $0xde0] ss:$16 sps:$4 sm:$0xff]  }
 0x39b   :  { %6886 = vmatprep.subr.bf16.mxu0 %v9268_v5 }
 0x39e   :  { %6887 = vmatpush2.bf16.msra.mxu0 %v9266_v27  ;;  %v9301_v27 = vld [vmem:[#allocation8 + $0xdc4] ss:$16 sps:$4 sm:$0xff]  }
 0x39f   :  { %6888 = vmatprep.subr.bf16.mxu0 %v9271_v50  ;;  %v9299_v50 = vld [vmem:[#allocation8 + $0xdc0] ss:$16 sps:$4 sm:$0xff]  }
 0x3a2   :  { %6889 = vmatpush2.bf16.msra.mxu0 %v9269_v42  ;;  %v9307_v42 = vld [vmem:[#allocation8 + $0xda4] ss:$16 sps:$4 sm:$0xff]  }
 0x3a3   :  { %6890 = vmatprep.subr.bf16.mxu0 %v9274_v33  ;;  %v9305_v33 = vld [vmem:[#allocation8 + $0xda0] ss:$16 sps:$4 sm:$0xff]  }
 0x3a6   :  { %6891 = vmatpush2.bf16.msra.mxu0 %v9272_v61  ;;  %v9313_v61 = vld [vmem:[#allocation8 + $0xd84] ss:$16 sps:$4 sm:$0xff]  }
 0x3a7   :  { %6892 = vmatprep.subr.bf16.mxu0 %v9277_v3  ;;  %v9311_v3 = vld [vmem:[#allocation8 + $0xd80] ss:$16 sps:$4 sm:$0xff]  }
 0x3aa   :  { %6893 = vmatpush2.bf16.msra.mxu0 %v9275_v36  ;;  %v9317_v36 = vld [vmem:[#allocation8 + $0xd60] ss:$16 sps:$4 sm:$0xff]  }
 0x3ab   :  { %6894 = vmatprep.subr.bf16.mxu0 %v9280_v37  ;;  %v9325_v37 = vld [vmem:[#allocation8 + $0xd44] ss:$16 sps:$4 sm:$0xff]  }
 0x3ae   :  { %6895 = vmatpush2.bf16.msra.mxu0 %v9278_v40  ;;  %v9331_v40 = vld [vmem:[#allocation8 + $0xd24] ss:$16 sps:$4 sm:$0xff]  }
 0x3af   :  { %v5242_v52 = vpop.f32.mrf.mxu1  ;;  %6896 = vmatprep.subr.bf16.mxu0 %v9283_v41  ;;  %v9329_v41 = vld [vmem:[#allocation8 + $0xd20] ss:$16 sps:$4 sm:$0xff]  }
 0x3b0   :  { %v5243_v39 = vadd.f32 %v5242_v52, %v5200_v59 }
 0x3b1   :  { %v5244_v1 = vpop.f32.mrf.mxu1 }
 0x3b2   :  { %6897 = vmatpush2.bf16.msra.mxu0 %v9281_v47  ;;  %v5245_v12 = vadd.f32 %v5244_v1, %v5202_v51  ;;  %v5421_v25 = vmax.f32 %v5243_v39, 0.0  ;;  %v5285_v47 = vpop.f32.mrf.mxu0  ;;  %v3911_v51 = vrot.slane %v9842_v17, %v388_v29  ;;  %v9290_v29 = vld [vmem:[#allocation8 + $0x9e8] ss:$16 sps:$4 sm:$0xff]  }
 0x3b3   :  { %v5246_v8 = vpop.f32.mrf.mxu1  ;;  %6898 = vmatprep.subr.bf16.mxu0 %v9286_v54  ;;  %v3915_v54 = vrot.slane %v9842_v17, %v392_v31 }
 0x3b4   :  { %v5247_v19 = vadd.f32 %v5246_v8, %v5204_v7  ;;  %v5422_v34 = vmax.f32 %v5245_v12, 0.0  ;;  %v5287_v52 = vpop.f32.mrf.mxu0  ;;  %v5286_v7 = vadd.f32 %v5285_v47, %v3911_v51 }
 0x3b5   :  { %v5248_v48 = vpop.f32.mrf.mxu1  ;;  %v5288_v1 = vadd.f32 %v5287_v52, %v3915_v54 }
 0x3b6   :  { %v5249_v21 = vadd.f32 %v5248_v48, %v5206_v60  ;;  %6899 = vmatpush2.bf16.msra.mxu0 %v9284_v55  ;;  %v5428_v23 = vmax.f32 %v5247_v19, 0.0  ;;  %v5289_v59 = vpop.f32.mrf.mxu0 }
 0x3b7   :  { %6900 = vmatprep.subr.bf16.mxu0 %v9289_v10  ;;  %v5290_v10 = vadd.f32 %v5289_v59, %v3911_v51  ;;  %v9326_v59 = vld [vmem:[#allocation8 + $0x928] ss:$16 sps:$4 sm:$0xff]  }
 0x3b8   :  { %v5429_v45 = vmax.f32 %v5249_v21, 0.0  ;;  %v9860_v5 = vpack.c.bf16 %v5428_v23, %v5421_v25  ;;  %v5291_v55 = vpop.f32.mrf.mxu0 }
 0x3b9   :  { %v5292_v12 = vadd.f32 %v5291_v55, %v3915_v54 }
 0x3ba   :  { %v9858_v35 = vpack.c.bf16 %v5429_v45, %v5422_v34  ;;  %6901 = vmatpush2.bf16.msra.mxu0 %v9287_v22 }
 0x3bb   :  { %6999 = vmatprep.subr.bf16.mxu0 %v9292_v4 }
 0x3bc   :  { %6859 = vmatprep.mubr.bf16.mxu1 %v9858_v35 }
 0x3bd   :  { %6860 = vmatmul.mubr.bf16.vlgmr.msra.gmra.mxu1 %v9860_v5 }
 0x3be   :  { %6914 = vmatpush1.bf16.msra.mxu1 %v9293_v53  ;;  %6945 = vmatprep.mubr.bf16.mxu1 %v9628_v13  ;;  %v9298_v53 = vld [vmem:[#allocation8 + $0x9cc] ss:$16 sps:$4 sm:$0xff]  }
 0x3bf   :  { %6915 = vmatprep.subr.bf16.mxu1 %v9301_v27  ;;  %v9296_v27 = vld [vmem:[#allocation8 + $0x9c8] ss:$16 sps:$4 sm:$0xff]  }
 0x3c2   :  { %6916 = vmatpush1.bf16.msra.mxu1 %v9299_v50  ;;  %v9304_v50 = vld [vmem:[#allocation8 + $0x9ac] ss:$16 sps:$4 sm:$0xff]  }
 0x3c3   :  { %6917 = vmatprep.subr.bf16.mxu1 %v9307_v42  ;;  %v9302_v42 = vld [vmem:[#allocation8 + $0x9a8] ss:$16 sps:$4 sm:$0xff]  }
 0x3c6   :  { %6918 = vmatpush1.bf16.msra.mxu1 %v9305_v33 }
 0x3c7   :  { %6919 = vmatprep.subr.bf16.mxu1 %v9313_v61  ;;  %v9310_v61 = vld [vmem:[#allocation8 + $0x98c] ss:$16 sps:$4 sm:$0xff]  }
 0x3ca   :  { %6920 = vmatpush1.bf16.msra.mxu1 %v9311_v3  ;;  %v9308_v3 = vld [vmem:[#allocation8 + $0x988] ss:$16 sps:$4 sm:$0xff]  }
 0x3cb   :  { %6921 = vmatprep.subr.bf16.mxu1 %v9319_v32 }
 0x3ce   :  { %6922 = vmatpush1.bf16.msra.mxu1 %v9317_v36  ;;  %v8123_v33 = vpop.f32.mrf.mxu0  ;;  %v9316_v36 = vld [vmem:[#allocation8 + $0x96c] ss:$16 sps:$4 sm:$0xff]  }
 0x3cf   :  { %6923 = vmatprep.subr.bf16.mxu1 %v9325_v37  ;;  %v9314_v37 = vld [vmem:[#allocation8 + $0x968] ss:$16 sps:$4 sm:$0xff]  }
 0x3d0   :  { %v8124_v32 = vpop.f32.mrf.mxu0 }
 0x3d1   :  { %v8125_v47 = vadd.f32 %v8124_v32, %v8123_v33  ;;  %v9356_v33 = vld [vmem:[#allocation8 + $0xa88] ss:$16 sps:$4 sm:$0xff]  }
 0x3d2   :  { %6924 = vmatpush1.bf16.msra.mxu1 %v9323_v38  ;;  %v8126_v38 = vpop.f32.mrf.mxu0  ;;  %v9362_v32 = vld [vmem:[#allocation8 + $0xa68] ss:$16 sps:$4 sm:$0xff]  }
 0x3d3   :  { %6925 = vmatprep.subr.bf16.mxu1 %v9331_v40  ;;  %v9322_v40 = vld [vmem:[#allocation8 + $0x94c] ss:$16 sps:$4 sm:$0xff]  }
 0x3d6   :  { %6926 = vmatpush1.bf16.msra.mxu1 %v9329_v41  ;;  %v8127_v41 = vpop.f32.mrf.mxu0 }
 0x3d7   :  { %6927 = vmatprep.subr.bf16.mxu1 %v9337_v44  ;;  %v8128_v54 = vadd.f32 %v8127_v41, %v8126_v38  ;;  %v9373_v38 = vld [vmem:[#allocation8 + $0x74c] ss:$16 sps:$4 sm:$0xff]  }
 0x3d8   :  { %v9376_v41 = vld [vmem:[#allocation8 + $0xa2c] ss:$16 sps:$4 sm:$0xff]  }
 0x3da   :  { %6928 = vmatpush1.bf16.msra.mxu1 %v9335_v46  ;;  %v9328_v46 = vld [vmem:[#allocation8 + $0x92c] ss:$16 sps:$4 sm:$0xff]  }
 0x3db   :  { %6956 = vmatprep.subr.bf16.mxu1 %v9343_v6  ;;  %v3919_v6 = vrot.slane %v9842_v17, %v396_v9 }
 0x3ef   :  { %v5328_v62 = vpop.f32.mrf.mxu1 }
 0x3f0   :  { %v5329_v48 = vadd.f32 %v5328_v62, %v5286_v7  ;;  %v5372_v7 = vadd.f32 %v8125_v47, %v3919_v6  ;;  %v9382_v47 = vld [vmem:[#allocation8 + $0xa0c] ss:$16 sps:$4 sm:$0xff]  }
 0x3f1   :  { %v5330_v8 = vpop.f32.mrf.mxu1 }
 0x3f2   :  { %v5331_v19 = vadd.f32 %v5330_v8, %v5288_v1  ;;  %v5423_v34 = vmax.f32 %v5329_v48, 0.0  ;;  %v9334_v1 = vld [vmem:[#allocation8 + $0x90c] ss:$16 sps:$4 sm:$0xff]   ;;  %v5375_v8 = vadd.f32 %v8128_v54, %v3919_v6  ;;  %v9341_v48 = vld [vmem:[#allocation8 + $0x7e8] ss:$16 sps:$4 sm:$0xff]  }
 0x3f3   :  { %v5332_v60 = vpop.f32.mrf.mxu1  ;;  %v9377_v6 = vld [vmem:[#allocation8 + $0x728] ss:$16 sps:$4 sm:$0xff]  }
 0x3f4   :  { %v5333_v39 = vadd.f32 %v5332_v60, %v5290_v10  ;;  %v5424_v31 = vmax.f32 %v5331_v19, 0.0  ;;  %v9380_v54 = vld [vmem:[#allocation8 + $0xa08] ss:$16 sps:$4 sm:$0xff]  }
 0x3f5   :  { %v5334_v21 = vpop.f32.mrf.mxu1 }
 0x3f6   :  { %v5335_v22 = vadd.f32 %v5334_v21, %v5292_v12  ;;  %v5430_v23 = vmax.f32 %v5333_v39, 0.0  ;;  %v9332_v12 = vld [vmem:[#allocation8 + $0x908] ss:$16 sps:$4 sm:$0xff]  }
 0x3f7   :  { %v9338_v39 = vld [vmem:[#allocation8 + $0xae8] ss:$16 sps:$4 sm:$0xff]  }
 0x3f8   :  { %v5431_v4 = vmax.f32 %v5335_v22, 0.0  ;;  %v9873_v25 = vpack.c.bf16 %v5430_v23, %v5423_v34  ;;  %v9346_v22 = vld [vmem:[#allocation8 + $0xacc] ss:$16 sps:$4 sm:$0xff]  }
 0x3f9   :  { %v9349_v23 = vld [vmem:[#allocation8 + $0x7cc] ss:$16 sps:$4 sm:$0xff]  }
 0x3fa   :  { %v9871_v45 = vpack.c.bf16 %v5431_v4, %v5424_v31  ;;  %v9344_v31 = vld [vmem:[#allocation8 + $0xac8] ss:$16 sps:$4 sm:$0xff]   ;;  %v9352_v34 = vld [vmem:[#allocation8 + $0xaac] ss:$16 sps:$4 sm:$0xff]  }
 0x3fb   :  { %v9347_v4 = vld [vmem:[#allocation8 + $0x7c8] ss:$16 sps:$4 sm:$0xff]  }
 0x3fc   :  { %6902 = vmatprep.mubr.bf16.mxu0 %v9871_v45 }
 0x3fd   :  { %6903 = vmatmul.mubr.bf16.vlgmr.msra.gmra.mxu0 %v9873_v25 }
 0x3fe   :  { %7000 = vmatpush1.bf16.msra.mxu0 %v9290_v29  ;;  %7031 = vmatprep.mubr.bf16.mxu0 %v9858_v35  ;;  %v9320_v35 = vld [vmem:[#allocation8 + $0x948] ss:$16 sps:$4 sm:$0xff]   ;;  %v9355_v29 = vld [vmem:[#allocation8 + $0x7ac] ss:$16 sps:$4 sm:$0xff]  }
 0x3ff   :  { %7001 = vmatprep.subr.bf16.mxu0 %v9298_v53  ;;  %v9350_v53 = vld [vmem:[#allocation8 + $0xaa8] ss:$16 sps:$4 sm:$0xff]  }
 0x402   :  { %7002 = vmatpush1.bf16.msra.mxu0 %v9296_v27  ;;  %v9353_v27 = vld [vmem:[#allocation8 + $0x7a8] ss:$16 sps:$4 sm:$0xff]  }
 0x403   :  { %7003 = vmatprep.subr.bf16.mxu0 %v9304_v50  ;;  %v9358_v50 = vld [vmem:[#allocation8 + $0xa8c] ss:$16 sps:$4 sm:$0xff]  }
 0x406   :  { %7004 = vmatpush1.bf16.msra.mxu0 %v9302_v42  ;;  %v9361_v42 = vld [vmem:[#allocation8 + $0x78c] ss:$16 sps:$4 sm:$0xff]  }
 0x407   :  { %7005 = vmatprep.subr.bf16.mxu0 %v9310_v61  ;;  %v9359_v61 = vld [vmem:[#allocation8 + $0x788] ss:$16 sps:$4 sm:$0xff]  }
 0x40a   :  { %7006 = vmatpush1.bf16.msra.mxu0 %v9308_v3  ;;  %v9364_v3 = vld [vmem:[#allocation8 + $0xa6c] ss:$16 sps:$4 sm:$0xff]  }
 0x40b   :  { %7007 = vmatprep.subr.bf16.mxu0 %v9316_v36  ;;  %v9365_v36 = vld [vmem:[#allocation8 + $0x768] ss:$16 sps:$4 sm:$0xff]  }
 0x40e   :  { %7008 = vmatpush1.bf16.msra.mxu0 %v9314_v37  ;;  %v9370_v37 = vld [vmem:[#allocation8 + $0xa4c] ss:$16 sps:$4 sm:$0xff]  }
 0x40f   :  { %v8145_v44 = vpop.f32.mrf.mxu1  ;;  %7009 = vmatprep.subr.bf16.mxu0 %v9322_v40  ;;  %v9368_v40 = vld [vmem:[#allocation8 + $0xa48] ss:$16 sps:$4 sm:$0xff]  }
 0x411   :  { %v8146_v52 = vpop.f32.mrf.mxu1 }
 0x412   :  { %v8147_v51 = vadd.f32 %v8146_v52, %v8145_v44  ;;  %7010 = vmatpush1.bf16.msra.mxu0 %v9320_v35  ;;  %v9371_v35 = vld [vmem:[#allocation8 + $0x748] ss:$16 sps:$4 sm:$0xff]   ;;  %v9379_v44 = vld [vmem:[#allocation8 + $0x72c] ss:$16 sps:$4 sm:$0xff]  }
 0x413   :  { %v8148_v62 = vpop.f32.mrf.mxu1  ;;  %7011 = vmatprep.subr.bf16.mxu0 %v9328_v46  ;;  %v9374_v46 = vld [vmem:[#allocation8 + $0xa28] ss:$16 sps:$4 sm:$0xff]   ;;  %v9385_v52 = vld [vmem:[#allocation8 + $0x70c] ss:$16 sps:$4 sm:$0xff]  }
 0x414   :  { %v5413_v10 = vadd.f32 %v8147_v51, %v5372_v7  ;;  %v9383_v51 = vld [vmem:[#allocation8 + $0x708] ss:$16 sps:$4 sm:$0xff]  }
 0x415   :  { %v8149_v55 = vpop.f32.mrf.mxu1  ;;  %v9389_v7 = vld [vmem:[#allocation8 + $0x8e8] ss:$16 sps:$4 sm:$0xff]  }
 0x416   :  { %v8150_v60 = vadd.f32 %v8149_v55, %v8148_v62  ;;  %7012 = vmatpush1.bf16.msra.mxu0 %v9326_v59  ;;  %v5425_v9 = vmax.f32 %v5413_v10, 0.0  ;;  %v9388_v59 = vld [vmem:[#allocation8 + $0xdec] ss:$16 sps:$4 sm:$0xff]   ;;  %v9392_v10 = vld [vmem:[#allocation8 + $0xdc8] ss:$16 sps:$4 sm:$0xff]  }
 0x417   :  { %7013 = vmatprep.subr.bf16.mxu0 %v9334_v1  ;;  %v9391_v62 = vld [vmem:[#allocation8 + $0x8ec] ss:$16 sps:$4 sm:$0xff]   ;;  %v9386_v1 = vld [vmem:[#allocation8 + $0xde8] ss:$16 sps:$4 sm:$0xff]  }
 0x418   :  { %v5416_v19 = vadd.f32 %v8150_v60, %v5375_v8  ;;  %v9394_v55 = vld [vmem:[#allocation8 + $0xdcc] ss:$16 sps:$4 sm:$0xff]   ;;  %v9395_v60 = vld [vmem:[#allocation8 + $0x8c8] ss:$16 sps:$4 sm:$0xff]  }
 0x419   :  { %v9397_v8 = vld [vmem:[#allocation8 + $0x8cc] ss:$16 sps:$4 sm:$0xff]  }
 0x41a   :  { %v5432_v17 = vmax.f32 %v5416_v19, 0.0  ;;  %7014 = vmatpush1.bf16.msra.mxu0 %v9332_v12  ;;  %v9400_v12 = vld [vmem:[#allocation8 + $0xdac] ss:$16 sps:$4 sm:$0xff]   ;;  %v9398_v19 = vld [vmem:[#allocation8 + $0xda8] ss:$16 sps:$4 sm:$0xff]  }
 0x41b   :  { %7015 = vmatprep.subr.bf16.mxu0 %v9340_v14  ;;  %v9403_v14 = vld [vmem:[#allocation8 + $0x8ac] ss:$16 sps:$4 sm:$0xff]  }
 0x41c   :  { %v9881_v21 = vpack.c.bf16 %v5432_v17, %v5425_v9  ;;  %v9401_v9 = vld [vmem:[#allocation8 + $0x8a8] ss:$16 sps:$4 sm:$0xff]   ;;  %v9406_v17 = vld [vmem:[#allocation8 + $0xd8c] ss:$16 sps:$4 sm:$0xff]  }
 0x41e   :  { %7016 = vmatpush2.bf16.msra.mxu0 %v9338_v39  ;;  %6946 = vmatmul.mubr.bf16.vlgmr.msra.gmra.mxu1 %v9881_v21  ;;  %v9409_v39 = vld [vmem:[#allocation8 + $0x88c] ss:$16 sps:$4 sm:$0xff]  }
 0x41f   :  { %6957 = vmatpush1.bf16.msra.mxu1 %v9341_v48  ;;  %6988 = vmatprep.mubr.bf16.mxu1 %v9848_v18  ;;  %v9367_v18 = vld [vmem:[#allocation8 + $0x76c] ss:$16 sps:$4 sm:$0xff]   ;;  %v9407_v48 = vld [vmem:[#allocation8 + $0x888] ss:$16 sps:$4 sm:$0xff]  }
 0x420   :  { %7017 = vmatprep.subr.bf16.mxu0 %v9346_v22  ;;  %6958 = vmatprep.subr.bf16.mxu1 %v9349_v23  ;;  %v9415_v22 = vld [vmem:[#allocation8 + $0x86c] ss:$16 sps:$4 sm:$0xff]   ;;  %v9410_v23 = vld [vmem:[#allocation8 + $0xd68] ss:$16 sps:$4 sm:$0xff]  }
 0x422   :  { %7018 = vmatpush2.bf16.msra.mxu0 %v9344_v31  ;;  %v9413_v31 = vld [vmem:[#allocation8 + $0x868] ss:$16 sps:$4 sm:$0xff]  }
 0x423   :  { %6959 = vmatpush1.bf16.msra.mxu1 %v9347_v4  ;;  %7019 = vmatprep.subr.bf16.mxu0 %v9352_v34  ;;  %v9418_v4 = vld [vmem:[#allocation8 + $0xd4c] ss:$16 sps:$4 sm:$0xff]  }
 0x424   :  { %6960 = vmatprep.subr.bf16.mxu1 %v9355_v29  ;;  %v9421_v34 = vld [vmem:[#allocation8 + $0x84c] ss:$16 sps:$4 sm:$0xff]   ;;  %v9416_v29 = vld [vmem:[#allocation8 + $0xd48] ss:$16 sps:$4 sm:$0xff]  }
 0x426   :  { %7020 = vmatpush2.bf16.msra.mxu0 %v9350_v53  ;;  %v9419_v53 = vld [vmem:[#allocation8 + $0x848] ss:$16 sps:$4 sm:$0xff]  }
 0x427   :  { %6961 = vmatpush1.bf16.msra.mxu1 %v9353_v27  ;;  %7021 = vmatprep.subr.bf16.mxu0 %v9358_v50  ;;  %v9424_v27 = vld [vmem:[#allocation8 + $0xd2c] ss:$16 sps:$4 sm:$0xff]  }
 0x428   :  { %6962 = vmatprep.subr.bf16.mxu1 %v9361_v42  ;;  %v9427_v50 = vld [vmem:[#allocation8 + $0x82c] ss:$16 sps:$4 sm:$0xff]   ;;  %v9422_v42 = vld [vmem:[#allocation8 + $0xd28] ss:$16 sps:$4 sm:$0xff]  }
 0x42a   :  { %7022 = vmatpush2.bf16.msra.mxu0 %v9356_v33  ;;  %v9425_v33 = vld [vmem:[#allocation8 + $0x828] ss:$16 sps:$4 sm:$0xff]  }
 0x42b   :  { %6963 = vmatpush1.bf16.msra.mxu1 %v9359_v61  ;;  %7023 = vmatprep.subr.bf16.mxu0 %v9364_v3  ;;  %v9430_v61 = vld [vmem:[#allocation8 + $0xd0c] ss:$16 sps:$4 sm:$0xff]  }
 0x42c   :  { %6964 = vmatprep.subr.bf16.mxu1 %v9367_v18  ;;  %v9433_v3 = vld [vmem:[#allocation8 + $0x80c] ss:$16 sps:$4 sm:$0xff]   ;;  %v9428_v18 = vld [vmem:[#allocation8 + $0xd08] ss:$16 sps:$4 sm:$0xff]  }
 0x42e   :  { %7024 = vmatpush2.bf16.msra.mxu0 %v9362_v32  ;;  %v9431_v32 = vld [vmem:[#allocation8 + $0x808] ss:$16 sps:$4 sm:$0xff]  }
 0x42f   :  { %6965 = vmatpush1.bf16.msra.mxu1 %v9365_v36  ;;  %7025 = vmatprep.subr.bf16.mxu0 %v9370_v37  ;;  %v9436_v36 = vld [vmem:[#allocation8 + $0xbec] ss:$16 sps:$4 sm:$0xff]   ;;  %v9434_v37 = vld [vmem:[#allocation8 + $0xbe8] ss:$16 sps:$4 sm:$0xff]  }
 0x430   :  { %6966 = vmatprep.subr.bf16.mxu1 %v9373_v38  ;;  %v9439_v38 = vld [vmem:[#allocation8 + $0xbcc] ss:$16 sps:$4 sm:$0xff]  }
 0x432   :  { %7026 = vmatpush2.bf16.msra.mxu0 %v9368_v40  ;;  %v9437_v40 = vld [vmem:[#allocation8 + $0xbc8] ss:$16 sps:$4 sm:$0xff]  }
 0x433   :  { %6967 = vmatpush1.bf16.msra.mxu1 %v9371_v35  ;;  %7027 = vmatprep.subr.bf16.mxu0 %v9376_v41  ;;  %v9442_v35 = vld [vmem:[#allocation8 + $0xbac] ss:$16 sps:$4 sm:$0xff]   ;;  %v9440_v41 = vld [vmem:[#allocation8 + $0xba8] ss:$16 sps:$4 sm:$0xff]  }
 0x434   :  { %6968 = vmatprep.subr.bf16.mxu1 %v9379_v44  ;;  %v9445_v44 = vld [vmem:[#allocation8 + $0xb8c] ss:$16 sps:$4 sm:$0xff]  }
 0x436   :  { %7028 = vmatpush2.bf16.msra.mxu0 %v9374_v46  ;;  %v9443_v46 = vld [vmem:[#allocation8 + $0xb88] ss:$16 sps:$4 sm:$0xff]  }
 0x437   :  { %6969 = vmatpush1.bf16.msra.mxu1 %v9377_v6  ;;  %7029 = vmatprep.subr.bf16.mxu0 %v9382_v47  ;;  %v9448_v6 = vld [vmem:[#allocation8 + $0xb6c] ss:$16 sps:$4 sm:$0xff]   ;;  %v9446_v47 = vld [vmem:[#allocation8 + $0xb68] ss:$16 sps:$4 sm:$0xff]  }
 0x438   :  { %6970 = vmatprep.subr.bf16.mxu1 %v9385_v52  ;;  %v9454_v52 = vld [vmem:[#allocation8 + $0xb2c] ss:$16 sps:$4 sm:$0xff]  }
 0x43a   :  { %7030 = vmatpush2.bf16.msra.mxu0 %v9380_v54  ;;  %v9457_v54 = vld [vmem:[#allocation8 + $0xb0c] ss:$16 sps:$4 sm:$0xff]  }
 0x43b   :  { %6971 = vmatpush1.bf16.msra.mxu1 %v9383_v51  ;;  %7085 = vmatprep.subr.bf16.mxu0 %v9388_v59  ;;  %v9455_v51 = vld [vmem:[#allocation8 + $0xb08] ss:$16 sps:$4 sm:$0xff]   ;;  %v9460_v59 = vld [vmem:[#allocation8 + $0xcec] ss:$16 sps:$4 sm:$0xff]  }
 0x43c   :  { %6972 = vmatprep.subr.bf16.mxu1 %v9391_v62  ;;  %v9458_v62 = vld [vmem:[#allocation8 + $0xce8] ss:$16 sps:$4 sm:$0xff]  }
 0x43d   :  { %7032 = vmatmul.mubr.bf16.vlgmr.msra.gmra.mxu0 %v9860_v5  ;;  %v9404_v5 = vld [vmem:[#allocation8 + $0xd88] ss:$16 sps:$4 sm:$0xff]  }
 0x43e   :  { %7086 = vmatpush1.bf16.msra.mxu0 %v9386_v1  ;;  %7117 = vmatprep.mubr.bf16.mxu0 %v9628_v13  ;;  %v9412_v13 = vld [vmem:[#allocation8 + $0xd6c] ss:$16 sps:$4 sm:$0xff]  }
 0x43f   :  { %6973 = vmatpush2.bf16.msra.mxu1 %v9389_v7  ;;  %7087 = vmatprep.subr.bf16.mxu0 %v9394_v55  ;;  %v9463_v1 = vld [vmem:[#allocation8 + $0xccc] ss:$16 sps:$4 sm:$0xff]   ;;  %v9461_v7 = vld [vmem:[#allocation8 + $0xcc8] ss:$16 sps:$4 sm:$0xff]  }
 0x440   :  { %6974 = vmatprep.subr.bf16.mxu1 %v9397_v8  ;;  %v9466_v55 = vld [vmem:[#allocation8 + $0xcac] ss:$16 sps:$4 sm:$0xff]   ;;  %v9464_v8 = vld [vmem:[#allocation8 + $0xca8] ss:$16 sps:$4 sm:$0xff]  }
 0x442   :  { %7088 = vmatpush1.bf16.msra.mxu0 %v9392_v10  ;;  %v9469_v10 = vld [vmem:[#allocation8 + $0xc8c] ss:$16 sps:$4 sm:$0xff]  }
 0x443   :  { %6975 = vmatpush2.bf16.msra.mxu1 %v9395_v60  ;;  %7089 = vmatprep.subr.bf16.mxu0 %v9400_v12  ;;  %v9467_v60 = vld [vmem:[#allocation8 + $0xc88] ss:$16 sps:$4 sm:$0xff]   ;;  %v9472_v12 = vld [vmem:[#allocation8 + $0xc6c] ss:$16 sps:$4 sm:$0xff]  }
 0x444   :  { %6976 = vmatprep.subr.bf16.mxu1 %v9403_v14  ;;  %v9470_v14 = vld [vmem:[#allocation8 + $0xc68] ss:$16 sps:$4 sm:$0xff]  }
 0x446   :  { %7090 = vmatpush1.bf16.msra.mxu0 %v9398_v19  ;;  %v9475_v19 = vld [vmem:[#allocation8 + $0xc4c] ss:$16 sps:$4 sm:$0xff]  }
 0x447   :  { %6977 = vmatpush2.bf16.msra.mxu1 %v9401_v9  ;;  %7091 = vmatprep.subr.bf16.mxu0 %v9406_v17  ;;  %v9473_v9 = vld [vmem:[#allocation8 + $0xc48] ss:$16 sps:$4 sm:$0xff]   ;;  %v9478_v17 = vld [vmem:[#allocation8 + $0xc2c] ss:$16 sps:$4 sm:$0xff]  }
 0x448   :  { %6978 = vmatprep.subr.bf16.mxu1 %v9409_v39  ;;  %v9476_v39 = vld [vmem:[#allocation8 + $0xc28] ss:$16 sps:$4 sm:$0xff]  }
 0x44a   :  { %7092 = vmatpush1.bf16.msra.mxu0 %v9404_v5  ;;  %v9481_v5 = vld [vmem:[#allocation8 + $0xc0c] ss:$16 sps:$4 sm:$0xff]  }
 0x44b   :  { %6979 = vmatpush2.bf16.msra.mxu1 %v9407_v48  ;;  %7093 = vmatprep.subr.bf16.mxu0 %v9412_v13  ;;  %v9479_v48 = vld [vmem:[#allocation8 + $0xc08] ss:$16 sps:$4 sm:$0xff]   ;;  %v6818_v13 = vpop.f32.mrf.mxu0 }
 0x44c   :  { %6980 = vmatprep.subr.bf16.mxu1 %v9415_v22 }
 0x44d   :  { %v6820_v22 = vpop.f32.mrf.mxu0 }
 0x44e   :  { %7094 = vmatpush1.bf16.msra.mxu0 %v9410_v23 }
 0x44f   :  { %6981 = vmatpush2.bf16.msra.mxu1 %v9413_v31  ;;  %7095 = vmatprep.subr.bf16.mxu0 %v9418_v4  ;;  %v6822_v23 = vpop.f32.mrf.mxu0 }
 0x450   :  { %6982 = vmatprep.subr.bf16.mxu1 %v9421_v34 }
 0x451   :  { %v6824_v4 = vpop.f32.mrf.mxu0 }
 0x452   :  { %7096 = vmatpush1.bf16.msra.mxu0 %v9416_v29 }
 0x453   :  { %6983 = vmatpush2.bf16.msra.mxu1 %v9419_v53  ;;  %7097 = vmatprep.subr.bf16.mxu0 %v9424_v27  ;;  %v90_v53 = vld [vmem:[#allocation10] sm:$0xf] }
 0x454   :  { %6984 = vmatprep.subr.bf16.mxu1 %v9427_v50 }
 0x456   :  { %7098 = vmatpush1.bf16.msra.mxu0 %v9422_v42  ;;  %v95_v42 = vrot.slane %v90_v53, %v9709_v49 }
 0x457   :  { %6985 = vmatpush2.bf16.msra.mxu1 %v9425_v33  ;;  %7099 = vmatprep.subr.bf16.mxu0 %v9430_v61  ;;  %v99_v61 = vrot.slane %v90_v53, %v9702_v20 }
 0x458   :  { %6986 = vmatprep.subr.bf16.mxu1 %v9433_v3  ;;  %v3630_v20 = vadd.f32 %v9803_v43, %v95_v42 }
 0x45a   :  { %7100 = vmatpush1.bf16.msra.mxu0 %v9428_v18 }
 0x45b   :  { %6987 = vmatpush2.bf16.msra.mxu1 %v9431_v32 }
 0x45c   :  { %7042 = vmatprep.subr.bf16.mxu1 %v9436_v36 }
 0x45d   :  { %7118 = vmatmul.mubr.bf16.vlgmr.msra.gmra.mxu0 %v9881_v21  ;;  %v9451_v21 = vld [vmem:[#allocation8 + $0xb4c] ss:$16 sps:$4 sm:$0xff]  }
 0x45e   :  { %6989 = vmatmul.mubr.bf16.vlgmr.msra.gmra.mxu1 %v9850_v57  ;;  %v9449_v57 = vld [vmem:[#allocation8 + $0xb48] ss:$16 sps:$4 sm:$0xff]  }
 0x45f   :  { %7043 = vmatpush1.bf16.msra.mxu1 %v9434_v37  ;;  %7074 = vmatprep.mubr.bf16.mxu1 %v9871_v45  ;;  %v9452_v45 = vld [vmem:[#allocation8 + $0xb28] ss:$16 sps:$4 sm:$0xff]   ;;  %v3626_v37 = vadd.f32 %v9795_v58, %v95_v42  ;;  %v3631_v58 = vadd.f32 %v9806_v11, %v99_v61 }
 0x460   :  { %7044 = vmatprep.subr.bf16.mxu1 %v9439_v38 }
 0x463   :  { %7045 = vmatpush1.bf16.msra.mxu1 %v9437_v40 }
 0x464   :  { %7046 = vmatprep.subr.bf16.mxu1 %v9442_v35 }
 0x467   :  { %7047 = vmatpush1.bf16.msra.mxu1 %v9440_v41  ;;  %v3627_v41 = vadd.f32 %v9799_v0, %v99_v61 }
 0x468   :  { %7048 = vmatprep.subr.bf16.mxu1 %v9445_v44 }
 0x46b   :  { %7049 = vmatpush1.bf16.msra.mxu1 %v9443_v46 }
 0x46c   :  { %7050 = vmatprep.subr.bf16.mxu1 %v9448_v6 }
 0x46f   :  { %7051 = vmatpush1.bf16.msra.mxu1 %v9446_v47 }
 0x470   :  { %7052 = vmatprep.subr.bf16.mxu1 %v9451_v21 }
 0x473   :  { %7053 = vmatpush1.bf16.msra.mxu1 %v9449_v57 }
 0x474   :  { %7054 = vmatprep.subr.bf16.mxu1 %v9454_v52 }
 0x477   :  { %7055 = vmatpush1.bf16.msra.mxu1 %v9452_v45 }
 0x478   :  { %7056 = vmatprep.subr.bf16.mxu1 %v9457_v54 }
 0x47b   :  { %7057 = vmatpush1.bf16.msra.mxu1 %v9455_v51 }
 0x47c   :  { %7058 = vmatprep.subr.bf16.mxu1 %v9460_v59 }
 0x47d   :  { %v6861_v31 = vpop.f32.mrf.mxu1 }
 0x47e   :  { %v6862_v33 = vadd.f32 %v6861_v31, %v6818_v13 }
 0x47f   :  { %7059 = vmatpush2.bf16.msra.mxu1 %v9458_v62  ;;  %v6863_v34 = vpop.f32.mrf.mxu1 }
 0x480   :  { %7060 = vmatprep.subr.bf16.mxu1 %v9463_v1  ;;  %v6864_v32 = vadd.f32 %v6863_v34, %v6820_v22 }
 0x481   :  { %v6865_v27 = vpop.f32.mrf.mxu1 }
 0x482   :  { %v6866_v38 = vadd.f32 %v6865_v27, %v6822_v23 }
 0x483   :  { %7061 = vmatpush2.bf16.msra.mxu1 %v9461_v7  ;;  %v6867_v3 = vpop.f32.mrf.mxu1 }
 0x484   :  { %7062 = vmatprep.subr.bf16.mxu1 %v9466_v55  ;;  %v6868_v6 = vadd.f32 %v6867_v3, %v6824_v4  ;;  %v3622_v4 = vadd.f32 %v9833_v16, %v9836_v26 }
 0x487   :  { %7063 = vmatpush2.bf16.msra.mxu1 %v9464_v8 }
 0x488   :  { %7064 = vmatprep.subr.bf16.mxu1 %v9469_v10 }
 0x48b   :  { %7065 = vmatpush2.bf16.msra.mxu1 %v9467_v60 }
 0x48c   :  { %7066 = vmatprep.subr.bf16.mxu1 %v9472_v12 }
 0x48f   :  { %7067 = vmatpush2.bf16.msra.mxu1 %v9470_v14  ;;  %v103_v14 = vrot.slane %v90_v53, %v9724_v30 }
 0x490   :  { %7068 = vmatprep.subr.bf16.mxu1 %v9475_v19  ;;  %v3618_v19 = vadd.f32 %v9821_v56, %v9827_v15 }
 0x492   :  { %v3628_v23 = vadd.f32 %v3618_v19, %v103_v14 }
 0x493   :  { %7069 = vmatpush2.bf16.msra.mxu1 %v9473_v9 }
 0x494   :  { %7070 = vmatprep.subr.bf16.mxu1 %v9478_v17  ;;  %v107_v17 = vrot.slane %v90_v53, %v9721_v28 }
 0x496   :  { %v3633_v16 = vadd.f32 %v9839_v24, %v107_v17 }
 0x497   :  { %7071 = vmatpush2.bf16.msra.mxu1 %v9476_v39  ;;  %v3620_v39 = vadd.f32 %v9823_v63, %v9831_v2  ;;  %v3632_v2 = vadd.f32 %v3622_v4, %v103_v14 }
 0x498   :  { %7072 = vmatprep.subr.bf16.mxu1 %v9481_v5 }
 0x499   :  { %v3629_v56 = vadd.f32 %v3620_v39, %v107_v17 }
 0x49b   :  { %7073 = vmatpush2.bf16.msra.mxu1 %v9479_v48 }
 0x49e   :  { %7075 = vmatmul.mubr.bf16.vlgmr.msra.gmra.mxu1 %v9873_v25 }
 0x4bd   :  { %v6904_v29 = vpop.f32.mrf.mxu0 }
 0x4be   :  { %v6905_v36 = vadd.f32 %v6904_v29, %v6862_v33 }
 0x4bf   :  { %v6906_v50 = vpop.f32.mrf.mxu0 }
 0x4c0   :  { %v6907_v40 = vadd.f32 %v6906_v50, %v6864_v32 }
 0x4c1   :  { %v6908_v18 = vpop.f32.mrf.mxu0 }
 0x4c2   :  { %v6909_v47 = vadd.f32 %v6908_v18, %v6866_v38 }
 0x4c3   :  { %v6910_v44 = vpop.f32.mrf.mxu0 }
 0x4c4   :  { %v6911_v52 = vadd.f32 %v6910_v44, %v6868_v6 }
 0x4de   :  { %v6947_v25 = vpop.f32.mrf.mxu1 }
 0x4df   :  { %v6948_v35 = vadd.f32 %v6947_v25, %v6905_v36 }
 0x4e0   :  { %v6949_v46 = vpop.f32.mrf.mxu1 }
 0x4e1   :  { %v7128_v49 = vadd.f32 %v6948_v35, %v3626_v37  ;;  %v6950_v21 = vadd.f32 %v6949_v46, %v6907_v40 }
 0x4e2   :  { %v6951_v57 = vpop.f32.mrf.mxu1 }
 0x4e3   :  { %7136 = vst [vmem:[#allocation11] sm:$0xff] %v7128_v49  ;;  %v7129_v45 = vadd.f32 %v6950_v21, %v3627_v41  ;;  %v6952_v54 = vadd.f32 %v6951_v57, %v6909_v47 }
 0x4e4   :  { %v6953_v51 = vpop.f32.mrf.mxu1 }
 0x4e5   :  { %7137 = vst [vmem:[#allocation11 + $0x8] sm:$0xff] %v7129_v45  ;;  %v7132_v59 = vadd.f32 %v6952_v54, %v3630_v20  ;;  %v6954_v62 = vadd.f32 %v6953_v51, %v6911_v52 }
 0x4e7   :  { %7140 = vst [vmem:[#allocation11 + $0x20] sm:$0xff] %v7132_v59  ;;  %v7133_v0 = vadd.f32 %v6954_v62, %v3631_v58 }
 0x4e9   :  { %7141 = vst [vmem:[#allocation11 + $0x28] sm:$0xff] %v7133_v0 }
 0x4fd   :  { %v7033_v1 = vpop.f32.mrf.mxu0 }
 0x4ff   :  { %v7035_v7 = vpop.f32.mrf.mxu0 }
 0x501   :  { %v7037_v8 = vpop.f32.mrf.mxu0 }
 0x503   :  { %v7039_v60 = vpop.f32.mrf.mxu0 }
 0x51d   :  { %v7119_v12 = vpop.f32.mrf.mxu0 }
 0x51e   :  { %v6990_v55 = vpop.f32.mrf.mxu1 }
 0x51f   :  { %v7034_v9 = vadd.f32 %v7033_v1, %v6990_v55  ;;  %v7121_v5 = vpop.f32.mrf.mxu0 }
 0x520   :  { %v6992_v10 = vpop.f32.mrf.mxu1 }
 0x521   :  { %v7036_v13 = vadd.f32 %v7035_v7, %v6992_v10  ;;  %v7123_v15 = vpop.f32.mrf.mxu0 }
 0x522   :  { %v6994_v43 = vpop.f32.mrf.mxu1 }
 0x523   :  { %v7038_v30 = vadd.f32 %v7037_v8, %v6994_v43  ;;  %v7125_v18 = vpop.f32.mrf.mxu0 }
 0x524   :  { %v6996_v11 = vpop.f32.mrf.mxu1 }
 0x525   :  { %v7040_v50 = vadd.f32 %v7039_v60, %v6996_v11 }
 0x55e   :  { %v7076_v48 = vpop.f32.mrf.mxu1 }
 0x55f   :  { %v7077_v22 = vadd.f32 %v7076_v48, %v7034_v9 }
 0x560   :  { %v7078_v31 = vpop.f32.mrf.mxu1 }
 0x561   :  { %v7120_v34 = vadd.f32 %v7119_v12, %v7077_v22  ;;  %v7079_v29 = vadd.f32 %v7078_v31, %v7036_v13 }
 0x562   :  { %v7080_v27 = vpop.f32.mrf.mxu1 }
 0x563   :  { %v7130_v28 = vadd.f32 %v7120_v34, %v3628_v23  ;;  %v7122_v53 = vadd.f32 %v7121_v5, %v7079_v29  ;;  %v7081_v42 = vadd.f32 %v7080_v27, %v7038_v30 }
 0x564   :  { %v7082_v63 = vpop.f32.mrf.mxu1 }
 0x565   :  { %7138 = vst [vmem:[#allocation11 + $0x10] sm:$0xff] %v7130_v28  ;;  %v7131_v33 = vadd.f32 %v7122_v53, %v3629_v56  ;;  %v7124_v61 = vadd.f32 %v7123_v15, %v7081_v42  ;;  %v7083_v3 = vadd.f32 %v7082_v63, %v7040_v50 }
 0x567   :  { %7139 = vst [vmem:[#allocation11 + $0x18] sm:$0xff] %v7131_v33  ;;  %v7134_v26 = vadd.f32 %v7124_v61, %v3632_v2  ;;  %v7126_v32 = vadd.f32 %v7125_v18, %v7083_v3 }
 0x569   :  { %7142 = vst [vmem:[#allocation11 + $0x30] sm:$0xff] %v7134_v26  ;;  %v7135_v36 = vadd.f32 %v7126_v32, %v3633_v16 }
 0x56b   :  { %7143 = vst [vmem:[#allocation11 + $0x38] sm:$0xff] %v7135_v36 }
 0x56c   :  { %9602 = shalt.err (!%p9599_p1)
}
 0x56d   :  { %s9630_s20 = smov 512   ;;  %s9631_s21 = smov 32  }
 0x56e   :  { %7155 = dma.vmem_to_hbm [thread:$0]  %s7150_s4, 1024, %s9914_s5, [#allocation4], %s9630_s20, %s9630_s20, %s9631_s21  }
 0x56f   :  { %9617 = dma.done.wait [#allocation4], 1024  }
 0x570   :  { %9618 = vsyncadd [#allocation4], 4294966272 }
 0x571   :  { %7159 = vsyncpa [#allocation3], 1 }
 0x572   :  { %7160 = vsyncpa [#allocation6], 1 }
 0x573   :  { %7161 = vsyncpa [#allocation9], 1 }
 0x574   :  { %7162 = vsyncpa [#allocation4], 1 }

</bundles_post_ra>
